<compile_context>
chip_gen: v7x
topology: tpu7x:2x2x1
jax: 0.10.0
libtpu: 0.0.40
codegen_flags: <defaults>
</compile_context>

<pallas_src>
import functools

import jax
import jax.numpy as jnp
import numpy as np
from jax.experimental import pallas as pl
from jax.experimental.pallas import tpu as pltpu  # noqa: F401  (kept for TPU-specific tuning hooks)

# ---------------- config (BlackholioModelConfig defaults) ----------------
OBS_DIM = 456
PLAYER_DIM = 6
ENTITY_DIM = 5
MAX_ENTITIES = 50
FOOD_DIM = 2
MAX_FOOD = 100
HIDDEN = 256
NUM_LAYERS = 3
ATTN_HEADS = 4
ATTN_HIDDEN = 128
HEAD_DIM = ATTN_HIDDEN // ATTN_HEADS
HP = 8                                  # heads padded to a full sublane group
MOVEMENT_DIM = 2
DISCRETE_ACTIONS = 2
GRID_SIZE = 32
GRID_CH = 3
LN_EPS = 1e-5

TINY_K = 16                             # padded K for 6-wide player / 5-wide entity rows (bf16 sublane pack = 16)
FOOD_K = 256                            # food K padded 200 -> 256 (clean MXU pass)
PACK_WIDTH = 128                        # lane-dense packed head output


def _round_up(x, m):
    return ((x + m - 1) // m) * m


# ---------------- packed slab layouts (shared by prep + kernel) ----------------
# All row segment sizes are multiples of 16 (bf16 sublane packing), all bias
# segment sizes are multiples of 128 (lane tile) -> every static slice is aligned.
W256_LAYOUT = (('pe_w1', TINY_K), ('pe_w2', HIDDEN), ('kv_w', TINY_K), ('o_w', ATTN_HIDDEN),
               ('fus_w0a', HIDDEN), ('fus_w0b', HIDDEN), ('fus_w0c', HIDDEN // 2),
               ('fus_w1', HIDDEN), ('fus_w2', HIDDEN))
W128_LAYOUT = (('q_w', HIDDEN), ('fe_w1', FOOD_K), ('fe_w2', HIDDEN // 2),
               ('heads_w2', 3 * (HIDDEN // 2)))
BIAS_LAYOUT = (('pe_b1', 256), ('pe_b2', 256), ('q_b', 128), ('kv_b', 256), ('o_b', 256),
               ('ea_ln_g', 256), ('ea_ln_b', 256), ('fe_b1', 128), ('fe_b2', 128),
               ('fus_b0', 256), ('fus_g0', 256), ('fus_beta0', 256),
               ('fus_b1', 256), ('fus_g1', 256), ('fus_beta1', 256),
               ('fus_b2', 256), ('fus_g2', 256), ('fus_beta2', 256),
               ('heads_b1', 384), ('heads_b2', 128))


def _offsets(layout):
    d, off = {}, 0
    for name, n in layout:
        d[name] = (off, n)
        off += n
    return d, off


W256_OFF, W256_ROWS = _offsets(W256_LAYOUT)
W128_OFF, W128_ROWS = _offsets(W128_LAYOUT)
BIAS_OFF, BIAS_COLS = _offsets(BIAS_LAYOUT)


# ======================================================================
# The single fused Pallas kernel
# ======================================================================
def _fused_kernel(player_ref, ent_ref, food_ref,
                  w256_ref, w128_ref, hw1_ref, bias_ref,
                  hsel_ref, hselt_ref, bsel_ref, bselt_ref, valid_ref,
                  out_ref, *, batch):
    f32 = jnp.float32
    bf16 = jnp.bfloat16

    def w256(name):
        o, n = W256_OFF[name]
        return w256_ref[o:o + n, :]

    def w128(name):
        o, n = W128_OFF[name]
        return w128_ref[o:o + n, :]

    def bia(name):
        o, n = BIAS_OFF[name]
        return bias_ref[:, o:o + n]

    def mm(x, w):                        # bf16 weights, f32 accumulation
        return jnp.dot(x.astype(bf16), w, preferred_element_type=f32)

    def fmm(a, b):                       # small exact f32 selection matmuls
        return jnp.dot(a, b, preferred_element_type=f32)

    def layer_norm(y, gname, bname):
        # single-pass moments: E[x^2] - E[x]^2 removes the serial mean->var dep
        mean = jnp.mean(y, axis=-1, keepdims=True)
        msq = jnp.mean(y * y, axis=-1, keepdims=True)
        var = msq - mean * mean
        return (y - mean) * jax.lax.rsqrt(var + LN_EPS) * bia(gname) + bia(bname)

    # ---------------- player encoder: 6 -> 256 -> 256 ----------------
    ph = jnp.maximum(mm(player_ref[...], w256('pe_w1')) + bia('pe_b1'), 0.0)
    player_enc = mm(ph, w256('pe_w2')) + bia('pe_b2')                    # [Bp, 256]

    # ---------------- entity attention (composed projections) ----------------
    # k|v directly from raw entity rows (entity_projection∘in_proj composed).
    kv = mm(ent_ref[...], w256('kv_w')) + bia('kv_b')                    # [BEp, 256]
    k = kv[:, :ATTN_HIDDEN]                                              # [BEp, 128]
    v = kv[:, ATTN_HIDDEN:]                                              # [BEp, 128]
    # q directly from player encoding (query_projection∘in_proj composed).
    q = mm(player_enc, w128('q_w')) + bia('q_b')                         # [Bp, 128]

    bsel = bsel_ref[...]                                                 # [BEp, Bp]  0/1
    bsel_t = bselt_ref[...]                                              # [Bp, BEp]
    valid = valid_ref[...]                                               # [BEp, HP]
    hsel = hsel_ref[...]                                                 # [128, HP]
    hsel_t = hselt_ref[...]                                              # [HP, 128]

    scale = 1.0 / float(HEAD_DIM) ** 0.5
    q_exp = fmm(bsel, q) * scale                                         # broadcast query to entity rows
    scores = fmm(k * q_exp, hsel)                                        # [BEp, HP] per-head dot products

    # Exact per-(batch, head) softmax shift (batch is a static compile constant).
    row = jax.lax.broadcasted_iota(jnp.int32, scores.shape, 0)
    shift = jnp.zeros_like(scores)
    for b in range(batch):
        in_b = (row >= b * MAX_ENTITIES) & (row < (b + 1) * MAX_ENTITIES)
        m_b = jnp.max(jnp.where(in_b, scores, f32(-1e30)), axis=0, keepdims=True)
        shift = jnp.where(in_b, m_b, shift)

    p = jnp.exp(scores - shift) * valid                                  # masked softmax numerator
    denom = fmm(bsel_t, p)                                               # [Bp, HP]
    denom = jnp.where(denom > 0.0, denom, 1.0)                           # padded batch/head -> no div-by-0
    p_full = fmm(p, hsel_t)                                              # broadcast probs across head dims
    num = fmm(bsel_t, p_full * v)                                        # [Bp, 128]
    # approx reciprocal runs on the EUP slot; ~1e-4 rel error vs exact divide
    att = num * pl.reciprocal(fmm(denom, hsel_t), approx=True)           # [Bp, 128]

    # out_proj ∘ output_projection composed into one [128,256] matmul
    ent_out = mm(att, w256('o_w')) + bia('o_b')                          # [Bp, 256]
    entity_enc = layer_norm(ent_out, 'ea_ln_g', 'ea_ln_b')

    # ---------------- food encoder: 200(->256) -> 128 -> 128 ----------------
    fh = jnp.maximum(mm(food_ref[...], w128('fe_w1')) + bia('fe_b1'), 0.0)
    food_enc = mm(fh, w128('fe_w2')) + bia('fe_b2')                      # [Bp, 128]

    # ---------------- fusion trunk (no concat scratch) ----------------
    # fusion layer 0 = sum of three row-block matmuls; spatial (constant) branch
    # is already folded into fus_b0.  Dropout is identity at inference.
    x = (mm(player_enc, w256('fus_w0a')) + mm(entity_enc, w256('fus_w0b'))
         + mm(food_enc, w256('fus_w0c')) + bia('fus_b0'))
    x = layer_norm(jnp.maximum(x, 0.0), 'fus_g0', 'fus_beta0')
    x = layer_norm(jnp.maximum(mm(x, w256('fus_w1')) + bia('fus_b1'), 0.0),
                   'fus_g1', 'fus_beta1')
    x = layer_norm(jnp.maximum(mm(x, w256('fus_w2')) + bia('fus_b2'), 0.0),
                   'fus_g2', 'fus_beta2')

    # TODO(synk): use_lstm=False default; LSTM branch not implemented.

    # ---------------- heads: fused 256->384 + block-diagonal 384->128 ----------------
    hh = jnp.maximum(mm(x, hw1_ref[...]) + bia('heads_b1'), 0.0)         # [Bp, 384]
    raw = mm(hh, w128('heads_w2')) + bia('heads_b2')                     # [Bp, 128]
    # cols 0-1: movement mean (tanh), 2-3: split logits, 4: value, rest: 0
    col = jax.lax.broadcasted_iota(jnp.int32, raw.shape, 1)
    out_ref[...] = jnp.where(col < MOVEMENT_DIM, jnp.tanh(raw), raw)


def _full_spec(shape):
    return pl.BlockSpec(shape, lambda: (0,) * len(shape))


# ======================================================================
# Plain-JAX helpers used ONCE at parameter-prep time to constant-fold the
# spatial CNN branch (its input grid is always zeros in the reference).
# ======================================================================
def _im2col_nhwc(x, k, pad):
    B, H, W, C = x.shape
    xp = jnp.pad(x, ((0, 0), (pad, pad), (pad, pad), (0, 0)))
    cols = []
    for kh in range(k):
        for kw in range(k):
            cols.append(xp[:, kh:kh + H, kw:kw + W, :])
    patches = jnp.stack(cols, axis=3)                  # [B,H,W,k*k,C]
    return patches.reshape(B * H * W, k * k * C)


def _maxpool2(x):
    B, H, W, C = x.shape
    return x.reshape(B, H // 2, 2, W // 2, 2, C).max(axis=(2, 4))


def _compute_spatial_const(p):
    """SpatialFeatureExtractor on the all-zeros grid: depends only on weights."""
    grid = jnp.zeros((1, GRID_SIZE, GRID_SIZE, GRID_CH), jnp.float32)
    x = jnp.maximum(_im2col_nhwc(grid, 5, 2) @ p['conv1_w'] + p['conv1_b'], 0.0)
    x = _maxpool2(x.reshape(1, 32, 32, 32))
    x = jnp.maximum(_im2col_nhwc(x, 3, 1) @ p['conv2_w'] + p['conv2_b'], 0.0)
    x = _maxpool2(x.reshape(1, 16, 16, 64))
    x = jnp.maximum(_im2col_nhwc(x, 3, 1) @ p['conv3_w'] + p['conv3_b'], 0.0)
    x = _maxpool2(x.reshape(1, 8, 8, 128))
    return x.reshape(1, -1) @ p['sp_out_w'] + p['sp_out_b']              # [1, 256]


# ======================================================================
# Parameters (deterministic synthetic init, same structure as the module)
# ======================================================================
def init_params(key):
    it = iter(jax.random.split(key, 32))

    def lin(fan_in, fan_out):
        k = next(it)
        w = (jax.random.normal(k, (fan_in, fan_out), jnp.float32)
             * (1.0 / jnp.sqrt(jnp.float32(fan_in))))
        return w, jnp.zeros((fan_out,), jnp.float32)

    p = {}
    p['pe_w1'], p['pe_b1'] = lin(PLAYER_DIM, HIDDEN)
    p['pe_w2'], p['pe_b2'] = lin(HIDDEN, HIDDEN)
    p['ea_proj_w'], p['ea_proj_b'] = lin(ENTITY_DIM, ATTN_HIDDEN)
    p['ea_query_w'], p['ea_query_b'] = lin(HIDDEN, ATTN_HIDDEN)
    p['ea_q_w'], p['ea_q_b'] = lin(ATTN_HIDDEN, ATTN_HIDDEN)
    p['ea_k_w'], p['ea_k_b'] = lin(ATTN_HIDDEN, ATTN_HIDDEN)
    p['ea_v_w'], p['ea_v_b'] = lin(ATTN_HIDDEN, ATTN_HIDDEN)
    p['ea_o_w'], p['ea_o_b'] = lin(ATTN_HIDDEN, ATTN_HIDDEN)
    p['ea_out_w'], p['ea_out_b'] = lin(ATTN_HIDDEN, HIDDEN)
    p['ea_ln_g'] = jnp.ones((HIDDEN,), jnp.float32)
    p['ea_ln_b'] = jnp.zeros((HIDDEN,), jnp.float32)
    p['fe_w1'], p['fe_b1'] = lin(MAX_FOOD * FOOD_DIM, HIDDEN // 2)
    p['fe_w2'], p['fe_b2'] = lin(HIDDEN // 2, HIDDEN // 2)
    # conv weights stored as [k*k*Cin, Cout] (kh,kw,cin ordering) for im2col
    p['conv1_w'], p['conv1_b'] = lin(GRID_CH * 5 * 5, 32)
    p['conv2_w'], p['conv2_b'] = lin(32 * 3 * 3, 64)
    p['conv3_w'], p['conv3_b'] = lin(64 * 3 * 3, 128)
    p['sp_out_w'], p['sp_out_b'] = lin(128 * (GRID_SIZE // 8) ** 2, HIDDEN)
    fusion_in = HIDDEN * 3 + HIDDEN // 2
    for i in range(NUM_LAYERS):
        cin = fusion_in if i == 0 else HIDDEN
        p[f'fus_w{i}'], p[f'fus_b{i}'] = lin(cin, HIDDEN)
        p[f'fus_g{i}'] = jnp.ones((HIDDEN,), jnp.float32)
        p[f'fus_beta{i}'] = jnp.zeros((HIDDEN,), jnp.float32)
    p['mm_w1'], p['mm_b1'] = lin(HIDDEN, HIDDEN // 2)
    p['mm_w2'], p['mm_b2'] = lin(HIDDEN // 2, MOVEMENT_DIM)
    p['log_std'] = jnp.zeros((1, MOVEMENT_DIM), jnp.float32)
    p['dp_w1'], p['dp_b1'] = lin(HIDDEN, HIDDEN // 2)
    p['dp_w2'], p['dp_b2'] = lin(HIDDEN // 2, DISCRETE_ACTIONS)
    p['vh_w1'], p['vh_b1'] = lin(HIDDEN, HIDDEN // 2)
    p['vh_w2'], p['vh_b2'] = lin(HIDDEN // 2, 1)
    return p


def prepare_params(p):
    """One-time preprocessing: compose adjacent affine layers, constant-fold the
    spatial branch into the first fusion bias, fuse the heads, and pack all
    weights into 3 bf16 slabs + 1 f32 bias vector."""
    f32 = jnp.float32

    def row_pad(w, rows):
        return jnp.zeros((rows, w.shape[1]), f32).at[:w.shape[0]].set(w)

    # --- spatial branch (constant: zero input grid) folded into fusion bias ---
    spatial_const = _compute_spatial_const(p)                            # [1, 256]
    W0 = p['fus_w0']                                                     # [896, 256]
    sp_lo = 2 * HIDDEN + HIDDEN // 2                                     # 640
    fus_b0_eff = p['fus_b0'] + (spatial_const @ W0[sp_lo:, :]).reshape(-1)

    # --- composed affine pairs (exact; no nonlinearity between them) ---
    q_w = p['ea_query_w'] @ p['ea_q_w']                                  # [256, 128]
    q_b = p['ea_query_b'] @ p['ea_q_w'] + p['ea_q_b']
    k_w = p['ea_proj_w'] @ p['ea_k_w']                                   # [5, 128]
    k_b = p['ea_proj_b'] @ p['ea_k_w'] + p['ea_k_b']
    v_w = p['ea_proj_w'] @ p['ea_v_w']
    v_b = p['ea_proj_b'] @ p['ea_v_w'] + p['ea_v_b']
    kv_w = jnp.concatenate([k_w, v_w], axis=1)                           # [5, 256]
    kv_b = jnp.concatenate([k_b, v_b])                                   # [256]
    o_w = p['ea_o_w'] @ p['ea_out_w']                                    # [128, 256]
    o_b = p['ea_o_b'] @ p['ea_out_w'] + p['ea_out_b']                    # [256]

    # --- fused policy / value heads ---
    heads_w1 = jnp.concatenate([p['mm_w1'], p['dp_w1'], p['vh_w1']], axis=1)   # [256, 384]
    heads_b1 = jnp.concatenate([p['mm_b1'], p['dp_b1'], p['vh_b1']])           # [384]
    H2 = HIDDEN // 2
    heads_w2 = jnp.zeros((3 * H2, PACK_WIDTH), f32)
    heads_w2 = heads_w2.at[0:H2, 0:MOVEMENT_DIM].set(p['mm_w2'])
    heads_w2 = heads_w2.at[H2:2 * H2, 2:2 + DISCRETE_ACTIONS].set(p['dp_w2'])
    heads_w2 = heads_w2.at[2 * H2:3 * H2, 4:5].set(p['vh_w2'])
    heads_b2 = jnp.zeros((PACK_WIDTH,), f32)
    heads_b2 = heads_b2.at[0:MOVEMENT_DIM].set(p['mm_b2'])
    heads_b2 = heads_b2.at[2:2 + DISCRETE_ACTIONS].set(p['dp_b2'])
    heads_b2 = heads_b2.at[4:5].set(p['vh_b2'])

    # --- packed weight slabs (bf16) ---
    segs256 = {
        'pe_w1': row_pad(p['pe_w1'], TINY_K),
        'pe_w2': p['pe_w2'],
        'kv_w': row_pad(kv_w, TINY_K),
        'o_w': o_w,
        'fus_w0a': W0[0:HIDDEN, :],
        'fus_w0b': W0[HIDDEN:2 * HIDDEN, :],
        'fus_w0c': W0[2 * HIDDEN:sp_lo, :],
        'fus_w1': p['fus_w1'],
        'fus_w2': p['fus_w2'],
    }
    w256 = jnp.concatenate([segs256[n] for n, _ in W256_LAYOUT], axis=0).astype(jnp.bfloat16)
    assert w256.shape == (W256_ROWS, HIDDEN)

    segs128 = {
        'q_w': q_w,
        'fe_w1': row_pad(p['fe_w1'], FOOD_K),
        'fe_w2': p['fe_w2'],
        'heads_w2': heads_w2,
    }
    w128 = jnp.concatenate([segs128[n] for n, _ in W128_LAYOUT], axis=0).astype(jnp.bfloat16)
    assert w128.shape == (W128_ROWS, ATTN_HIDDEN)

    # --- packed bias / gamma / beta vector (f32, lane-aligned segments) ---
    bias_segs = {
        'pe_b1': p['pe_b1'], 'pe_b2': p['pe_b2'], 'q_b': q_b, 'kv_b': kv_b, 'o_b': o_b,
        'ea_ln_g': p['ea_ln_g'], 'ea_ln_b': p['ea_ln_b'],
        'fe_b1': p['fe_b1'], 'fe_b2': p['fe_b2'],
        'fus_b0': fus_b0_eff, 'fus_g0': p['fus_g0'], 'fus_beta0': p['fus_beta0'],
        'fus_b1': p['fus_b1'], 'fus_g1': p['fus_g1'], 'fus_beta1': p['fus_beta1'],
        'fus_b2': p['fus_b2'], 'fus_g2': p['fus_g2'], 'fus_beta2': p['fus_beta2'],
        'heads_b1': heads_b1, 'heads_b2': heads_b2,
    }
    biases = jnp.concatenate([bias_segs[n] for n, _ in BIAS_LAYOUT]).reshape(1, -1).astype(f32)
    assert biases.shape == (1, BIAS_COLS)

    # --- head-selection constants (batch-independent) ---
    hsel_np = np.zeros((ATTN_HIDDEN, HP), np.float32)
    for h in range(ATTN_HEADS):
        hsel_np[h * HEAD_DIM:(h + 1) * HEAD_DIM, h] = 1.0

    return {
        'w256': w256,
        'w128': w128,
        'heads_w1': heads_w1.astype(jnp.bfloat16),
        'biases': biases,
        'hsel': jnp.asarray(hsel_np),
        'hsel_t': jnp.asarray(hsel_np.T),
        'log_std': p['log_std'],
    }


# ======================================================================
# Forward pass (thin JAX wrapper around the single fused pallas_call)
# ======================================================================
def blackholio_forward(prepped, observations):
    """observations: [B, 456] float32. Eval mode (dropout = identity, no LSTM)."""
    B = observations.shape[0]
    B_pad = max(8, _round_up(B, 8))
    BE = B * MAX_ENTITIES
    BE_pad = _round_up(BE, 8)

    obs = observations.astype(jnp.float32)
    player = obs[:, :PLAYER_DIM]
    entity = obs[:, PLAYER_DIM:PLAYER_DIM + MAX_ENTITIES * ENTITY_DIM].reshape(BE, ENTITY_DIM)
    food = obs[:, PLAYER_DIM + MAX_ENTITIES * ENTITY_DIM:OBS_DIM]

    player_pad = jnp.zeros((B_pad, TINY_K), jnp.float32).at[:B, :PLAYER_DIM].set(player)
    ent_pad = jnp.zeros((BE_pad, TINY_K), jnp.float32).at[:BE, :ENTITY_DIM].set(entity)
    food_pad = jnp.zeros((B_pad, FOOD_K), jnp.float32).at[:B, :MAX_FOOD * FOOD_DIM].set(food)

    # Batch-selection / validity masks: pure numpy at trace time -> baked constants.
    bsel_np = np.zeros((BE_pad, B_pad), np.float32)
    for b in range(B):
        bsel_np[b * MAX_ENTITIES:(b + 1) * MAX_ENTITIES, b] = 1.0
    valid_np = np.zeros((BE_pad, HP), np.float32)
    valid_np[:BE, :ATTN_HEADS] = 1.0

    args = (player_pad, ent_pad, food_pad,
            prepped['w256'], prepped['w128'], prepped['heads_w1'], prepped['biases'],
            prepped['hsel'], prepped['hsel_t'],
            jnp.asarray(bsel_np), jnp.asarray(bsel_np.T), jnp.asarray(valid_np))

    kern = functools.partial(_fused_kernel, batch=B)
    # TODO(synk): on v7x with large batches, add a parallel batch-tile grid axis
    # so both TensorCores are used; grid-less is best for B <= 8.
    packed = pl.pallas_call(
        kern,
        out_shape=jax.ShapeDtypeStruct((B_pad, PACK_WIDTH), jnp.float32),
        in_specs=[_full_spec(a.shape) for a in args],
        out_specs=_full_spec((B_pad, PACK_WIDTH)),
    )(*args)

    movement_mean = packed[:B, 0:MOVEMENT_DIM]
    split_logits = packed[:B, 2:2 + DISCRETE_ACTIONS]
    value = packed[:B, 4]
    movement_std = jnp.broadcast_to(
        jnp.clip(jnp.exp(prepped['log_std']), 0.01, 1.0), movement_mean.shape)

    return {
        'movement_mean': movement_mean,
        'movement_std': movement_std,
        'split_logits': split_logits,
        'value': value,
    }


if __name__ == "__main__":
    key = jax.random.PRNGKey(0)
    pkey, okey = jax.random.split(key)
    params = init_params(pkey)
    prepped = prepare_params(params)

    batch = 2
    observations = jax.random.normal(okey, (batch, OBS_DIM), jnp.float32)

    fwd = jax.jit(blackholio_forward)
    out = fwd(prepped, observations)
    out = jax.block_until_ready(out)

    assert out['movement_mean'].shape == (batch, MOVEMENT_DIM)
    assert out['movement_std'].shape == (batch, MOVEMENT_DIM)
    assert out['split_logits'].shape == (batch, DISCRETE_ACTIONS)
    assert out['value'].shape == (batch,)
    assert all(bool(jnp.all(jnp.isfinite(v))) for v in out.values())

    print("KERNEL_OK")
</pallas_src>

<mosaic_0001>
module attributes {stable_mosaic.version = 11 : i64} {
  func.func @_fused_kernel(%arg0: memref<8x16xf32, #tpu.memory_space<vmem>>, %arg1: memref<104x16xf32, #tpu.memory_space<vmem>>, %arg2: memref<8x256xf32, #tpu.memory_space<vmem>>, %arg3: memref<1568x256xbf16, #tpu.memory_space<vmem>>, %arg4: memref<1024x128xbf16, #tpu.memory_space<vmem>>, %arg5: memref<256x384xbf16, #tpu.memory_space<vmem>>, %arg6: memref<1x4736xf32, #tpu.memory_space<vmem>>, %arg7: memref<128x8xf32, #tpu.memory_space<vmem>>, %arg8: memref<8x128xf32, #tpu.memory_space<vmem>>, %arg9: memref<104x8xf32, #tpu.memory_space<vmem>>, %arg10: memref<8x104xf32, #tpu.memory_space<vmem>>, %arg11: memref<104x8xf32, #tpu.memory_space<vmem>>, %arg12: memref<8x128xf32, #tpu.memory_space<vmem>>) attributes {dimension_semantics = [], scalar_prefetch = 0 : i64, scratch_operands = 0 : i64, tpu.core_type = #tpu.core_type<tc>} {
    %c0 = arith.constant 0 : index
    %c0_0 = arith.constant 0 : index
    %0 = vector.load %arg0[%c0, %c0_0] : memref<8x16xf32, #tpu.memory_space<vmem>>, vector<8x16xf32>
    %c0_1 = arith.constant 0 : index
    %c0_2 = arith.constant 0 : index
    %1 = vector.load %arg3[%c0_1, %c0_2] : memref<1568x256xbf16, #tpu.memory_space<vmem>>, vector<16x256xbf16>
    %2 = arith.truncf %0 : vector<8x16xf32> to vector<8x16xbf16>
    %cst = arith.constant dense<0.000000e+00> : vector<8x256xf32>
    %3 = tpu.matmul %2, %1, %cst {dimension_numbers = #tpu.dot_dimension_numbers<[1], [0], [0], [1], [0, 0, 1, 1], [], []>} : vector<8x16xbf16>, vector<16x256xbf16>, vector<8x256xf32> -> vector<8x256xf32>
    %c0_3 = arith.constant 0 : index
    %c0_4 = arith.constant 0 : index
    %4 = vector.load %arg6[%c0_3, %c0_4] : memref<1x4736xf32, #tpu.memory_space<vmem>>, vector<1x256xf32>
    %5 = vector.broadcast %4 : vector<1x256xf32> to vector<8x256xf32>
    %6 = arith.addf %3, %5 : vector<8x256xf32>
    %cst_5 = arith.constant 0.000000e+00 : f32
    %7 = vector.broadcast %cst_5 : f32 to vector<8x256xf32>
    %8 = arith.maximumf %6, %7 : vector<8x256xf32>
    %c16 = arith.constant 16 : index
    %c0_6 = arith.constant 0 : index
    %9 = vector.load %arg3[%c16, %c0_6] : memref<1568x256xbf16, #tpu.memory_space<vmem>>, vector<256x256xbf16>
    %10 = arith.truncf %8 : vector<8x256xf32> to vector<8x256xbf16>
    %cst_7 = arith.constant dense<0.000000e+00> : vector<8x256xf32>
    %11 = tpu.matmul %10, %9, %cst_7 {dimension_numbers = #tpu.dot_dimension_numbers<[1], [0], [0], [1], [0, 0, 1, 1], [], []>} : vector<8x256xbf16>, vector<256x256xbf16>, vector<8x256xf32> -> vector<8x256xf32>
    %c0_8 = arith.constant 0 : index
    %c256 = arith.constant 256 : index
    %12 = vector.load %arg6[%c0_8, %c256] : memref<1x4736xf32, #tpu.memory_space<vmem>>, vector<1x256xf32>
    %13 = vector.broadcast %12 : vector<1x256xf32> to vector<8x256xf32>
    %14 = arith.addf %11, %13 : vector<8x256xf32>
    %c0_9 = arith.constant 0 : index
    %c0_10 = arith.constant 0 : index
    %15 = vector.load %arg1[%c0_9, %c0_10] : memref<104x16xf32, #tpu.memory_space<vmem>>, vector<104x16xf32>
    %c272 = arith.constant 272 : index
    %c0_11 = arith.constant 0 : index
    %16 = vector.load %arg3[%c272, %c0_11] : memref<1568x256xbf16, #tpu.memory_space<vmem>>, vector<16x256xbf16>
    %17 = arith.truncf %15 : vector<104x16xf32> to vector<104x16xbf16>
    %cst_12 = arith.constant dense<0.000000e+00> : vector<104x256xf32>
    %18 = tpu.matmul %17, %16, %cst_12 {dimension_numbers = #tpu.dot_dimension_numbers<[1], [0], [0], [1], [0, 0, 1, 1], [], []>} : vector<104x16xbf16>, vector<16x256xbf16>, vector<104x256xf32> -> vector<104x256xf32>
    %c0_13 = arith.constant 0 : index
    %c640 = arith.constant 640 : index
    %19 = vector.load %arg6[%c0_13, %c640] : memref<1x4736xf32, #tpu.memory_space<vmem>>, vector<1x256xf32>
    %20 = vector.broadcast %19 : vector<1x256xf32> to vector<104x256xf32>
    %21 = arith.addf %18, %20 : vector<104x256xf32>
    %22 = vector.extract_strided_slice %21 {offsets = [0, 0], sizes = [104, 128], strides = [1, 1]} : vector<104x256xf32> to vector<104x128xf32>
    %23 = vector.extract_strided_slice %21 {offsets = [0, 128], sizes = [104, 128], strides = [1, 1]} : vector<104x256xf32> to vector<104x128xf32>
    %c0_14 = arith.constant 0 : index
    %c0_15 = arith.constant 0 : index
    %24 = vector.load %arg4[%c0_14, %c0_15] : memref<1024x128xbf16, #tpu.memory_space<vmem>>, vector<256x128xbf16>
    %25 = arith.truncf %14 : vector<8x256xf32> to vector<8x256xbf16>
    %cst_16 = arith.constant dense<0.000000e+00> : vector<8x128xf32>
    %26 = tpu.matmul %25, %24, %cst_16 {dimension_numbers = #tpu.dot_dimension_numbers<[1], [0], [0], [1], [0, 0, 1, 1], [], []>} : vector<8x256xbf16>, vector<256x128xbf16>, vector<8x128xf32> -> vector<8x128xf32>
    %c0_17 = arith.constant 0 : index
    %c512 = arith.constant 512 : index
    %27 = vector.load %arg6[%c0_17, %c512] : memref<1x4736xf32, #tpu.memory_space<vmem>>, vector<1x128xf32>
    %28 = vector.broadcast %27 : vector<1x128xf32> to vector<8x128xf32>
    %29 = arith.addf %26, %28 : vector<8x128xf32>
    %c0_18 = arith.constant 0 : index
    %c0_19 = arith.constant 0 : index
    %30 = vector.load %arg9[%c0_18, %c0_19] : memref<104x8xf32, #tpu.memory_space<vmem>>, vector<104x8xf32>
    %c0_20 = arith.constant 0 : index
    %c0_21 = arith.constant 0 : index
    %31 = vector.load %arg10[%c0_20, %c0_21] : memref<8x104xf32, #tpu.memory_space<vmem>>, vector<8x104xf32>
    %c0_22 = arith.constant 0 : index
    %c0_23 = arith.constant 0 : index
    %32 = vector.load %arg11[%c0_22, %c0_23] : memref<104x8xf32, #tpu.memory_space<vmem>>, vector<104x8xf32>
    %c0_24 = arith.constant 0 : index
    %c0_25 = arith.constant 0 : index
    %33 = vector.load %arg7[%c0_24, %c0_25] : memref<128x8xf32, #tpu.memory_space<vmem>>, vector<128x8xf32>
    %c0_26 = arith.constant 0 : index
    %c0_27 = arith.constant 0 : index
    %34 = vector.load %arg8[%c0_26, %c0_27] : memref<8x128xf32, #tpu.memory_space<vmem>>, vector<8x128xf32>
    %cst_28 = arith.constant dense<0.000000e+00> : vector<104x128xf32>
    %35 = tpu.matmul %30, %29, %cst_28 {dimension_numbers = #tpu.dot_dimension_numbers<[1], [0], [0], [1], [0, 0, 1, 1], [], []>} : vector<104x8xf32>, vector<8x128xf32>, vector<104x128xf32> -> vector<104x128xf32>
    %cst_29 = arith.constant 0.176776692 : f32
    %36 = vector.broadcast %cst_29 : f32 to vector<104x128xf32>
    %37 = arith.mulf %35, %36 : vector<104x128xf32>
    %38 = arith.mulf %22, %37 : vector<104x128xf32>
    %cst_30 = arith.constant dense<0.000000e+00> : vector<104x8xf32>
    %39 = tpu.matmul %38, %33, %cst_30 {dimension_numbers = #tpu.dot_dimension_numbers<[1], [0], [0], [1], [0, 0, 1, 1], [], []>} : vector<104x128xf32>, vector<128x8xf32>, vector<104x8xf32> -> vector<104x8xf32>
    %40 = tpu.iota {dimensions = array<i32: 0>} : vector<104x8xi32>
    %cst_31 = arith.constant 0.000000e+00 : f32
    %41 = vector.broadcast %cst_31 : f32 to vector<104x8xf32>
    %c0_i32 = arith.constant 0 : i32
    %42 = vector.broadcast %c0_i32 : i32 to vector<104x8xi32>
    %43 = arith.cmpi sge, %40, %42 : vector<104x8xi32>
    %c50_i32 = arith.constant 50 : i32
    %44 = vector.broadcast %c50_i32 : i32 to vector<104x8xi32>
    %45 = arith.cmpi slt, %40, %44 : vector<104x8xi32>
    %46 = arith.andi %43, %45 : vector<104x8xi1>
    %cst_32 = arith.constant -1.000000e+30 : f32
    %47 = vector.broadcast %cst_32 : f32 to vector<104x8xf32>
    %48 = arith.select %46, %39, %47 : vector<104x8xi1>, vector<104x8xf32>
    %cst_33 = arith.constant dense<0xFF800000> : vector<8xf32>
    %49 = vector.multi_reduction <maximumf>, %48, %cst_33 [0] : vector<104x8xf32> to vector<8xf32>
    %50 = vector.shape_cast %49 : vector<8xf32> to vector<1x8xf32>
    %51 = vector.shape_cast %50 : vector<1x8xf32> to vector<1x8xf32>
    %52 = vector.broadcast %51 : vector<1x8xf32> to vector<104x8xf32>
    %53 = arith.select %46, %52, %41 : vector<104x8xi1>, vector<104x8xf32>
    %c50_i32_34 = arith.constant 50 : i32
    %54 = vector.broadcast %c50_i32_34 : i32 to vector<104x8xi32>
    %55 = arith.cmpi sge, %40, %54 : vector<104x8xi32>
    %c100_i32 = arith.constant 100 : i32
    %56 = vector.broadcast %c100_i32 : i32 to vector<104x8xi32>
    %57 = arith.cmpi slt, %40, %56 : vector<104x8xi32>
    %58 = arith.andi %55, %57 : vector<104x8xi1>
    %cst_35 = arith.constant -1.000000e+30 : f32
    %59 = vector.broadcast %cst_35 : f32 to vector<104x8xf32>
    %60 = arith.select %58, %39, %59 : vector<104x8xi1>, vector<104x8xf32>
    %cst_36 = arith.constant dense<0xFF800000> : vector<8xf32>
    %61 = vector.multi_reduction <maximumf>, %60, %cst_36 [0] : vector<104x8xf32> to vector<8xf32>
    %62 = vector.shape_cast %61 : vector<8xf32> to vector<1x8xf32>
    %63 = vector.shape_cast %62 : vector<1x8xf32> to vector<1x8xf32>
    %64 = vector.broadcast %63 : vector<1x8xf32> to vector<104x8xf32>
    %65 = arith.select %58, %64, %53 : vector<104x8xi1>, vector<104x8xf32>
    %66 = arith.subf %39, %65 : vector<104x8xf32>
    %67 = math.exp %66 : vector<104x8xf32>
    %68 = arith.mulf %67, %32 : vector<104x8xf32>
    %cst_37 = arith.constant dense<0.000000e+00> : vector<8x8xf32>
    %69 = tpu.matmul %31, %68, %cst_37 {dimension_numbers = #tpu.dot_dimension_numbers<[1], [0], [0], [1], [0, 0, 1, 1], [], []>} : vector<8x104xf32>, vector<104x8xf32>, vector<8x8xf32> -> vector<8x8xf32>
    %cst_38 = arith.constant 0.000000e+00 : f32
    %70 = vector.broadcast %cst_38 : f32 to vector<8x8xf32>
    %71 = arith.cmpf ogt, %69, %70 : vector<8x8xf32>
    %cst_39 = arith.constant 1.000000e+00 : f32
    %72 = vector.broadcast %cst_39 : f32 to vector<8x8xf32>
    %73 = arith.select %71, %69, %72 : vector<8x8xi1>, vector<8x8xf32>
    %cst_40 = arith.constant dense<0.000000e+00> : vector<104x128xf32>
    %74 = tpu.matmul %68, %34, %cst_40 {dimension_numbers = #tpu.dot_dimension_numbers<[1], [0], [0], [1], [0, 0, 1, 1], [], []>} : vector<104x8xf32>, vector<8x128xf32>, vector<104x128xf32> -> vector<104x128xf32>
    %75 = arith.mulf %74, %23 : vector<104x128xf32>
    %cst_41 = arith.constant dense<0.000000e+00> : vector<8x128xf32>
    %76 = tpu.matmul %31, %75, %cst_41 {dimension_numbers = #tpu.dot_dimension_numbers<[1], [0], [0], [1], [0, 0, 1, 1], [], []>} : vector<8x104xf32>, vector<104x128xf32>, vector<8x128xf32> -> vector<8x128xf32>
    %cst_42 = arith.constant dense<0.000000e+00> : vector<8x128xf32>
    %77 = tpu.matmul %73, %34, %cst_42 {dimension_numbers = #tpu.dot_dimension_numbers<[1], [0], [0], [1], [0, 0, 1, 1], [], []>} : vector<8x8xf32>, vector<8x128xf32>, vector<8x128xf32> -> vector<8x128xf32>
    %78 = tpu.reciprocal %77 {approx = true} : vector<8x128xf32> -> vector<8x128xf32>
    %79 = arith.mulf %76, %78 : vector<8x128xf32>
    %c288 = arith.constant 288 : index
    %c0_43 = arith.constant 0 : index
    %80 = vector.load %arg3[%c288, %c0_43] : memref<1568x256xbf16, #tpu.memory_space<vmem>>, vector<128x256xbf16>
    %81 = arith.truncf %79 : vector<8x128xf32> to vector<8x128xbf16>
    %cst_44 = arith.constant dense<0.000000e+00> : vector<8x256xf32>
    %82 = tpu.matmul %81, %80, %cst_44 {dimension_numbers = #tpu.dot_dimension_numbers<[1], [0], [0], [1], [0, 0, 1, 1], [], []>} : vector<8x128xbf16>, vector<128x256xbf16>, vector<8x256xf32> -> vector<8x256xf32>
    %c0_45 = arith.constant 0 : index
    %c896 = arith.constant 896 : index
    %83 = vector.load %arg6[%c0_45, %c896] : memref<1x4736xf32, #tpu.memory_space<vmem>>, vector<1x256xf32>
    %84 = vector.broadcast %83 : vector<1x256xf32> to vector<8x256xf32>
    %85 = arith.addf %82, %84 : vector<8x256xf32>
    %cst_46 = arith.constant dense<0.000000e+00> : vector<8xf32>
    %86 = vector.multi_reduction <add>, %85, %cst_46 [1] : vector<8x256xf32> to vector<8xf32>
    %87 = vector.shape_cast %86 : vector<8xf32> to vector<8x1xf32>
    %cst_47 = arith.constant 2.560000e+02 : f32
    %88 = vector.broadcast %cst_47 : f32 to vector<8x1xf32>
    %89 = arith.divf %87, %88 : vector<8x1xf32>
    %90 = arith.mulf %85, %85 : vector<8x256xf32>
    %cst_48 = arith.constant dense<0.000000e+00> : vector<8xf32>
    %91 = vector.multi_reduction <add>, %90, %cst_48 [1] : vector<8x256xf32> to vector<8xf32>
    %92 = vector.shape_cast %91 : vector<8xf32> to vector<8x1xf32>
    %cst_49 = arith.constant 2.560000e+02 : f32
    %93 = vector.broadcast %cst_49 : f32 to vector<8x1xf32>
    %94 = arith.divf %92, %93 : vector<8x1xf32>
    %95 = arith.mulf %89, %89 : vector<8x1xf32>
    %96 = arith.subf %94, %95 : vector<8x1xf32>
    %97 = vector.broadcast %89 : vector<8x1xf32> to vector<8x256xf32>
    %98 = arith.subf %85, %97 : vector<8x256xf32>
    %cst_50 = arith.constant 9.99999974E-6 : f32
    %99 = vector.broadcast %cst_50 : f32 to vector<8x1xf32>
    %100 = arith.addf %96, %99 : vector<8x1xf32>
    %101 = math.rsqrt %100 : vector<8x1xf32>
    %102 = vector.broadcast %101 : vector<8x1xf32> to vector<8x256xf32>
    %103 = arith.mulf %98, %102 : vector<8x256xf32>
    %c0_51 = arith.constant 0 : index
    %c1152 = arith.constant 1152 : index
    %104 = vector.load %arg6[%c0_51, %c1152] : memref<1x4736xf32, #tpu.memory_space<vmem>>, vector<1x256xf32>
    %105 = vector.broadcast %104 : vector<1x256xf32> to vector<8x256xf32>
    %106 = arith.mulf %103, %105 : vector<8x256xf32>
    %c0_52 = arith.constant 0 : index
    %c1408 = arith.constant 1408 : index
    %107 = vector.load %arg6[%c0_52, %c1408] : memref<1x4736xf32, #tpu.memory_space<vmem>>, vector<1x256xf32>
    %108 = vector.broadcast %107 : vector<1x256xf32> to vector<8x256xf32>
    %109 = arith.addf %106, %108 : vector<8x256xf32>
    %c0_53 = arith.constant 0 : index
    %c0_54 = arith.constant 0 : index
    %110 = vector.load %arg2[%c0_53, %c0_54] : memref<8x256xf32, #tpu.memory_space<vmem>>, vector<8x256xf32>
    %c256_55 = arith.constant 256 : index
    %c0_56 = arith.constant 0 : index
    %111 = vector.load %arg4[%c256_55, %c0_56] : memref<1024x128xbf16, #tpu.memory_space<vmem>>, vector<256x128xbf16>
    %112 = arith.truncf %110 : vector<8x256xf32> to vector<8x256xbf16>
    %cst_57 = arith.constant dense<0.000000e+00> : vector<8x128xf32>
    %113 = tpu.matmul %112, %111, %cst_57 {dimension_numbers = #tpu.dot_dimension_numbers<[1], [0], [0], [1], [0, 0, 1, 1], [], []>} : vector<8x256xbf16>, vector<256x128xbf16>, vector<8x128xf32> -> vector<8x128xf32>
    %c0_58 = arith.constant 0 : index
    %c1664 = arith.constant 1664 : index
    %114 = vector.load %arg6[%c0_58, %c1664] : memref<1x4736xf32, #tpu.memory_space<vmem>>, vector<1x128xf32>
    %115 = vector.broadcast %114 : vector<1x128xf32> to vector<8x128xf32>
    %116 = arith.addf %113, %115 : vector<8x128xf32>
    %cst_59 = arith.constant 0.000000e+00 : f32
    %117 = vector.broadcast %cst_59 : f32 to vector<8x128xf32>
    %118 = arith.maximumf %116, %117 : vector<8x128xf32>
    %c512_60 = arith.constant 512 : index
    %c0_61 = arith.constant 0 : index
    %119 = vector.load %arg4[%c512_60, %c0_61] : memref<1024x128xbf16, #tpu.memory_space<vmem>>, vector<128x128xbf16>
    %120 = arith.truncf %118 : vector<8x128xf32> to vector<8x128xbf16>
    %cst_62 = arith.constant dense<0.000000e+00> : vector<8x128xf32>
    %121 = tpu.matmul %120, %119, %cst_62 {dimension_numbers = #tpu.dot_dimension_numbers<[1], [0], [0], [1], [0, 0, 1, 1], [], []>} : vector<8x128xbf16>, vector<128x128xbf16>, vector<8x128xf32> -> vector<8x128xf32>
    %c0_63 = arith.constant 0 : index
    %c1792 = arith.constant 1792 : index
    %122 = vector.load %arg6[%c0_63, %c1792] : memref<1x4736xf32, #tpu.memory_space<vmem>>, vector<1x128xf32>
    %123 = vector.broadcast %122 : vector<1x128xf32> to vector<8x128xf32>
    %124 = arith.addf %121, %123 : vector<8x128xf32>
    %c416 = arith.constant 416 : index
    %c0_64 = arith.constant 0 : index
    %125 = vector.load %arg3[%c416, %c0_64] : memref<1568x256xbf16, #tpu.memory_space<vmem>>, vector<256x256xbf16>
    %126 = arith.truncf %14 : vector<8x256xf32> to vector<8x256xbf16>
    %cst_65 = arith.constant dense<0.000000e+00> : vector<8x256xf32>
    %127 = tpu.matmul %126, %125, %cst_65 {dimension_numbers = #tpu.dot_dimension_numbers<[1], [0], [0], [1], [0, 0, 1, 1], [], []>} : vector<8x256xbf16>, vector<256x256xbf16>, vector<8x256xf32> -> vector<8x256xf32>
    %c672 = arith.constant 672 : index
    %c0_66 = arith.constant 0 : index
    %128 = vector.load %arg3[%c672, %c0_66] : memref<1568x256xbf16, #tpu.memory_space<vmem>>, vector<256x256xbf16>
    %129 = arith.truncf %109 : vector<8x256xf32> to vector<8x256xbf16>
    %cst_67 = arith.constant dense<0.000000e+00> : vector<8x256xf32>
    %130 = tpu.matmul %129, %128, %cst_67 {dimension_numbers = #tpu.dot_dimension_numbers<[1], [0], [0], [1], [0, 0, 1, 1], [], []>} : vector<8x256xbf16>, vector<256x256xbf16>, vector<8x256xf32> -> vector<8x256xf32>
    %131 = arith.addf %127, %130 : vector<8x256xf32>
    %c928 = arith.constant 928 : index
    %c0_68 = arith.constant 0 : index
    %132 = vector.load %arg3[%c928, %c0_68] : memref<1568x256xbf16, #tpu.memory_space<vmem>>, vector<128x256xbf16>
    %133 = arith.truncf %124 : vector<8x128xf32> to vector<8x128xbf16>
    %cst_69 = arith.constant dense<0.000000e+00> : vector<8x256xf32>
    %134 = tpu.matmul %133, %132, %cst_69 {dimension_numbers = #tpu.dot_dimension_numbers<[1], [0], [0], [1], [0, 0, 1, 1], [], []>} : vector<8x128xbf16>, vector<128x256xbf16>, vector<8x256xf32> -> vector<8x256xf32>
    %135 = arith.addf %131, %134 : vector<8x256xf32>
    %c0_70 = arith.constant 0 : index
    %c1920 = arith.constant 1920 : index
    %136 = vector.load %arg6[%c0_70, %c1920] : memref<1x4736xf32, #tpu.memory_space<vmem>>, vector<1x256xf32>
    %137 = vector.broadcast %136 : vector<1x256xf32> to vector<8x256xf32>
    %138 = arith.addf %135, %137 : vector<8x256xf32>
    %cst_71 = arith.constant 0.000000e+00 : f32
    %139 = vector.broadcast %cst_71 : f32 to vector<8x256xf32>
    %140 = arith.maximumf %138, %139 : vector<8x256xf32>
    %cst_72 = arith.constant dense<0.000000e+00> : vector<8xf32>
    %141 = vector.multi_reduction <add>, %140, %cst_72 [1] : vector<8x256xf32> to vector<8xf32>
    %142 = vector.shape_cast %141 : vector<8xf32> to vector<8x1xf32>
    %cst_73 = arith.constant 2.560000e+02 : f32
    %143 = vector.broadcast %cst_73 : f32 to vector<8x1xf32>
    %144 = arith.divf %142, %143 : vector<8x1xf32>
    %145 = arith.mulf %140, %140 : vector<8x256xf32>
    %cst_74 = arith.constant dense<0.000000e+00> : vector<8xf32>
    %146 = vector.multi_reduction <add>, %145, %cst_74 [1] : vector<8x256xf32> to vector<8xf32>
    %147 = vector.shape_cast %146 : vector<8xf32> to vector<8x1xf32>
    %cst_75 = arith.constant 2.560000e+02 : f32
    %148 = vector.broadcast %cst_75 : f32 to vector<8x1xf32>
    %149 = arith.divf %147, %148 : vector<8x1xf32>
    %150 = arith.mulf %144, %144 : vector<8x1xf32>
    %151 = arith.subf %149, %150 : vector<8x1xf32>
    %152 = vector.broadcast %144 : vector<8x1xf32> to vector<8x256xf32>
    %153 = arith.subf %140, %152 : vector<8x256xf32>
    %cst_76 = arith.constant 9.99999974E-6 : f32
    %154 = vector.broadcast %cst_76 : f32 to vector<8x1xf32>
    %155 = arith.addf %151, %154 : vector<8x1xf32>
    %156 = math.rsqrt %155 : vector<8x1xf32>
    %157 = vector.broadcast %156 : vector<8x1xf32> to vector<8x256xf32>
    %158 = arith.mulf %153, %157 : vector<8x256xf32>
    %c0_77 = arith.constant 0 : index
    %c2176 = arith.constant 2176 : index
    %159 = vector.load %arg6[%c0_77, %c2176] : memref<1x4736xf32, #tpu.memory_space<vmem>>, vector<1x256xf32>
    %160 = vector.broadcast %159 : vector<1x256xf32> to vector<8x256xf32>
    %161 = arith.mulf %158, %160 : vector<8x256xf32>
    %c0_78 = arith.constant 0 : index
    %c2432 = arith.constant 2432 : index
    %162 = vector.load %arg6[%c0_78, %c2432] : memref<1x4736xf32, #tpu.memory_space<vmem>>, vector<1x256xf32>
    %163 = vector.broadcast %162 : vector<1x256xf32> to vector<8x256xf32>
    %164 = arith.addf %161, %163 : vector<8x256xf32>
    %c1056 = arith.constant 1056 : index
    %c0_79 = arith.constant 0 : index
    %165 = vector.load %arg3[%c1056, %c0_79] : memref<1568x256xbf16, #tpu.memory_space<vmem>>, vector<256x256xbf16>
    %166 = arith.truncf %164 : vector<8x256xf32> to vector<8x256xbf16>
    %cst_80 = arith.constant dense<0.000000e+00> : vector<8x256xf32>
    %167 = tpu.matmul %166, %165, %cst_80 {dimension_numbers = #tpu.dot_dimension_numbers<[1], [0], [0], [1], [0, 0, 1, 1], [], []>} : vector<8x256xbf16>, vector<256x256xbf16>, vector<8x256xf32> -> vector<8x256xf32>
    %c0_81 = arith.constant 0 : index
    %c2688 = arith.constant 2688 : index
    %168 = vector.load %arg6[%c0_81, %c2688] : memref<1x4736xf32, #tpu.memory_space<vmem>>, vector<1x256xf32>
    %169 = vector.broadcast %168 : vector<1x256xf32> to vector<8x256xf32>
    %170 = arith.addf %167, %169 : vector<8x256xf32>
    %cst_82 = arith.constant 0.000000e+00 : f32
    %171 = vector.broadcast %cst_82 : f32 to vector<8x256xf32>
    %172 = arith.maximumf %170, %171 : vector<8x256xf32>
    %cst_83 = arith.constant dense<0.000000e+00> : vector<8xf32>
    %173 = vector.multi_reduction <add>, %172, %cst_83 [1] : vector<8x256xf32> to vector<8xf32>
    %174 = vector.shape_cast %173 : vector<8xf32> to vector<8x1xf32>
    %cst_84 = arith.constant 2.560000e+02 : f32
    %175 = vector.broadcast %cst_84 : f32 to vector<8x1xf32>
    %176 = arith.divf %174, %175 : vector<8x1xf32>
    %177 = arith.mulf %172, %172 : vector<8x256xf32>
    %cst_85 = arith.constant dense<0.000000e+00> : vector<8xf32>
    %178 = vector.multi_reduction <add>, %177, %cst_85 [1] : vector<8x256xf32> to vector<8xf32>
    %179 = vector.shape_cast %178 : vector<8xf32> to vector<8x1xf32>
    %cst_86 = arith.constant 2.560000e+02 : f32
    %180 = vector.broadcast %cst_86 : f32 to vector<8x1xf32>
    %181 = arith.divf %179, %180 : vector<8x1xf32>
    %182 = arith.mulf %176, %176 : vector<8x1xf32>
    %183 = arith.subf %181, %182 : vector<8x1xf32>
    %184 = vector.broadcast %176 : vector<8x1xf32> to vector<8x256xf32>
    %185 = arith.subf %172, %184 : vector<8x256xf32>
    %cst_87 = arith.constant 9.99999974E-6 : f32
    %186 = vector.broadcast %cst_87 : f32 to vector<8x1xf32>
    %187 = arith.addf %183, %186 : vector<8x1xf32>
    %188 = math.rsqrt %187 : vector<8x1xf32>
    %189 = vector.broadcast %188 : vector<8x1xf32> to vector<8x256xf32>
    %190 = arith.mulf %185, %189 : vector<8x256xf32>
    %c0_88 = arith.constant 0 : index
    %c2944 = arith.constant 2944 : index
    %191 = vector.load %arg6[%c0_88, %c2944] : memref<1x4736xf32, #tpu.memory_space<vmem>>, vector<1x256xf32>
    %192 = vector.broadcast %191 : vector<1x256xf32> to vector<8x256xf32>
    %193 = arith.mulf %190, %192 : vector<8x256xf32>
    %c0_89 = arith.constant 0 : index
    %c3200 = arith.constant 3200 : index
    %194 = vector.load %arg6[%c0_89, %c3200] : memref<1x4736xf32, #tpu.memory_space<vmem>>, vector<1x256xf32>
    %195 = vector.broadcast %194 : vector<1x256xf32> to vector<8x256xf32>
    %196 = arith.addf %193, %195 : vector<8x256xf32>
    %c1312 = arith.constant 1312 : index
    %c0_90 = arith.constant 0 : index
    %197 = vector.load %arg3[%c1312, %c0_90] : memref<1568x256xbf16, #tpu.memory_space<vmem>>, vector<256x256xbf16>
    %198 = arith.truncf %196 : vector<8x256xf32> to vector<8x256xbf16>
    %cst_91 = arith.constant dense<0.000000e+00> : vector<8x256xf32>
    %199 = tpu.matmul %198, %197, %cst_91 {dimension_numbers = #tpu.dot_dimension_numbers<[1], [0], [0], [1], [0, 0, 1, 1], [], []>} : vector<8x256xbf16>, vector<256x256xbf16>, vector<8x256xf32> -> vector<8x256xf32>
    %c0_92 = arith.constant 0 : index
    %c3456 = arith.constant 3456 : index
    %200 = vector.load %arg6[%c0_92, %c3456] : memref<1x4736xf32, #tpu.memory_space<vmem>>, vector<1x256xf32>
    %201 = vector.broadcast %200 : vector<1x256xf32> to vector<8x256xf32>
    %202 = arith.addf %199, %201 : vector<8x256xf32>
    %cst_93 = arith.constant 0.000000e+00 : f32
    %203 = vector.broadcast %cst_93 : f32 to vector<8x256xf32>
    %204 = arith.maximumf %202, %203 : vector<8x256xf32>
    %cst_94 = arith.constant dense<0.000000e+00> : vector<8xf32>
    %205 = vector.multi_reduction <add>, %204, %cst_94 [1] : vector<8x256xf32> to vector<8xf32>
    %206 = vector.shape_cast %205 : vector<8xf32> to vector<8x1xf32>
    %cst_95 = arith.constant 2.560000e+02 : f32
    %207 = vector.broadcast %cst_95 : f32 to vector<8x1xf32>
    %208 = arith.divf %206, %207 : vector<8x1xf32>
    %209 = arith.mulf %204, %204 : vector<8x256xf32>
    %cst_96 = arith.constant dense<0.000000e+00> : vector<8xf32>
    %210 = vector.multi_reduction <add>, %209, %cst_96 [1] : vector<8x256xf32> to vector<8xf32>
    %211 = vector.shape_cast %210 : vector<8xf32> to vector<8x1xf32>
    %cst_97 = arith.constant 2.560000e+02 : f32
    %212 = vector.broadcast %cst_97 : f32 to vector<8x1xf32>
    %213 = arith.divf %211, %212 : vector<8x1xf32>
    %214 = arith.mulf %208, %208 : vector<8x1xf32>
    %215 = arith.subf %213, %214 : vector<8x1xf32>
    %216 = vector.broadcast %208 : vector<8x1xf32> to vector<8x256xf32>
    %217 = arith.subf %204, %216 : vector<8x256xf32>
    %cst_98 = arith.constant 9.99999974E-6 : f32
    %218 = vector.broadcast %cst_98 : f32 to vector<8x1xf32>
    %219 = arith.addf %215, %218 : vector<8x1xf32>
    %220 = math.rsqrt %219 : vector<8x1xf32>
    %221 = vector.broadcast %220 : vector<8x1xf32> to vector<8x256xf32>
    %222 = arith.mulf %217, %221 : vector<8x256xf32>
    %c0_99 = arith.constant 0 : index
    %c3712 = arith.constant 3712 : index
    %223 = vector.load %arg6[%c0_99, %c3712] : memref<1x4736xf32, #tpu.memory_space<vmem>>, vector<1x256xf32>
    %224 = vector.broadcast %223 : vector<1x256xf32> to vector<8x256xf32>
    %225 = arith.mulf %222, %224 : vector<8x256xf32>
    %c0_100 = arith.constant 0 : index
    %c3968 = arith.constant 3968 : index
    %226 = vector.load %arg6[%c0_100, %c3968] : memref<1x4736xf32, #tpu.memory_space<vmem>>, vector<1x256xf32>
    %227 = vector.broadcast %226 : vector<1x256xf32> to vector<8x256xf32>
    %228 = arith.addf %225, %227 : vector<8x256xf32>
    %c0_101 = arith.constant 0 : index
    %c0_102 = arith.constant 0 : index
    %229 = vector.load %arg5[%c0_101, %c0_102] : memref<256x384xbf16, #tpu.memory_space<vmem>>, vector<256x384xbf16>
    %230 = arith.truncf %228 : vector<8x256xf32> to vector<8x256xbf16>
    %cst_103 = arith.constant dense<0.000000e+00> : vector<8x384xf32>
    %231 = tpu.matmul %230, %229, %cst_103 {dimension_numbers = #tpu.dot_dimension_numbers<[1], [0], [0], [1], [0, 0, 1, 1], [], []>} : vector<8x256xbf16>, vector<256x384xbf16>, vector<8x384xf32> -> vector<8x384xf32>
    %c0_104 = arith.constant 0 : index
    %c4224 = arith.constant 4224 : index
    %232 = vector.load %arg6[%c0_104, %c4224] : memref<1x4736xf32, #tpu.memory_space<vmem>>, vector<1x384xf32>
    %233 = vector.broadcast %232 : vector<1x384xf32> to vector<8x384xf32>
    %234 = arith.addf %231, %233 : vector<8x384xf32>
    %cst_105 = arith.constant 0.000000e+00 : f32
    %235 = vector.broadcast %cst_105 : f32 to vector<8x384xf32>
    %236 = arith.maximumf %234, %235 : vector<8x384xf32>
    %c640_106 = arith.constant 640 : index
    %c0_107 = arith.constant 0 : index
    %237 = vector.load %arg4[%c640_106, %c0_107] : memref<1024x128xbf16, #tpu.memory_space<vmem>>, vector<384x128xbf16>
    %238 = arith.truncf %236 : vector<8x384xf32> to vector<8x384xbf16>
    %cst_108 = arith.constant dense<0.000000e+00> : vector<8x128xf32>
    %239 = tpu.matmul %238, %237, %cst_108 {dimension_numbers = #tpu.dot_dimension_numbers<[1], [0], [0], [1], [0, 0, 1, 1], [], []>} : vector<8x384xbf16>, vector<384x128xbf16>, vector<8x128xf32> -> vector<8x128xf32>
    %c0_109 = arith.constant 0 : index
    %c4608 = arith.constant 4608 : index
    %240 = vector.load %arg6[%c0_109, %c4608] : memref<1x4736xf32, #tpu.memory_space<vmem>>, vector<1x128xf32>
    %241 = vector.broadcast %240 : vector<1x128xf32> to vector<8x128xf32>
    %242 = arith.addf %239, %241 : vector<8x128xf32>
    %243 = tpu.iota {dimensions = array<i32: 1>} : vector<8x128xi32>
    %c2_i32 = arith.constant 2 : i32
    %244 = vector.broadcast %c2_i32 : i32 to vector<8x128xi32>
    %245 = arith.cmpi slt, %243, %244 : vector<8x128xi32>
    %246 = math.tanh %242 : vector<8x128xf32>
    %247 = arith.select %245, %246, %242 : vector<8x128xi1>, vector<8x128xf32>
    %c0_110 = arith.constant 0 : index
    %c0_111 = arith.constant 0 : index
    %248 = vector.load %arg12[%c0_110, %c0_111] : memref<8x128xf32, #tpu.memory_space<vmem>>, vector<8x128xf32>
    tpu.vector_store %arg12[%c0_110, %c0_111], %247 {strides = array<i32>} : memref<8x128xf32, #tpu.memory_space<vmem>>, vector<8x128xf32>,
    return
  }
}

</mosaic_0001>

<bundles_post_ra>
// kernel: blackholio_forward.1
= control target key start
LH: loop header
LB: loop body
LE: loop exit
PB: predicated region body
PF: predicated region fallthrough
CT: control target
= control target key end

     0   :  { %17 = vsyncpa [#allocation3], 0  ;;  %s6710_s0 = inlined_call_operand.vmem [shape: f32[8,16], index: 0, kind: input, shape index: {}]   ;;  %s6711_s1 = inlined_call_operand.vmem [shape: f32[104,16], index: 1, kind: input, shape index: {}]   ;;  %s6712_s2 = inlined_call_operand.vmem [shape: f32[8,256], index: 2, kind: input, shape index: {}]   ;;  %s6713_s3 = inlined_call_operand.hbm [shape: bf16[1568,256], index: 3, kind: input, shape index: {}]   ;;  %s6714_s4 = inlined_call_operand.vmem [shape: bf16[1024,128], index: 4, kind: input, shape index: {}]   ;;  %s6715_s5 = inlined_call_operand.hbm [shape: bf16[256,384], index: 5, kind: input, shape index: {}]   ;;  %s6716_s6 = inlined_call_operand.hbm [shape: f32[1,4736], index: 6, kind: input, shape index: {}]   ;;  %s6717_s7 = inlined_call_operand.vmem [shape: f32[128,8], index: 7, kind: input, shape index: {}]   ;;  %s6718_s8 = inlined_call_operand.hbm [shape: f32[8,128], index: 8, kind: input, shape index: {}]   ;;  %s6719_s9 = inlined_call_operand.hbm [shape: f32[104,8], index: 9, kind: input, shape index: {}]   ;;  %s6720_s10 = inlined_call_operand.vmem [shape: f32[8,104], index: 10, kind: input, shape index: {}]   ;;  %s6721_s11 = inlined_call_operand.hbm [shape: f32[104,8], index: 11, kind: input, shape index: {}]   ;;  %s6722_s12 = inlined_call_operand.vmem [shape: f32[8,128], index: 12, kind: output, shape index: {}]  }
   0x1   :  { %18 = vsyncpa [#allocation5], 0 }
   0x2   :  { %19 = vsyncpa [#allocation8], 0 }
   0x3   :  { %20 = vsyncpa [#allocation11], 0  ;;  %s5757_s21 = smov [#allocation4]   ;;  %s5617_s25 = scalar_lea.hbm %s6715_s5, 6144 }
   0x4   :  { %s46_s22 = sshll.u32 %s5757_s21, 4  ;;  %p5618_p0 = scmp.ne.s32.totalorder %s6715_s5, %s5617_s25  ;;  %s47_s22 = int_to_ptr.vmem [resolvable:$true] %s46_s22 }
   0x5   :  { %p5621_p1 = scmp.lt.u32.totalorder %s5617_s25, %s6715_s5 }
   0x7   :  { %p5623_p2 = pnand %p5621_p1, %p5618_p0 }
   0x9   :  { %5626 = shalt.err (!%p5623_p2)
}
   0xa   :  { %s5627_s30 = scalar_lea.vmem %s47_s22, 6144  ;;  %p5632_p4 = scmp.lt.s32.totalorder %s47_s22, %s47_s22 }
   0xb   :  { %p5628_p3 = scmp.ne.s32.totalorder %s47_s22, %s5627_s30  ;;  %p5633_p5 = scmp.lt.s32.totalorder %s5627_s30, %s5627_s30 }
   0xd   :  { %p5634_p6 = por %p5633_p5, %p5632_p4 }
   0xf   :  { %p5635_p7 = pnand %p5634_p6, %p5628_p3 }
  0x11   :  { %5638 = shalt.err (!%p5635_p7)
}
  0x12   :  { %s5758_s13 = smov 192   ;;  %s5759_s14 = smov 12  }
  0x13   :  { %52 = dma.hbm_to_vmem [thread:$0]  %s6715_s5, 6144, %s47_s22, [#allocation5], %s5758_s13, %s5758_s13, %s5759_s14  }
  0x14   :  { %s5760_s17 = smov [#allocation7]   ;;  %s5761_s19 = smov [#allocation2]  }
  0x15   :  { %s71_s18 = sshll.u32 %s5760_s17, 4  ;;  %s32_s20 = sshll.u32 %s5761_s19, 4  ;;  %s72_s18 = int_to_ptr.vmem [resolvable:$true] %s71_s18  ;;  %s33_s20 = int_to_ptr.vmem [resolvable:$true] %s32_s20 }
  0x16   :  { %s5639_s24 = scalar_lea.hbm %s6718_s8, 128 }
  0x17   :  { %p5640_p8 = scmp.ne.s32.totalorder %s6718_s8, %s5639_s24  ;;  %p5643_p9 = scmp.lt.u32.totalorder %s5639_s24, %s6718_s8 }
  0x19   :  { %p5645_p10 = pnand %p5643_p9, %p5640_p8 }
  0x1b   :  { %5648 = shalt.err (!%p5645_p10)
}
  0x1c   :  { %s5649_s5 = scalar_lea.vmem %s72_s18, 128  ;;  %p5654_p12 = scmp.lt.s32.totalorder %s72_s18, %s72_s18 }
  0x1d   :  { %p5650_p11 = scmp.ne.s32.totalorder %s72_s18, %s5649_s5  ;;  %p5655_p13 = scmp.lt.s32.totalorder %s5649_s5, %s5649_s5 }
  0x1f   :  { %p5656_p0 = por %p5655_p13, %p5654_p12 }
  0x21   :  { %p5657_p1 = pnand %p5656_p0, %p5650_p11 }
  0x23   :  { %5660 = shalt.err (!%p5657_p1)
}
  0x24   :  { %74 = dma.hbm_to_vmem [thread:$0]  %s6718_s8, 128, %s72_s18, [#allocation8]  }
  0x25   :  { %s5661_s14 = scalar_lea.hbm %s6713_s3, 25088 }
  0x26   :  { %p5662_p2 = scmp.ne.s32.totalorder %s6713_s3, %s5661_s14  ;;  %p5665_p3 = scmp.lt.u32.totalorder %s5661_s14, %s6713_s3 }
  0x28   :  { %p5667_p4 = pnand %p5665_p3, %p5662_p2 }
  0x2a   :  { %5670 = shalt.err (!%p5667_p4)
}
  0x2b   :  { %s5671_s21 = scalar_lea.vmem %s33_s20, 25088  ;;  %p5676_p6 = scmp.lt.s32.totalorder %s33_s20, %s33_s20 }
  0x2c   :  { %p5672_p5 = scmp.ne.s32.totalorder %s33_s20, %s5671_s21  ;;  %p5677_p7 = scmp.lt.s32.totalorder %s5671_s21, %s5671_s21 }
  0x2e   :  { %p5678_p8 = por %p5677_p7, %p5676_p6 }
  0x30   :  { %p5679_p9 = pnand %p5678_p8, %p5672_p5 }
  0x32   :  { %5682 = shalt.err (!%p5679_p9)
}
  0x33   :  { %s5762_s8 = smov 128   ;;  %s5763_s18 = smov 8  }
  0x34   :  { %38 = dma.hbm_to_vmem [thread:$0]  %s6713_s3, 25088, %s33_s20, [#allocation3], %s5762_s8, %s5762_s8, %s5763_s18  }
  0x35   :  { %s5764_s25 = smov [#allocation6]   ;;  %s5765_s27 = smov [#allocation9]  }
  0x36   :  { %s59_s26 = sshll.u32 %s5764_s25, 4  ;;  %s80_s28 = sshll.u32 %s5765_s27, 4  ;;  %s60_s26 = int_to_ptr.vmem [resolvable:$true] %s59_s26  ;;  %s81_s28 = int_to_ptr.vmem [resolvable:$true] %s80_s28 }
  0x37   :  { %s5683_s29 = scalar_lea.hbm %s6716_s6, 592 }
  0x38   :  { %p5684_p10 = scmp.ne.s32.totalorder %s6716_s6, %s5683_s29  ;;  %p5687_p11 = scmp.lt.u32.totalorder %s5683_s29, %s6716_s6 }
  0x3a   :  { %p5689_p12 = pnand %p5687_p11, %p5684_p10 }
  0x3c   :  { %5692 = shalt.err (!%p5689_p12)
}
  0x3d   :  { %s5693_s3 = scalar_lea.vmem %s60_s26, 592  ;;  %s5697_s20 = scalar_lea.vmem %s60_s26, 608 }
  0x3e   :  { %p5694_p13 = scmp.ne.s32.totalorder %s60_s26, %s5693_s3  ;;  %p5698_p0 = scmp.lt.s32.totalorder %s60_s26, %s60_s26 }
  0x3f   :  { %p5699_p1 = scmp.lt.s32.totalorder %s5697_s20, %s5693_s3 }
  0x41   :  { %p5700_p2 = por %p5699_p1, %p5698_p0 }
  0x43   :  { %p5701_p3 = pnand %p5700_p2, %p5694_p13 }
  0x45   :  { %5704 = shalt.err (!%p5701_p3)
}
  0x46   :  { %62 = dma.hbm_to_vmem [thread:$0]  %s6716_s6, 592, %s60_s26, [#allocation5]  }
  0x47   :  { %s5705_s23 = scalar_lea.hbm %s6719_s9, 1664 }
  0x48   :  { %p5706_p4 = scmp.ne.s32.totalorder %s6719_s9, %s5705_s23  ;;  %p5709_p5 = scmp.lt.u32.totalorder %s5705_s23, %s6719_s9 }
  0x4a   :  { %p5711_p6 = pnand %p5709_p5, %p5706_p4 }
  0x4c   :  { %5714 = shalt.err (!%p5711_p6)
}
  0x4d   :  { %s5715_s22 = scalar_lea.vmem %s81_s28, 1664  ;;  %p5720_p8 = scmp.lt.s32.totalorder %s81_s28, %s81_s28 }
  0x4e   :  { %p5716_p7 = scmp.ne.s32.totalorder %s81_s28, %s5715_s22  ;;  %p5721_p9 = scmp.lt.s32.totalorder %s5715_s22, %s5715_s22 }
  0x50   :  { %p5722_p10 = por %p5721_p9, %p5720_p8 }
  0x52   :  { %p5723_p11 = pnand %p5722_p10, %p5716_p7 }
  0x54   :  { %5726 = shalt.err (!%p5723_p11)
}
  0x55   :  { %86 = dma.hbm_to_vmem [thread:$0]  %s6719_s9, 1664, %s81_s28, [#allocation8], %s5762_s8, %s5762_s8, %s5763_s18  }
  0x56   :  { %s5766_s29 = smov [#allocation10]   ;;  %s5727_s15 = scalar_lea.hbm %s6721_s11, 1664 }
  0x57   :  { %s94_s30 = sshll.u32 %s5766_s29, 4  ;;  %p5728_p12 = scmp.ne.s32.totalorder %s6721_s11, %s5727_s15  ;;  %s95_s30 = int_to_ptr.vmem [resolvable:$true] %s94_s30 }
  0x58   :  { %p5731_p13 = scmp.lt.u32.totalorder %s5727_s15, %s6721_s11 }
  0x5a   :  { %p5733_p0 = pnand %p5731_p13, %p5728_p12 }
  0x5c   :  { %5736 = shalt.err (!%p5733_p0)
}
  0x5d   :  { %s5737_s19 = scalar_lea.vmem %s95_s30, 1664  ;;  %p5742_p2 = scmp.lt.s32.totalorder %s95_s30, %s95_s30 }
  0x5e   :  { %p5738_p1 = scmp.ne.s32.totalorder %s95_s30, %s5737_s19  ;;  %p5743_p3 = scmp.lt.s32.totalorder %s5737_s19, %s5737_s19 }
  0x60   :  { %p5744_p4 = por %p5743_p3, %p5742_p2 }
  0x62   :  { %p5745_p5 = pnand %p5744_p4, %p5738_p1 }
  0x64   :  { %5748 = shalt.err (!%p5745_p5)
}
  0x65   :  { %100 = dma.hbm_to_vmem [thread:$0]  %s6721_s11, 1664, %s95_s30, [#allocation11], %s5762_s8, %s5762_s8, %s5763_s18  }
  0x66   :  { %5749 = dma.done.wait [#allocation3], 25088  }
  0x67   :  { %5750 = vsyncadd [#allocation3], 4294942208 }
  0x68   :  { %5751 = dma.done.wait [#allocation5], 6736  }
  0x69   :  { %5752 = vsyncadd [#allocation5], 4294960560 }
  0x6a   :  { %5753 = dma.done.wait [#allocation8], 1792  }
  0x6b   :  { %5754 = vsyncadd [#allocation8], 4294965504 }
  0x6c   :  { %5755 = dma.done.wait [#allocation11], 1664  }
  0x6d   :  { %5756 = vsyncadd [#allocation11], 4294965632  ;;  %v5767_v0 = vmov 0   ;;  %v5157_v1 = vld [vmem:[#allocation2 + $0x4] ss:$8 sps:$4 sm:$0xff]   ;;  %vm146_vm0 = vcmask 130048  }
  0x6e   :  { %182 = vmatprep.mubr.bf16.mxu1 %v5767_v0  ;;  %537 = vmatprep.mubr.bf16.mxu0 %v5767_v0  ;;  %v5159_v2 = vld [vmem:[#allocation2] ss:$8 sps:$4 sm:$0xff]   ;;  %v5162_v5 = vld [vmem:[#allocation2 + $0x14] ss:$8 sps:$4 sm:$0xff]   ;;  %v5160_v6 = vld [vmem:[#allocation2 + $0x10] ss:$8 sps:$4 sm:$0xff]  }
  0x6f   :  { %v120_v3 = vld [vmem:[%s6710_s0] sm:$0xff]  ;;  %150 = vmatprep.subr.bf16.mxu1 %v5157_v1  ;;  %v5168_v9 = vld [vmem:[#allocation2 + $0x34] ss:$8 sps:$4 sm:$0xff]   ;;  %v5166_v10 = vld [vmem:[#allocation2 + $0x30] ss:$8 sps:$4 sm:$0xff]   ;;  %vm5769_vm1 = vmmov 0  }
  0x70   :  { %v123_v4 = vpack.c.bf16 %v120_v3, %v120_v3  ;;  %151 = vmatpush1.bf16.msra.mxu1 %v5159_v2  ;;  %v5165_v7 = vld [vmem:[#allocation2 + $0x24] ss:$8 sps:$4 sm:$0xff]   ;;  %v5163_v8 = vld [vmem:[#allocation2 + $0x20] ss:$8 sps:$4 sm:$0xff]   ;;  %v5174_v13 = vld [vmem:[#allocation2 + $0x54] ss:$8 sps:$4 sm:$0xff]  }
  0x71   :  { %399 = vmatprep.subr.bf16.mxu1 %v5162_v5  ;;  %v5171_v11 = vld [vmem:[#allocation2 + $0x44] ss:$8 sps:$4 sm:$0xff]   ;;  %v5169_v12 = vld [vmem:[#allocation2 + $0x40] ss:$8 sps:$4 sm:$0xff]   ;;  %v5172_v14 = vld [vmem:[#allocation2 + $0x50] ss:$8 sps:$4 sm:$0xff]  }
  0x72   :  { %v5177_v15 = vld [vmem:[#allocation2 + $0x64] ss:$8 sps:$4 sm:$0xff]   ;;  %v5175_v16 = vld [vmem:[#allocation2 + $0x60] ss:$8 sps:$4 sm:$0xff]   ;;  %v5180_v17 = vld [vmem:[#allocation2 + $0x74] ss:$8 sps:$4 sm:$0xff]  }
  0x73   :  { %4284 = vmatmul.mubr.msk.bf16.vlgmr.msra.gmra.mrb[0].mxu1 %vm146_vm0, %v123_v4  ;;  %v5178_v18 = vld [vmem:[#allocation2 + $0x70] ss:$8 sps:$4 sm:$0xff]   ;;  %v5183_v19 = vld [vmem:[#allocation2 + $0x84] ss:$8 sps:$4 sm:$0xff]   ;;  %v5181_v20 = vld [vmem:[#allocation2 + $0x80] ss:$8 sps:$4 sm:$0xff]  }
  0x74   :  { %400 = vmatpush1.bf16.msra.mxu1 %v5160_v6  ;;  %v5186_v21 = vld [vmem:[#allocation2 + $0x94] ss:$8 sps:$4 sm:$0xff]   ;;  %v5184_v22 = vld [vmem:[#allocation2 + $0x90] ss:$8 sps:$4 sm:$0xff]   ;;  %v5189_v23 = vld [vmem:[#allocation2 + $0xa4] ss:$8 sps:$4 sm:$0xff]  }
  0x75   :  { %401 = vmatprep.subr.bf16.mxu1 %v5165_v7  ;;  %v5187_v24 = vld [vmem:[#allocation2 + $0xa0] ss:$8 sps:$4 sm:$0xff]   ;;  %v5192_v25 = vld [vmem:[#allocation2 + $0xb4] ss:$8 sps:$4 sm:$0xff]   ;;  %v5190_v26 = vld [vmem:[#allocation2 + $0xb0] ss:$8 sps:$4 sm:$0xff]  }
  0x76   :  { %v5195_v27 = vld [vmem:[#allocation2 + $0xc4] ss:$8 sps:$4 sm:$0xff]   ;;  %v5193_v28 = vld [vmem:[#allocation2 + $0xc0] ss:$8 sps:$4 sm:$0xff]   ;;  %v5198_v29 = vld [vmem:[#allocation2 + $0xd4] ss:$8 sps:$4 sm:$0xff]  }
  0x77   :  { %v5196_v30 = vld [vmem:[#allocation2 + $0xd0] ss:$8 sps:$4 sm:$0xff]   ;;  %v5201_v31 = vld [vmem:[#allocation2 + $0xe4] ss:$8 sps:$4 sm:$0xff]   ;;  %v5199_v32 = vld [vmem:[#allocation2 + $0xe0] ss:$8 sps:$4 sm:$0xff]  }
  0x78   :  { %402 = vmatpush1.bf16.msra.mxu1 %v5163_v8  ;;  %v5204_v33 = vld [vmem:[#allocation2 + $0xf4] ss:$8 sps:$4 sm:$0xff]   ;;  %v5202_v34 = vld [vmem:[#allocation2 + $0xf0] ss:$8 sps:$4 sm:$0xff]   ;;  %v5207_v35 = vld [vmem:[#allocation2 + $0x104] ss:$8 sps:$4 sm:$0xff]  }
  0x79   :  { %403 = vmatprep.subr.bf16.mxu1 %v5168_v9  ;;  %v5205_v36 = vld [vmem:[#allocation2 + $0x100] ss:$8 sps:$4 sm:$0xff]   ;;  %v5208_v37 = vld [vmem:[#allocation2 + $0x114] ss:$8 sps:$4 sm:$0xff]   ;;  %v5210_v38 = vld [vmem:[#allocation2 + $0x110] ss:$8 sps:$4 sm:$0xff]   ;;  %v126_v9 = vlaneseq }
  0x7a   :  { %v440_v39 = vld [vmem:[%s6711_s1] sm:$0xff]  ;;  %v441_v40 = vld [vmem:[%s6711_s1 + $0x8] sm:$0xff]  ;;  %505 = vmatprep.subr.bf16.mxu0 %v5208_v37  ;;  %v442_v45 = vld [vmem:[%s6711_s1 + $0x10] sm:$0xff]  ;;  %vm827_vm2 = vcmask 64512   ;;  %vm1411_vm6 = vcmask 850944  }
  0x7b   :  { %v455_v41 = vpack.c.bf16 %v441_v40, %v440_v39  ;;  %v5211_v42 = vld [vmem:[%s6714_s4 + $0x40] sm:$0xff]   ;;  %506 = vmatpush1.bf16.msra.mxu0 %v5210_v38  ;;  %v5213_v44 = vld [vmem:[%s6714_s4 + $0x48] sm:$0xff]   ;;  %v443_v46 = vld [vmem:[%s6711_s1 + $0x18] sm:$0xff] }
  0x7c   :  { %404 = vmatpush1.bf16.msra.mxu1 %v5166_v10  ;;  %v5212_v43 = vld [vmem:[%s6714_s4] sm:$0xff]   ;;  %4631 = vmatprep.subr.bf16.mxu0 %v5211_v42  ;;  %v5214_v47 = vld [vmem:[%s6714_s4 + $0x8] sm:$0xff]   ;;  %v5215_v48 = vld [vmem:[%s6714_s4 + $0x50] sm:$0xff]   ;;  %v456_v50 = vpack.c.bf16 %v443_v46, %v442_v45  ;;  %v6016_v10 = vshrl.u32 %v126_v9, 7 }
  0x7d   :  { %405 = vmatprep.subr.bf16.mxu1 %v5171_v11  ;;  %v5216_v49 = vld [vmem:[%s6714_s4 + $0x10] sm:$0xff]   ;;  %v5217_v51 = vld [vmem:[%s6714_s4 + $0x58] sm:$0xff]   ;;  %v444_v52 = vld [vmem:[%s6711_s1 + $0x20] sm:$0xff] }
  0x7e   :  { %4319 = vmatmul.mubr.msk.bf16.vlgmr.msra.gmra.mrb[0].mxu0 %vm146_vm0, %v455_v41  ;;  %v445_v53 = vld [vmem:[%s6711_s1 + $0x28] sm:$0xff]  ;;  %v5218_v54 = vld [vmem:[%s6714_s4 + $0x18] sm:$0xff]   ;;  %v5219_v55 = vld [vmem:[%s6714_s4 + $0x60] sm:$0xff]   ;;  %v6019_v11 = vsub.s32 0, %v6016_v10 }
  0x7f   :  { %547 = vmatprep.mubr.bf16.mxu0 %v5767_v0  ;;  %4632 = vmatpush3.bf16.msra.mxu0 %v5212_v43  ;;  %v5220_v56 = vld [vmem:[%s6714_s4 + $0x20] sm:$0xff]   ;;  %v457_v57 = vpack.c.bf16 %v445_v53, %v444_v52  ;;  %v5221_v58 = vld [vmem:[%s6714_s4 + $0x68] sm:$0xff]   ;;  %v446_v59 = vld [vmem:[%s6711_s1 + $0x30] sm:$0xff] }
  0x80   :  { %406 = vmatpush1.bf16.msra.mxu1 %v5169_v12  ;;  %4633 = vmatprep.subr.bf16.mxu0 %v5213_v44  ;;  %v447_v60 = vld [vmem:[%s6711_s1 + $0x38] sm:$0xff]  ;;  %v5222_v61 = vld [vmem:[%s6714_s4 + $0x28] sm:$0xff]   ;;  %v5223_v62 = vld [vmem:[%s6714_s4 + $0x70] sm:$0xff]  }
  0x81   :  { %407 = vmatprep.subr.bf16.mxu1 %v5174_v13  ;;  %v458_v63 = vpack.c.bf16 %v447_v60, %v446_v59  ;;  %v448_v1 = vld [vmem:[%s6711_s1 + $0x40] sm:$0xff]  ;;  %v449_v2 = vld [vmem:[%s6711_s1 + $0x48] sm:$0xff]  ;;  %v450_v4 = vld [vmem:[%s6711_s1 + $0x50] sm:$0xff]  ;;  %v6022_v13 = vsub.s32 1, %v6016_v10 }
  0x82   :  { %v459_v3 = vpack.c.bf16 %v449_v2, %v448_v1  ;;  %v451_v5 = vld [vmem:[%s6711_s1 + $0x58] sm:$0xff]  ;;  %v452_v7 = vld [vmem:[%s6711_s1 + $0x60] sm:$0xff] }
  0x83   :  { %4634 = vmatpush3.bf16.msra.mxu0 %v5214_v47  ;;  %v460_v6 = vpack.c.bf16 %v451_v5, %v450_v4  ;;  %v461_v8 = vpack.c.bf16 %v452_v7, %v452_v7  ;;  %v124_v12 = vld [vmem:[#allocation6] sm:$0x3] }
  0x84   :  { %408 = vmatpush1.bf16.msra.mxu1 %v5172_v14  ;;  %4635 = vmatprep.subr.bf16.mxu0 %v5215_v48  ;;  %v129_v14 = vrot.slane %v124_v12, %v6019_v11 }
  0x85   :  { %409 = vmatprep.subr.bf16.mxu1 %v5177_v15  ;;  %v133_v15 = vrot.slane %v124_v12, %v6022_v13  ;;  %v227_v12 = vld [vmem:[#allocation6 + $0x2] sm:$0x3] }
  0x86   :  { %4320 = vmatmul.mubr.msk.bf16.gmra.mrb[4].mxu0 %vm146_vm0, %v456_v50 }
  0x87   :  { %557 = vmatprep.mubr.bf16.mxu0 %v5767_v0  ;;  %4636 = vmatpush3.bf16.msra.mxu0 %v5216_v49 }
  0x88   :  { %410 = vmatpush1.bf16.msra.mxu1 %v5175_v16  ;;  %4637 = vmatprep.subr.bf16.mxu0 %v5217_v51 }
  0x89   :  { %411 = vmatprep.subr.bf16.mxu1 %v5180_v17 }
  0x8b   :  { %4638 = vmatpush3.bf16.msra.mxu0 %v5218_v54 }
  0x8c   :  { %412 = vmatpush1.bf16.msra.mxu1 %v5178_v18  ;;  %4639 = vmatprep.subr.bf16.mxu0 %v5219_v55 }
  0x8d   :  { %413 = vmatprep.subr.bf16.mxu1 %v5183_v19 }
  0x8e   :  { %4321 = vmatmul.mubr.msk.bf16.gmra.mrb[8].mxu0 %vm146_vm0, %v457_v57 }
  0x8f   :  { %567 = vmatprep.mubr.bf16.mxu0 %v5767_v0  ;;  %4640 = vmatpush3.bf16.msra.mxu0 %v5220_v56 }
  0x90   :  { %414 = vmatpush1.bf16.msra.mxu1 %v5181_v20  ;;  %4641 = vmatprep.subr.bf16.mxu0 %v5221_v58 }
  0x91   :  { %415 = vmatprep.subr.bf16.mxu1 %v5186_v21 }
  0x93   :  { %4642 = vmatpush3.bf16.msra.mxu0 %v5222_v61 }
  0x94   :  { %416 = vmatpush1.bf16.msra.mxu1 %v5184_v22  ;;  %4643 = vmatprep.subr.bf16.mxu0 %v5223_v62 }
  0x95   :  { %417 = vmatprep.subr.bf16.mxu1 %v5189_v23 }
  0x96   :  { %4322 = vmatmul.mubr.msk.bf16.gmra.mrb[12].mxu0 %vm146_vm0, %v458_v63 }
  0x97   :  { %577 = vmatprep.mubr.bf16.mxu0 %v5767_v0 }
  0x98   :  { %418 = vmatpush1.bf16.msra.mxu1 %v5187_v24 }
  0x99   :  { %419 = vmatprep.subr.bf16.mxu1 %v5192_v25 }
  0x9c   :  { %420 = vmatpush1.bf16.msra.mxu1 %v5190_v26  ;;  %v5224_v26 = vld [vmem:[%s6714_s4 + $0x30] sm:$0xff]  }
  0x9d   :  { %421 = vmatprep.subr.bf16.mxu1 %v5195_v27  ;;  %4644 = vmatpush3.bf16.msra.mxu0 %v5224_v26  ;;  %v5225_v27 = vld [vmem:[%s6714_s4 + $0x78] sm:$0xff]   ;;  %v4326_v26 = vld [vmem:[#allocation6 + $0x4] ss:$0 sm:$0xff] }
  0x9e   :  { %4323 = vmatmul.mubr.msk.bf16.gmra.mrb[16].mxu0 %vm146_vm0, %v459_v3  ;;  %4645 = vmatprep.subr.bf16.mxu0 %v5225_v27 }
  0x9f   :  { %587 = vmatprep.mubr.bf16.mxu0 %v5767_v0 }
  0xa0   :  { %422 = vmatpush1.bf16.msra.mxu1 %v5193_v28  ;;  %v5226_v28 = vld [vmem:[%s6714_s4 + $0x38] sm:$0xff]  }
  0xa1   :  { %423 = vmatprep.subr.bf16.mxu1 %v5198_v29  ;;  %4646 = vmatpush3.bf16.msra.mxu0 %v5226_v28  ;;  %v6035_v29 = vld [vmem:[#allocation6 + $0x5] sm:$0x3] }
  0xa4   :  { %424 = vmatpush1.bf16.msra.mxu1 %v5196_v30 }
  0xa5   :  { %425 = vmatprep.subr.bf16.mxu1 %v5201_v31  ;;  %v471_v31 = vrot.slane %v6035_v29, %v6022_v13 }
  0xa6   :  { %4324 = vmatmul.mubr.msk.bf16.gmra.mrb[20].mxu0 %vm146_vm0, %v460_v6 }
  0xa7   :  { %597 = vmatprep.mubr.bf16.mxu0 %v5767_v0 }
  0xa8   :  { %426 = vmatpush1.bf16.msra.mxu1 %v5199_v32 }
  0xa9   :  { %427 = vmatprep.subr.bf16.mxu1 %v5204_v33 }
  0xac   :  { %428 = vmatpush1.bf16.msra.mxu1 %v5202_v34 }
  0xad   :  { %429 = vmatprep.subr.bf16.mxu1 %v5207_v35 }
  0xae   :  { %4325 = vmatmul.mubr.msk.bf16.gmra.mrb[24].mxu0 %vm146_vm0, %v461_v8 }
  0xb0   :  { %430 = vmatpush1.bf16.msra.mxu1 %v5205_v36 }
 0x146   :  { %v184_v16 = vpop.f32.mrb[0].mxu1 }
 0x147   :  { %v185_v17 = vadd.f32 %v184_v16, %v129_v14  ;;  %v186_v18 = vpop.f32.mrb[1].mxu1  ;;  %v232_v14 = vrot.slane %v227_v12, %v6019_v11 }
 0x148   :  { %v187_v19 = vadd.f32 %v186_v18, %v133_v15  ;;  %v188_v20 = vpop.f32.mrb[2].mxu1  ;;  %v236_v15 = vrot.slane %v227_v12, %v6022_v13  ;;  %v785_v12 = vld [vmem:[#allocation9 + $0x10] sm:$0xff] }
 0x149   :  { %v191_v21 = vmax.f32 %v185_v17, 0.0  ;;  %v189_v22 = vpop.f32.mrb[3].mxu1 }
 0x14a   :  { %v192_v23 = vmax.f32 %v187_v19, 0.0 }
 0x14b   :  { %v225_v25 = vpack.c.bf16 %v191_v21, %v191_v21 }
 0x14c   :  { %v226_v24 = vpack.c.bf16 %v192_v23, %v192_v23 }
 0x14e   :  { %431 = vmatprep.mubr.bf16.mxu1 %v226_v24  ;;  %v5768_v24 = vmov 0.0  }
 0x14f   :  { %432 = vmatmul.mubr.bf16.vlgmr.msra.gmra.mrb[4].mxu1 %v225_v25  ;;  %4824 = vmatprep.subr.mxu0 %v5768_v24 }
 0x150   :  { %5140 = vmatprep.subr.mxu1 %v5768_v24  ;;  %4844 = vmatprep.mubr.msk.f32.mxu1 %vm5769_vm1, %v5768_v24 }
 0x151   :  { %v6037_v30 = vpop.f32.mrb[0].mxu0 }
 0x152   :  { %v541_v32 = vpop.f32.mrb[1].mxu0 }
 0x153   :  { %v6041_v33 = vpop.f32.mrb[2].mxu0  ;;  %v6043_v34 = vadd.f32 %v541_v32, %v471_v31 }
 0x154   :  { %v545_v35 = vpop.f32.mrb[3].mxu0 }
 0x155   :  { %v6045_v36 = vadd.f32 %v545_v35, %v471_v31  ;;  %v810_v35 = vld [vmem:[%s6717_s7] sm:$0xff] }
 0x159   :  { %v6047_v37 = vpop.f32.mrb[4].mxu0 }
 0x15a   :  { %v551_v38 = vpop.f32.mrb[5].mxu0 }
 0x15b   :  { %v6049_v39 = vadd.f32 %v551_v38, %v471_v31  ;;  %v6051_v40 = vpop.f32.mrb[6].mxu0  ;;  %v811_v38 = vld [vmem:[%s6717_s7 + $0x8] sm:$0xff] }
 0x15c   :  { %v555_v41 = vpop.f32.mrb[7].mxu0 }
 0x15d   :  { %v6053_v42 = vadd.f32 %v555_v41, %v471_v31 }
 0x161   :  { %v6055_v43 = vpop.f32.mrb[8].mxu0 }
 0x162   :  { %v561_v44 = vpop.f32.mrb[9].mxu0 }
 0x163   :  { %v6057_v45 = vadd.f32 %v561_v44, %v471_v31  ;;  %v6059_v46 = vpop.f32.mrb[10].mxu0  ;;  %v783_v44 = vld [vmem:[#allocation9] sm:$0xff] }
 0x164   :  { %v565_v47 = vpop.f32.mrb[11].mxu0 }
 0x165   :  { %v6061_v48 = vadd.f32 %v565_v47, %v471_v31  ;;  %v789_v47 = vld [vmem:[#allocation9 + $0x30] sm:$0xff] }
 0x169   :  { %v6063_v49 = vpop.f32.mrb[12].mxu0 }
 0x16a   :  { %v571_v50 = vpop.f32.mrb[13].mxu0 }
 0x16b   :  { %v6065_v51 = vadd.f32 %v571_v50, %v471_v31  ;;  %v6067_v52 = vpop.f32.mrb[14].mxu0  ;;  %v5081_v50 = vpack.c.bf16 %v811_v38, %v810_v35  ;;  %v788_v35 = vld [vmem:[#allocation9 + $0x28] sm:$0xff]  ;;  %v794_v38 = vld [vmem:[#allocation9 + $0x58] sm:$0xff] }
 0x16c   :  { %v575_v53 = vpop.f32.mrb[15].mxu0 }
 0x16d   :  { %v6069_v54 = vadd.f32 %v575_v53, %v471_v31  ;;  %v812_v53 = vld [vmem:[%s6717_s7 + $0x10] sm:$0xff] }
 0x171   :  { %v6071_v55 = vpop.f32.mrb[16].mxu0 }
 0x172   :  { %v581_v56 = vpop.f32.mrb[17].mxu0 }
 0x173   :  { %v6073_v57 = vadd.f32 %v581_v56, %v471_v31  ;;  %v6075_v58 = vpop.f32.mrb[18].mxu0  ;;  %v813_v56 = vld [vmem:[%s6717_s7 + $0x18] sm:$0xff] }
 0x174   :  { %v585_v59 = vpop.f32.mrb[19].mxu0 }
 0x175   :  { %v6077_v60 = vadd.f32 %v585_v59, %v471_v31  ;;  %v784_v59 = vld [vmem:[#allocation9 + $0x8] sm:$0xff] }
 0x179   :  { %v6079_v61 = vpop.f32.mrb[20].mxu0 }
 0x17a   :  { %v591_v62 = vpop.f32.mrb[21].mxu0 }
 0x17b   :  { %v6081_v63 = vadd.f32 %v591_v62, %v471_v31  ;;  %v6083_v1 = vpop.f32.mrb[22].mxu0  ;;  %v790_v62 = vld [vmem:[#allocation9 + $0x38] sm:$0xff] }
 0x17c   :  { %v595_v2 = vpop.f32.mrb[23].mxu0 }
 0x17d   :  { %v6085_v3 = vadd.f32 %v595_v2, %v471_v31  ;;  %v5770_v2 = vmov 0.0|0.0  }
 0x181   :  { %v6087_v4 = vpop.f32.mrb[24].mxu0 }
 0x182   :  { %v601_v5 = vpop.f32.mrb[25].mxu0 }
 0x183   :  { %v6089_v6 = vadd.f32 %v601_v5, %v471_v31  ;;  %v603_v7 = vpop.f32.mrb[26].mxu0  ;;  %v5084_v5 = vpack.c.bf16 %v813_v56, %v812_v53  ;;  %v824_v56 = vld [vmem:[%s6717_s7 + $0x70] sm:$0xff] }
 0x184   :  { %v604_v8 = vpop.f32.mrb[27].mxu0  ;;  %v814_v7 = vld [vmem:[%s6717_s7 + $0x20] sm:$0xff] }
 0x185   :  { %v815_v8 = vld [vmem:[%s6717_s7 + $0x28] sm:$0xff] }
 0x222   :  { %v433_v16 = vpop.f32.mrb[4].mxu1 }
 0x223   :  { %v434_v17 = vadd.f32 %v433_v16, %v232_v14  ;;  %v435_v18 = vpop.f32.mrb[5].mxu1  ;;  %v791_v14 = vld [vmem:[#allocation9 + $0x40] sm:$0xff] }
 0x224   :  { %v436_v19 = vadd.f32 %v435_v18, %v236_v15  ;;  %v437_v20 = vpop.f32.mrb[6].mxu1  ;;  %v5087_v15 = vpack.c.bf16 %v815_v8, %v814_v7  ;;  %v816_v16 = vld [vmem:[%s6717_s7 + $0x30] sm:$0xff]  ;;  %v786_v18 = vld [vmem:[#allocation9 + $0x18] sm:$0xff] }
 0x225   :  { %v438_v21 = vpop.f32.mrb[7].mxu1  ;;  %v6095_v23 = vpack.c.bf16 %v434_v17, %v434_v17  ;;  %v817_v17 = vld [vmem:[%s6717_s7 + $0x38] sm:$0xff] }
 0x226   :  { %v6093_v22 = vpack.c.bf16 %v436_v19, %v436_v19  ;;  %v792_v19 = vld [vmem:[#allocation9 + $0x48] sm:$0xff]  ;;  %v5090_v20 = vpack.c.bf16 %v817_v17, %v816_v16  ;;  %v818_v21 = vld [vmem:[%s6717_s7 + $0x40] sm:$0xff] }
 0x228   :  { %775 = vmatprep.mubr.bf16.mxu0 %v6093_v22 }
 0x229   :  { %776 = vmatmul.mubr.bf16.vlgmr.msra.gmra.mrb[28].mxu0 %v6095_v23 }
 0x22a   :  { %4826 = vmatprep.mubr.msk.f32.mxu0 %vm5769_vm1, %v5768_v24 }
 0x2fc   :  { %v4647_v25 = vpop.f32.mrb[28].mxu0 }
 0x2fd   :  { %v4648_v27 = vpop.f32.mrb[29].mxu0 }
 0x2fe   :  { %v4649_v28 = vadd.f32 %v4648_v27, %v4647_v25  ;;  %v4650_v31 = vpop.f32.mrb[30].mxu0  ;;  %v819_v25 = vld [vmem:[%s6717_s7 + $0x48] sm:$0xff]  ;;  %v793_v27 = vld [vmem:[#allocation9 + $0x50] sm:$0xff] }
 0x2ff   :  { %v4651_v32 = vpop.f32.mrb[31].mxu0  ;;  %v820_v31 = vld [vmem:[%s6717_s7 + $0x50] sm:$0xff] }
 0x300   :  { %v778_v41 = vadd.f32 %v4649_v28, %v4326_v26  ;;  %v787_v26 = vld [vmem:[#allocation9 + $0x20] sm:$0xff]  ;;  %v5093_v28 = vpack.c.bf16 %v819_v25, %v818_v21  ;;  %v821_v32 = vld [vmem:[%s6717_s7 + $0x58] sm:$0xff] }
 0x302   :  { %4825 = vmatpush3.msra.mxu0 %v778_v41  ;;  %5141 = vmatpush3.msra.mxu1 %v778_v41  ;;  %v5096_v41 = vpack.c.bf16 %v821_v32, %v820_v31 }
 0x303   :  { %4827 = vmatmul.mubr.msk.f32.vlgmr.msra.gmra.mrb[32].mxu0 %vm827_vm2, %v783_v44  ;;  %4845 = vmatmul.mubr.msk.f32.vlgmr.msra.gmra.mrb[8].mxu1 %vm827_vm2, %v789_v47  ;;  %v822_v44 = vld [vmem:[%s6717_s7 + $0x60] sm:$0xff]  ;;  %v823_v47 = vld [vmem:[%s6717_s7 + $0x68] sm:$0xff] }
 0x304   :  { %4829 = vmatprep.mubr.msk.f32.mxu0 %vm5769_vm1, %v5768_v24  ;;  %4847 = vmatprep.mubr.msk.f32.mxu1 %vm5769_vm1, %v5768_v24  ;;  %v5099_v53 = vpack.c.bf16 %v823_v47, %v822_v44 }
 0x305   :  { %5080 = vmatprep.subr.bf16.mxu0 %v5770_v2  ;;  %5104 = vmatprep.subr.bf16.mxu1 %v5770_v2 }
 0x306   :  { %5082 = vmatpush3.bf16.msra.mxu0 %v5081_v50  ;;  %v795_v50 = vld [vmem:[#allocation9 + $0x60] sm:$0xff] }
 0x307   :  { %4830 = vmatmul.mubr.msk.f32.gmra.mrb[34].mxu0 %vm827_vm2, %v784_v59  ;;  %4848 = vmatmul.mubr.msk.f32.gmra.mrb[10].mxu1 %vm827_vm2, %v790_v62  ;;  %v825_v59 = vld [vmem:[%s6717_s7 + $0x78] sm:$0xff] }
 0x308   :  { %4832 = vmatprep.mubr.msk.f32.mxu0 %vm5769_vm1, %v5768_v24  ;;  %4850 = vmatprep.mubr.msk.f32.mxu1 %vm5769_vm1, %v5768_v24  ;;  %v5102_v62 = vpack.c.bf16 %v825_v59, %v824_v56 }
 0x309   :  { %5083 = vmatprep.subr.bf16.mxu0 %v5770_v2 }
 0x30a   :  { %5085 = vmatpush3.bf16.msra.mxu0 %v5084_v5  ;;  %v6204_v5 = vrot.slane %v6035_v29, %v6019_v11 }
 0x30b   :  { %4833 = vmatmul.mubr.msk.f32.gmra.mrb[36].mxu0 %vm827_vm2, %v785_v12  ;;  %4851 = vmatmul.mubr.msk.f32.gmra.mrb[12].mxu1 %vm827_vm2, %v791_v14 }
 0x30c   :  { %4835 = vmatprep.mubr.msk.f32.mxu0 %vm5769_vm1, %v5768_v24  ;;  %4853 = vmatprep.mubr.msk.f32.mxu1 %vm5769_vm1, %v5768_v24  ;;  %v540_v12 = vadd.f32 %v6037_v30, %v6204_v5  ;;  %v570_v14 = vadd.f32 %v6063_v49, %v6204_v5  ;;  %v544_v29 = vadd.f32 %v6041_v33, %v6204_v5 }
 0x30d   :  { %5086 = vmatprep.subr.bf16.mxu0 %v5770_v2  ;;  %v580_v33 = vadd.f32 %v6071_v55, %v6204_v5 }
 0x30e   :  { %5088 = vmatpush3.bf16.msra.mxu0 %v5087_v15 }
 0x30f   :  { %4836 = vmatmul.mubr.msk.f32.gmra.mrb[38].mxu0 %vm827_vm2, %v786_v18  ;;  %4854 = vmatmul.mubr.msk.f32.gmra.mrb[14].mxu1 %vm827_vm2, %v792_v19 }
 0x310   :  { %4838 = vmatprep.mubr.msk.f32.mxu0 %vm5769_vm1, %v5768_v24  ;;  %4856 = vmatprep.mubr.msk.f32.mxu1 %vm5769_vm1, %v5768_v24 }
 0x311   :  { %5089 = vmatprep.subr.bf16.mxu0 %v5770_v2 }
 0x312   :  { %5091 = vmatpush3.bf16.msra.mxu0 %v5090_v20 }
 0x313   :  { %4839 = vmatmul.mubr.msk.f32.gmra.mrb[40].mxu0 %vm827_vm2, %v787_v26  ;;  %4857 = vmatmul.mubr.msk.f32.gmra.mrb[16].mxu1 %vm827_vm2, %v793_v27  ;;  %v574_v26 = vadd.f32 %v6067_v52, %v6204_v5 }
 0x314   :  { %4841 = vmatprep.mubr.msk.f32.mxu0 %vm5769_vm1, %v5768_v24  ;;  %4859 = vmatprep.mubr.msk.f32.mxu1 %vm5769_vm1, %v5768_v24 }
 0x315   :  { %5092 = vmatprep.subr.bf16.mxu0 %v5770_v2 }
 0x316   :  { %5094 = vmatpush3.bf16.msra.mxu0 %v5093_v28 }
 0x317   :  { %4842 = vmatmul.mubr.msk.f32.gmra.mrb[42].mxu0 %vm827_vm2, %v788_v35  ;;  %4860 = vmatmul.mubr.msk.f32.gmra.mrb[18].mxu1 %vm827_vm2, %v794_v38 }
 0x318   :  { %4862 = vmatprep.mubr.msk.f32.mxu1 %vm5769_vm1, %v5768_v24  ;;  %5095 = vmatprep.subr.bf16.mxu0 %v5770_v2 }
 0x319   :  { %4897 = vmatprep.mubr.msk.f32.mxu0 %vm5769_vm1, %v5768_v24 }
 0x31a   :  { %5097 = vmatpush3.bf16.msra.mxu0 %v5096_v41  ;;  %v550_v41 = vadd.f32 %v6047_v37, %v6204_v5  ;;  %v584_v37 = vadd.f32 %v6075_v58, %v6204_v5 }
 0x31b   :  { %4863 = vmatmul.mubr.msk.f32.gmra.mrb[20].mxu1 %vm827_vm2, %v795_v50  ;;  %5098 = vmatprep.subr.bf16.mxu0 %v5770_v2 }
 0x31c   :  { %4962 = vmatprep.mubr.msk.f32.mxu1 %vm5769_vm1, %v5768_v24 }
 0x31e   :  { %5100 = vmatpush3.bf16.msra.mxu0 %v5099_v53 }
 0x31f   :  { %5101 = vmatprep.subr.bf16.mxu0 %v5770_v2 }
 0x322   :  { %5103 = vmatpush3.bf16.msra.mxu0 %v5102_v62 }
 0x323   :  { %5122 = vmatprep.subr.bf16.mxu0 %v5770_v2 }
 0x3d6   :  { %v933_v7 = vpop.f32.mrb[32].mxu0  ;;  %v963_v8 = vpop.f32.mrb[8].mxu1 }
 0x3d7   :  { %v997_v15 = vmul.f32 0.17677669, %v933_v7  ;;  %v1003_v16 = vmul.f32 0.17677669, %v963_v8  ;;  %v4828_v17 = vpop.f32.mrb[33].mxu0  ;;  %v4846_v18 = vpop.f32.mrb[9].mxu1  ;;  %v554_v7 = vadd.f32 %v6051_v40, %v6204_v5  ;;  %v590_v40 = vadd.f32 %v6079_v61, %v6204_v5 }
 0x3d9   :  { %v1010_v19 = vmul.f32 %v997_v15, %v540_v12  ;;  %v6210_v20 = vmul.f32 %v1003_v16, %v570_v14 }
 0x3da   :  { %v938_v21 = vpop.f32.mrb[34].mxu0  ;;  %v968_v25 = vpop.f32.mrb[10].mxu1 }
 0x3db   :  { %v998_v27 = vmul.f32 0.17677669, %v938_v21  ;;  %v1004_v30 = vmul.f32 0.17677669, %v968_v25  ;;  %v4831_v28 = vpop.f32.mrb[35].mxu0  ;;  %4898 = vmatmul.mubr.f32.vlgmr.msra.gmra.mrb[44].mxu0 %v1010_v19  ;;  %v4849_v49 = vpop.f32.mrb[11].mxu1  ;;  %v560_v19 = vadd.f32 %v6055_v43, %v6204_v5  ;;  %v594_v43 = vadd.f32 %v6083_v1, %v6204_v5 }
 0x3dc   :  { %4900 = vmatprep.mubr.msk.f32.mxu0 %vm5769_vm1, %v5768_v24  ;;  %v564_v49 = vadd.f32 %v6059_v46, %v6204_v5 }
 0x3dd   :  { %v1011_v31 = vmul.f32 %v998_v27, %v544_v29  ;;  %v1017_v32 = vmul.f32 %v1004_v30, %v574_v26 }
 0x3de   :  { %v943_v35 = vpop.f32.mrb[36].mxu0  ;;  %v973_v38 = vpop.f32.mrb[12].mxu1 }
 0x3df   :  { %v999_v44 = vmul.f32 0.17677669, %v943_v35  ;;  %v1005_v52 = vmul.f32 0.17677669, %v973_v38  ;;  %v4834_v47 = vpop.f32.mrb[37].mxu0  ;;  %4901 = vmatmul.mubr.f32.gmra.mrb[46].mxu0 %v1011_v31  ;;  %v4852_v50 = vpop.f32.mrb[13].mxu1 }
 0x3e0   :  { %4903 = vmatprep.mubr.msk.f32.mxu0 %vm5769_vm1, %v5768_v24 }
 0x3e1   :  { %v1012_v53 = vmul.f32 %v999_v44, %v550_v41  ;;  %v1018_v56 = vmul.f32 %v1005_v52, %v580_v33  ;;  %v600_v52 = vadd.f32 %v6087_v4, %v6204_v5 }
 0x3e2   :  { %v948_v59 = vpop.f32.mrb[38].mxu0  ;;  %v978_v62 = vpop.f32.mrb[14].mxu1 }
 0x3e3   :  { %v1000_v8 = vmul.f32 0.17677669, %v948_v59  ;;  %v1006_v55 = vmul.f32 0.17677669, %v978_v62  ;;  %v4837_v12 = vpop.f32.mrb[39].mxu0  ;;  %4904 = vmatmul.mubr.f32.gmra.mrb[48].mxu0 %v1012_v53  ;;  %v4855_v14 = vpop.f32.mrb[15].mxu1 }
 0x3e4   :  { %4906 = vmatprep.mubr.msk.f32.mxu0 %vm5769_vm1, %v5768_v24  ;;  %v6276_v12 = vadd.s32 48, %v6016_v10  ;;  %v5771_v14 = vmov -inf  }
 0x3e5   :  { %v1013_v15 = vmul.f32 %v1000_v8, %v554_v7  ;;  %v1019_v16 = vmul.f32 %v1006_v55, %v584_v37 }
 0x3e6   :  { %v953_v17 = vpop.f32.mrb[40].mxu0  ;;  %v983_v18 = vpop.f32.mrb[16].mxu1  ;;  %vm1186_vm3 = vcmp.lt.s32.totalorder %v6276_v12, 50  ;;  %vm1269_vm4 = vcmp.ge.s32.totalorder %v6276_v12, 50 }
 0x3e7   :  { %v1001_v21 = vmul.f32 0.17677669, %v953_v17  ;;  %v1007_v58 = vmul.f32 0.17677669, %v983_v18  ;;  %v4840_v25 = vpop.f32.mrb[41].mxu0  ;;  %4907 = vmatmul.mubr.f32.gmra.mrb[50].mxu0 %v1013_v15  ;;  %v4858_v29 = vpop.f32.mrb[17].mxu1 }
 0x3e8   :  { %4909 = vmatprep.mubr.msk.f32.mxu0 %vm5769_vm1, %v5768_v24  ;;  %v6279_v15 = vsel %vm827_vm2, -1e+30, %v5771_v14 }
 0x3e9   :  { %v1014_v26 = vmul.f32 %v1001_v21, %v560_v19  ;;  %v1020_v27 = vmul.f32 %v1007_v58, %v590_v40 }
 0x3ea   :  { %v958_v30 = vpop.f32.mrb[42].mxu0  ;;  %v988_v28 = vpop.f32.mrb[18].mxu1 }
 0x3eb   :  { %v1002_v31 = vmul.f32 0.17677669, %v958_v30  ;;  %v1008_v61 = vmul.f32 0.17677669, %v988_v28  ;;  %v4843_v35 = vpop.f32.mrb[43].mxu0  ;;  %4910 = vmatmul.mubr.f32.gmra.mrb[52].mxu0 %v1014_v26  ;;  %v4861_v38 = vpop.f32.mrb[19].mxu1 }
 0x3ec   :  { %4912 = vmatprep.mubr.msk.f32.mxu0 %vm5769_vm1, %v5768_v24 }
 0x3ed   :  { %v1015_v41 = vmul.f32 %v1002_v31, %v564_v49  ;;  %v1021_v33 = vmul.f32 %v1008_v61, %v594_v43 }
 0x3ee   :  { %v993_v44 = vpop.f32.mrb[20].mxu1 }
 0x3ef   :  { %v1009_v47 = vmul.f32 0.17677669, %v993_v44  ;;  %4913 = vmatmul.mubr.f32.gmra.mrb[54].mxu0 %v1015_v41  ;;  %v4864_v46 = vpop.f32.mrb[21].mxu1 }
 0x3f0   :  { %4915 = vmatprep.mubr.msk.f32.mxu0 %vm5769_vm1, %v5768_v24 }
 0x3f1   :  { %v1022_v1 = vmul.f32 %v1009_v47, %v600_v52 }
 0x3f3   :  { %4916 = vmatmul.mubr.f32.gmra.mrb[56].mxu0 %v6210_v20 }
 0x3f4   :  { %4918 = vmatprep.mubr.msk.f32.mxu0 %vm5769_vm1, %v5768_v24 }
 0x3f7   :  { %4919 = vmatmul.mubr.f32.gmra.mrb[58].mxu0 %v1017_v32 }
 0x3f8   :  { %4921 = vmatprep.mubr.msk.f32.mxu0 %vm5769_vm1, %v5768_v24 }
 0x3fb   :  { %4922 = vmatmul.mubr.f32.gmra.mrb[60].mxu0 %v1018_v56 }
 0x3fc   :  { %4924 = vmatprep.mubr.msk.f32.mxu0 %vm5769_vm1, %v5768_v24 }
 0x3ff   :  { %4925 = vmatmul.mubr.f32.gmra.mrb[62].mxu0 %v1019_v16 }
 0x400   :  { %4927 = vmatprep.mubr.msk.f32.mxu0 %vm5769_vm1, %v5768_v24 }
 0x403   :  { %4928 = vmatmul.mubr.f32.gmra.mrb[64].mxu0 %v1020_v27 }
 0x404   :  { %4930 = vmatprep.mubr.msk.f32.mxu0 %vm5769_vm1, %v5768_v24 }
 0x407   :  { %4931 = vmatmul.mubr.f32.gmra.mrb[66].mxu0 %v1021_v33 }
 0x408   :  { %4933 = vmatprep.mubr.msk.f32.mxu0 %vm5769_vm1, %v5768_v24 }
 0x40b   :  { %4934 = vmatmul.mubr.f32.gmra.mrb[68].mxu0 %v1022_v1 }
 0x40c   :  { %5032 = vmatprep.mubr.msk.f32.mxu0 %vm5769_vm1, %v5768_v24 }
 0x4ae   :  { %v6261_v4 = vpop.f32.mrb[44].mxu0 }
 0x4af   :  { %v4899_v5 = vpop.f32.mrb[45].mxu0  ;;  %v1219_v7 = vsel %vm827_vm2, %v6261_v4, -inf }
 0x4b2   :  { %v6263_v20 = vpop.f32.mrb[46].mxu0 }
 0x4b3   :  { %v4902_v32 = vpop.f32.mrb[47].mxu0  ;;  %v1220_v18 = vsel %vm827_vm2, %v6263_v20, -inf }
 0x4b6   :  { %v6265_v50 = vpop.f32.mrb[48].mxu0 }
 0x4b7   :  { %v4905_v53 = vpop.f32.mrb[49].mxu0  ;;  %v1221_v49 = vsel %vm827_vm2, %v6265_v50, -inf }
 0x4ba   :  { %v6267_v56 = vpop.f32.mrb[50].mxu0 }
 0x4bb   :  { %v4908_v59 = vpop.f32.mrb[51].mxu0  ;;  %v1222_v21 = vsel %vm827_vm2, %v6267_v56, -inf }
 0x4bc   :  { %v1230_v27 = vmax.f32 %v1222_v21, %v6279_v15  ;;  %v6323_v21 = vadd.s32 96, %v6016_v10 }
 0x4be   :  { %v6269_v62 = vpop.f32.mrb[52].mxu0  ;;  %v1238_v38 = vmax.f32 %v1230_v27, %v6279_v15  ;;  %vm1288_vm5 = vcmp.lt.s32.totalorder %v6323_v21, 100 }
 0x4bf   :  { %v1223_v37 = vsel %vm827_vm2, %v6269_v62, -inf  ;;  %v4911_v8 = vpop.f32.mrb[53].mxu0 }
 0x4c0   :  { %v1224_v55 = vmax.f32 %v1219_v7, %v1223_v37 }
 0x4c2   :  { %v1232_v16 = vmax.f32 %v1224_v55, %v6279_v15  ;;  %v6282_v17 = vpop.f32.mrb[54].mxu0 }
 0x4c3   :  { %v1225_v19 = vsel %vm827_vm2, %v6282_v17, -inf  ;;  %v4914_v40 = vpop.f32.mrb[55].mxu0 }
 0x4c4   :  { %v1226_v58 = vmax.f32 %v1220_v18, %v1225_v19  ;;  %v1240_v25 = vmax.f32 %v1232_v16, %v6279_v15 }
 0x4c6   :  { %v1234_v29 = vmax.f32 %v1226_v58, %v6279_v15  ;;  %v6293_v26 = vpop.f32.mrb[56].mxu0 }
 0x4c7   :  { %v1212_v30 = vsel %vm1186_vm3, %v6293_v26, -1e+30  ;;  %v4917_v28 = vpop.f32.mrb[57].mxu0  ;;  %v1308_v1 = vsel %vm1269_vm4, %v6293_v26, -1e+30 }
 0x4c8   :  { %v1241_v43 = vmax.f32 %v1240_v25, %v1234_v29  ;;  %v1227_v31 = vsel %vm827_vm2, %v1212_v30, -inf  ;;  %v1323_v59 = vsel %vm827_vm2, %v1308_v1, -inf }
 0x4c9   :  { %v1228_v61 = vmax.f32 %v1221_v49, %v1227_v31  ;;  %v1324_v55 = vmax.f32 %v6279_v15, %v1323_v59 }
 0x4ca   :  { %v6302_v35 = vpop.f32.mrb[58].mxu0 }
 0x4cb   :  { %v1236_v41 = vmax.f32 %v1228_v61, %v6279_v15  ;;  %v4920_v33 = vpop.f32.mrb[59].mxu0  ;;  %v1325_v16 = vsel %vm827_vm2, %v6302_v35, -inf }
 0x4cc   :  { %v1326_v25 = vmax.f32 %v6279_v15, %v1325_v16 }
 0x4cd   :  { %v1242_v44 = vmax.f32 %v1236_v41, %v1238_v38 }
 0x4ce   :  { %v6307_v52 = vpop.f32.mrb[60].mxu0 }
 0x4cf   :  { %v1243_v47 = vmax.f32 %v1241_v43, %v1242_v44  ;;  %v4923_v46 = vpop.f32.mrb[61].mxu0  ;;  %v1327_v49 = vsel %vm827_vm2, %v6307_v52, -inf }
 0x4d1   :  { %v1244_v5 = vrot.slane %v1243_v47, 4 }
 0x4d2   :  { %v6312_v32 = vpop.f32.mrb[62].mxu0 }
 0x4d3   :  { %v1245_v53 = vmax.f32 %v1243_v47, %v1244_v5  ;;  %v4926_v7 = vpop.f32.mrb[63].mxu0  ;;  %v1329_v31 = vsel %vm827_vm2, %v6312_v32, -inf  ;;  %v1328_v5 = vmax.f32 %v6279_v15, %v1327_v49 }
 0x4d5   :  { %v1246_v37 = vrot.slane %v1245_v53, 2 }
 0x4d6   :  { %v6315_v8 = vpop.f32.mrb[64].mxu0 }
 0x4d7   :  { %v1247_v14 = vmax.f32 %v1245_v53, %v1246_v37  ;;  %v1331_v18 = vsel %vm827_vm2, %v6315_v8, -inf  ;;  %v4929_v19 = vpop.f32.mrb[65].mxu0 }
 0x4d8   :  { %v1332_v40 = vmax.f32 %v1324_v55, %v1331_v18 }
 0x4d9   :  { %v1248_v58 = vrot.slane %v1247_v14, 1 }
 0x4da   :  { %v6326_v29 = vpop.f32.mrb[66].mxu0 }
 0x4db   :  { %v1249_v27 = vmax.f32 %v1247_v14, %v1248_v58  ;;  %v1333_v30 = vsel %vm827_vm2, %v6326_v29, -inf  ;;  %v4932_v28 = vpop.f32.mrb[67].mxu0 }
 0x4dc   :  { %v1334_v43 = vmax.f32 %v1326_v25, %v1333_v30  ;;  %v799_v30 = vld [vmem:[#allocation10 + $0x10] sm:$0xff] }
 0x4dd   :  { %v1359_v61 = vsub.f32 %v6261_v4, %v1249_v27  ;;  %v1360_v38 = vsub.f32 %v6263_v20, %v1249_v27  ;;  %v1361_v41 = vsub.f32 %v6265_v50, %v1249_v27  ;;  %v1362_v47 = vsub.f32 %v6267_v56, %v1249_v27 }
 0x4de   :  { %v1338_v33 = vmax.f32 %v1332_v40, %v1334_v43  ;;  %v6338_v44 = vpop.f32.mrb[68].mxu0  ;;  %v1363_v46 = vsub.f32 %v6269_v62, %v1249_v27  ;;  %v1364_v1 = vsub.f32 %v6282_v17, %v1249_v27  ;;  %v1330_v20 = vmax.f32 %v6279_v15, %v1329_v31  ;;  %v797_v40 = vld [vmem:[#allocation10] sm:$0xff]  ;;  %v798_v15 = vld [vmem:[#allocation10 + $0x8] sm:$0xff]  ;;  %v800_v43 = vld [vmem:[#allocation10 + $0x18] sm:$0xff] }
 0x4df   :  { %v1314_v53 = vsel %vm1288_vm5, %v6338_v44, -1e+30  ;;  %v4935_v4 = vpop.f32.mrb[69].mxu0  ;;  %v1372_v59 = vmul.f32 1.442695, %v1359_v61 }
 0x4e0   :  { %v1335_v50 = vsel %vm827_vm2, %v1314_v53, -inf  ;;  %v1374_v7 = vmul.f32 1.442695, %v1360_v38  ;;  %v1376_v37 = vmul.f32 1.442695, %v1361_v41  ;;  %v801_v41 = vld [vmem:[#allocation10 + $0x20] sm:$0xff] }
 0x4e1   :  { %v1336_v55 = vmax.f32 %v1328_v5, %v1335_v50  ;;  %5579 = vpow2.f32 %v1372_v59  ;;  %v1378_v56 = vmul.f32 1.442695, %v1362_v47  ;;  %v1380_v62 = vmul.f32 1.442695, %v1363_v46  ;;  %v802_v46 = vld [vmem:[#allocation10 + $0x28] sm:$0xff] }
 0x4e2   :  { %5581 = vpow2.f32 %v1374_v7  ;;  %v1382_v17 = vmul.f32 1.442695, %v1364_v1 }
 0x4e3   :  { %v1337_v14 = vmax.f32 %v1336_v55, %v1330_v20  ;;  %5583 = vpow2.f32 %v1376_v37  ;;  %v1256_v55 = vsel %vm1186_vm3, %v1249_v27, 0.0 }
 0x4e4   :  { %5585 = vpow2.f32 %v1378_v56 }
 0x4e5   :  { %v1339_v16 = vmax.f32 %v1337_v14, %v1338_v33  ;;  %5587 = vpow2.f32 %v1380_v62 }
 0x4e6   :  { %5589 = vpow2.f32 %v1382_v17 }
 0x4e7   :  { %v1340_v18 = vrot.slane %v1339_v16, 4 }
 0x4e9   :  { %v1341_v19 = vmax.f32 %v1339_v16, %v1340_v18 }
 0x4eb   :  { %v5580_v58 = vpop.eup %5579  ;;  %v1342_v25 = vrot.slane %v1341_v19, 2 }
 0x4ec   :  { %v5582_v28 = vpop.eup %5581  ;;  %v6349_v49 = vmul.f32 %v5580_v58, %v797_v40 }
 0x4ed   :  { %v5584_v31 = vpop.eup %5583  ;;  %v1343_v61 = vmax.f32 %v1341_v19, %v1342_v25  ;;  %v6351_v38 = vmul.f32 %v5582_v28, %v798_v15 }
 0x4ee   :  { %v5586_v47 = vpop.eup %5585  ;;  %v6353_v33 = vmul.f32 %v5584_v31, %v799_v30  ;;  %v805_v30 = vld [vmem:[#allocation10 + $0x40] sm:$0xff] }
 0x4ef   :  { %v5588_v1 = vpop.eup %5587  ;;  %v1344_v5 = vrot.slane %v1343_v61, 1  ;;  %v5105_v53 = vpack.c.bf16 %v6351_v38, %v6349_v49  ;;  %v6357_v4 = vmul.f32 %v5586_v47, %v800_v43  ;;  %v806_v43 = vld [vmem:[#allocation10 + $0x48] sm:$0xff] }
 0x4f0   :  { %v5590_v59 = vpop.eup %5589  ;;  %v6359_v20 = vmul.f32 %v5588_v1, %v801_v41  ;;  %v807_v41 = vld [vmem:[#allocation10 + $0x50] sm:$0xff]  ;;  %v808_v1 = vld [vmem:[#allocation10 + $0x58] sm:$0xff] }
 0x4f1   :  { %v1345_v50 = vmax.f32 %v1343_v61, %v1344_v5  ;;  %5106 = vmatpush3.bf16.msra.mxu1 %v5105_v53  ;;  %v5108_v7 = vpack.c.bf16 %v6357_v4, %v6353_v33  ;;  %v6363_v37 = vmul.f32 %v5590_v59, %v802_v46 }
 0x4f2   :  { %5107 = vmatprep.subr.bf16.mxu1 %v5770_v2 }
 0x4f3   :  { %v1358_v56 = vsel %vm1288_vm5, %v1345_v50, 0.0  ;;  %v5111_v62 = vpack.c.bf16 %v6363_v37, %v6359_v20  ;;  %v1352_v17 = vsel %vm1269_vm4, %v1345_v50, %v1256_v55  ;;  %v1366_v14 = vsub.f32 %v6302_v35, %v1345_v50 }
 0x4f4   :  { %v1371_v16 = vsub.f32 %v6338_v44, %v1358_v56  ;;  %v1365_v18 = vsub.f32 %v6293_v26, %v1352_v17  ;;  %v1367_v19 = vsub.f32 %v6307_v52, %v1345_v50  ;;  %v1368_v27 = vsub.f32 %v6312_v32, %v1345_v50  ;;  %v804_v52 = vld [vmem:[#allocation10 + $0x38] sm:$0xff] }
 0x4f5   :  { %5109 = vmatpush3.bf16.msra.mxu1 %v5108_v7  ;;  %v1386_v40 = vmul.f32 1.442695, %v1366_v14  ;;  %v1369_v21 = vsub.f32 %v6315_v8, %v1345_v50  ;;  %v1370_v15 = vsub.f32 %v6326_v29, %v1345_v50  ;;  %v803_v29 = vld [vmem:[#allocation10 + $0x30] sm:$0xff]  ;;  %v809_v14 = vld [vmem:[#allocation10 + $0x60] sm:$0xff] }
 0x4f6   :  { %5110 = vmatprep.subr.bf16.mxu1 %v5770_v2  ;;  %v1384_v12 = vmul.f32 1.442695, %v1365_v18  ;;  %v1388_v58 = vmul.f32 1.442695, %v1367_v19  ;;  %v1390_v35 = vmul.f32 1.442695, %v1368_v27 }
 0x4f7   :  { %5591 = vpow2.f32 %v1386_v40  ;;  %v1392_v25 = vmul.f32 1.442695, %v1369_v21  ;;  %v1394_v26 = vmul.f32 1.442695, %v1370_v15  ;;  %v1396_v8 = vmul.f32 1.442695, %v1371_v16 }
 0x4f8   :  { %5593 = vpow2.f32 %v1384_v12  ;;  %v6389_v18 = vld [vmem:[%s6720_s10] sm:$0xff]  ;;  %v5254_v27 = vld [vmem:[#allocation2 + $0x154] ss:$8 sps:$4 sm:$0xff]   ;;  %v5252_v40 = vld [vmem:[#allocation2 + $0x150] ss:$8 sps:$4 sm:$0xff]  }
 0x4f9   :  { %5112 = vmatpush3.bf16.msra.mxu1 %v5111_v62  ;;  %5595 = vpow2.f32 %v1388_v58  ;;  %v6391_v19 = vld [vmem:[#allocation7] sm:$0xff] }
 0x4fa   :  { %5113 = vmatprep.subr.bf16.mxu1 %v5770_v2  ;;  %5597 = vpow2.f32 %v1390_v35 }
 0x4fb   :  { %5599 = vpow2.f32 %v1392_v25 }
 0x4fc   :  { %5601 = vpow2.f32 %v1394_v26 }
 0x4fd   :  { %5603 = vpow2.f32 %v1396_v8 }
 0x501   :  { %v5592_v32 = vpop.eup %5591 }
 0x502   :  { %v1405_v44 = vmul.f32 %v5592_v32, %v804_v52  ;;  %v5594_v28 = vpop.eup %5593 }
 0x503   :  { %v5596_v31 = vpop.eup %5595  ;;  %v1404_v61 = vmul.f32 %v5594_v28, %v803_v29 }
 0x504   :  { %v5598_v47 = vpop.eup %5597  ;;  %v1406_v46 = vmul.f32 %v5596_v31, %v805_v30 }
 0x505   :  { %v5600_v5 = vpop.eup %5599  ;;  %v5114_v53 = vpack.c.bf16 %v1405_v44, %v1404_v61  ;;  %v1407_v59 = vmul.f32 %v5598_v47, %v806_v43 }
 0x506   :  { %v5602_v50 = vpop.eup %5601  ;;  %v1408_v7 = vmul.f32 %v5600_v5, %v807_v41 }
 0x507   :  { %5115 = vmatpush3.bf16.msra.mxu1 %v5114_v53  ;;  %v5117_v55 = vpack.c.bf16 %v1407_v59, %v1406_v46  ;;  %v1409_v56 = vmul.f32 %v5602_v50, %v808_v1  ;;  %v5604_v17 = vpop.eup %5603 }
 0x508   :  { %5116 = vmatprep.subr.bf16.mxu1 %v5770_v2  ;;  %v1410_v16 = vmul.f32 %v5604_v17, %v809_v14 }
 0x509   :  { %v5120_v62 = vpack.c.bf16 %v1409_v56, %v1408_v7 }
 0x50b   :  { %5118 = vmatpush3.bf16.msra.mxu1 %v5117_v55 }
 0x50c   :  { %5119 = vmatprep.subr.bf16.mxu1 %v5770_v2 }
 0x50f   :  { %5121 = vmatpush3.bf16.msra.mxu1 %v5120_v62 }
 0x510   :  { %4960 = vmatprep.subr.mxu1 %v5768_v24 }
 0x513   :  { %4961 = vmatpush3.msra.mxu1 %v1410_v16 }
 0x514   :  { %4963 = vmatmul.mubr.msk.f32.vlgmr.msra.gmra.mrb[22].mxu1 %vm1411_vm6, %v6389_v18  ;;  %4965 = vmatprep.subr.mxu1 %v5768_v24 }
 0x515   :  { %4966 = vmatpush3.msra.mxu1 %v6391_v19  ;;  %4967 = vmatprep.mubr.msk.f32.mxu1 %vm5769_vm1, %v5768_v24 }
 0x518   :  { %4968 = vmatmul.mubr.msk.f32.vlgmr.msra.gmra.mrb[24].mxu1 %vm827_vm2, %v6349_v49  ;;  %v5243_v49 = vld [vmem:[#allocation2 + $0x120] ss:$8 sps:$4 sm:$0xff]  }
 0x519   :  { %4970 = vmatprep.mubr.msk.f32.mxu1 %vm5769_vm1, %v5768_v24 }
 0x51c   :  { %4971 = vmatmul.mubr.msk.f32.gmra.mrb[26].mxu1 %vm827_vm2, %v6351_v38  ;;  %v5245_v38 = vld [vmem:[#allocation2 + $0x124] ss:$8 sps:$4 sm:$0xff]  }
 0x51d   :  { %4973 = vmatprep.mubr.msk.f32.mxu1 %vm5769_vm1, %v5768_v24  ;;  %1923 = vmatprep.subr.bf16.mxu1 %v5245_v38 }
 0x51e   :  { %1924 = vmatpush1.bf16.msra.mxu1 %v5243_v49 }
 0x520   :  { %4974 = vmatmul.mubr.msk.f32.gmra.mrb[28].mxu1 %vm827_vm2, %v6353_v33  ;;  %v5248_v33 = vld [vmem:[#allocation2 + $0x134] ss:$8 sps:$4 sm:$0xff]  }
 0x521   :  { %4976 = vmatprep.mubr.msk.f32.mxu1 %vm5769_vm1, %v5768_v24  ;;  %1925 = vmatprep.subr.bf16.mxu1 %v5248_v33 }
 0x524   :  { %4977 = vmatmul.mubr.msk.f32.gmra.mrb[30].mxu1 %vm827_vm2, %v6357_v4  ;;  %v5246_v4 = vld [vmem:[#allocation2 + $0x130] ss:$8 sps:$4 sm:$0xff]  }
 0x525   :  { %4979 = vmatprep.mubr.msk.f32.mxu1 %vm5769_vm1, %v5768_v24  ;;  %1926 = vmatpush1.bf16.msra.mxu1 %v5246_v4 }
 0x528   :  { %4980 = vmatmul.mubr.msk.f32.gmra.mrb[32].mxu1 %vm827_vm2, %v6359_v20  ;;  %v5251_v20 = vld [vmem:[#allocation2 + $0x144] ss:$8 sps:$4 sm:$0xff]  }
 0x529   :  { %4982 = vmatprep.mubr.msk.f32.mxu1 %vm5769_vm1, %v5768_v24  ;;  %1927 = vmatprep.subr.bf16.mxu1 %v5251_v20 }
 0x52c   :  { %4983 = vmatmul.mubr.msk.f32.gmra.mrb[34].mxu1 %vm827_vm2, %v6363_v37  ;;  %v5249_v37 = vld [vmem:[#allocation2 + $0x140] ss:$8 sps:$4 sm:$0xff]  }
 0x52d   :  { %4985 = vmatprep.mubr.msk.f32.mxu1 %vm5769_vm1, %v5768_v24  ;;  %1928 = vmatpush1.bf16.msra.mxu1 %v5249_v37 }
 0x52e   :  { %1929 = vmatprep.subr.bf16.mxu1 %v5254_v27 }
 0x530   :  { %4986 = vmatmul.mubr.msk.f32.gmra.mrb[36].mxu1 %vm827_vm2, %v1404_v61 }
 0x531   :  { %4988 = vmatprep.mubr.msk.f32.mxu1 %vm5769_vm1, %v5768_v24  ;;  %1930 = vmatpush1.bf16.msra.mxu1 %v5252_v40  ;;  %v5232_v40 = vld [vmem:[%s6714_s4 + $0x90] sm:$0xff]  }
 0x534   :  { %4989 = vmatmul.mubr.msk.f32.gmra.mrb[38].mxu1 %vm827_vm2, %v1405_v44 }
 0x535   :  { %4991 = vmatprep.mubr.msk.f32.mxu1 %vm5769_vm1, %v5768_v24 }
 0x538   :  { %4992 = vmatmul.mubr.msk.f32.gmra.mrb[40].mxu1 %vm827_vm2, %v1406_v46 }
 0x539   :  { %4994 = vmatprep.mubr.msk.f32.mxu1 %vm5769_vm1, %v5768_v24 }
 0x53c   :  { %4995 = vmatmul.mubr.msk.f32.gmra.mrb[42].mxu1 %vm827_vm2, %v1407_v59 }
 0x53d   :  { %4997 = vmatprep.mubr.msk.f32.mxu1 %vm5769_vm1, %v5768_v24 }
 0x540   :  { %4998 = vmatmul.mubr.msk.f32.gmra.mrb[44].mxu1 %vm827_vm2, %v1408_v7 }
 0x541   :  { %5000 = vmatprep.mubr.msk.f32.mxu1 %vm5769_vm1, %v5768_v24 }
 0x544   :  { %5001 = vmatmul.mubr.msk.f32.gmra.mrb[46].mxu1 %vm827_vm2, %v1409_v56 }
 0x545   :  { %5003 = vmatprep.mubr.msk.f32.mxu1 %vm5769_vm1, %v5768_v24 }
 0x548   :  { %5004 = vmatmul.mubr.msk.f32.gmra.mrb[48].mxu1 %vm827_vm2, %v1410_v16 }
 0x549   :  { %1955 = vmatprep.mubr.bf16.mxu1 %v5767_v0 }
 0x5e7   :  { %v6443_v21 = vpop.f32.mrb[22].mxu1 }
 0x5e8   :  { %v4964_v15 = vpop.f32.mrb[23].mxu1  ;;  %vm1485_vm7 = vcmp.gt.f32.partialorder %v6443_v21, 0.0 }
 0x5e9   :  { %v1486_v27 = vsel %vm1485_vm7, %v6443_v21, 1.0  ;;  %v5233_v21 = vld [vmem:[%s6714_s4 + $0xd8] sm:$0xff]  }
 0x5ea   :  { %v5234_v15 = vld [vmem:[%s6714_s4 + $0x98] sm:$0xff]  }
 0x5eb   :  { %v1592_v12 = vpop.f32.mrb[24].mxu1 }
 0x5ec   :  { %v1656_v58 = vmul.f32 %v1592_v12, %v6043_v34  ;;  %v4969_v35 = vpop.f32.mrb[25].mxu1  ;;  %v5235_v12 = vld [vmem:[%s6714_s4 + $0xe0] sm:$0xff]  }
 0x5ed   :  { %v5237_v35 = vld [vmem:[%s6714_s4 + $0xe8] sm:$0xff]  }
 0x5ef   :  { %v1597_v25 = vpop.f32.mrb[26].mxu1 }
 0x5f0   :  { %v1657_v26 = vmul.f32 %v1597_v25, %v6045_v36  ;;  %v4972_v52 = vpop.f32.mrb[27].mxu1  ;;  %v5238_v25 = vld [vmem:[%s6714_s4 + $0xa8] sm:$0xff]  }
 0x5f1   :  { %v5240_v52 = vld [vmem:[%s6714_s4 + $0xb0] sm:$0xff]  }
 0x5f2   :  { %v5123_v32 = vpack.c.bf16 %v1657_v26, %v1656_v58  ;;  %v5236_v58 = vld [vmem:[%s6714_s4 + $0xa0] sm:$0xff]   ;;  %v5239_v26 = vld [vmem:[%s6714_s4 + $0xf0] sm:$0xff]  }
 0x5f3   :  { %v1602_v8 = vpop.f32.mrb[28].mxu1 }
 0x5f4   :  { %v1658_v29 = vmul.f32 %v1602_v8, %v6049_v39  ;;  %v4975_v44 = vpop.f32.mrb[29].mxu1  ;;  %5124 = vmatpush3.bf16.msra.mxu0 %v5123_v32  ;;  %v5241_v32 = vld [vmem:[%s6714_s4 + $0xf8] sm:$0xff]  }
 0x5f5   :  { %5125 = vmatprep.subr.bf16.mxu0 %v5770_v2  ;;  %v5242_v8 = vld [vmem:[%s6714_s4 + $0xb8] sm:$0xff]  }
 0x5f7   :  { %v1607_v30 = vpop.f32.mrb[30].mxu1 }
 0x5f8   :  { %v1659_v28 = vmul.f32 %v1607_v30, %v6053_v42  ;;  %v4978_v43 = vpop.f32.mrb[31].mxu1  ;;  %v5255_v30 = vld [vmem:[#allocation2 + $0x160] ss:$8 sps:$4 sm:$0xff]  }
 0x5f9   :  { %v5260_v43 = vld [vmem:[#allocation2 + $0x174] ss:$8 sps:$4 sm:$0xff]  }
 0x5fa   :  { %v5126_v31 = vpack.c.bf16 %v1659_v28, %v1658_v29  ;;  %v2011_v29 = vld [vmem:[%s6712_s2] sm:$0xff] }
 0x5fb   :  { %v1612_v61 = vpop.f32.mrb[32].mxu1  ;;  %v2045_v44 = vpack.c.bf16 %v2011_v29, %v2011_v29  ;;  %v5257_v28 = vld [vmem:[#allocation2 + $0x164] ss:$8 sps:$4 sm:$0xff]   ;;  %v5308_v29 = vld [vmem:[#allocation2 + $0x250] ss:$8 sps:$4 sm:$0xff]  }
 0x5fc   :  { %v1660_v34 = vmul.f32 %v1612_v61, %v6057_v45  ;;  %v4981_v41 = vpop.f32.mrb[33].mxu1  ;;  %5127 = vmatpush3.bf16.msra.mxu0 %v5126_v31  ;;  %1931 = vmatprep.subr.bf16.mxu1 %v5257_v28  ;;  %v5258_v31 = vld [vmem:[#allocation2 + $0x170] ss:$8 sps:$4 sm:$0xff]   ;;  %v5263_v61 = vld [vmem:[#allocation2 + $0x184] ss:$8 sps:$4 sm:$0xff]  }
 0x5fd   :  { %5128 = vmatprep.subr.bf16.mxu0 %v5770_v2  ;;  %1932 = vmatpush1.bf16.msra.mxu1 %v5255_v30  ;;  %v5266_v41 = vld [vmem:[#allocation2 + $0x194] ss:$8 sps:$4 sm:$0xff]   ;;  %v5311_v30 = vld [vmem:[#allocation2 + $0x260] ss:$8 sps:$4 sm:$0xff]  }
 0x5fe   :  { %1933 = vmatprep.subr.bf16.mxu1 %v5260_v43  ;;  %v5316_v28 = vld [vmem:[#allocation2 + $0x274] ss:$8 sps:$4 sm:$0xff]   ;;  %v5314_v43 = vld [vmem:[#allocation2 + $0x270] ss:$8 sps:$4 sm:$0xff]  }
 0x5ff   :  { %v1617_v36 = vpop.f32.mrb[34].mxu1 }
 0x600   :  { %v1661_v47 = vmul.f32 %v1617_v36, %v6061_v48  ;;  %v4984_v39 = vpop.f32.mrb[35].mxu1  ;;  %v5264_v36 = vld [vmem:[#allocation2 + $0x190] ss:$8 sps:$4 sm:$0xff]  }
 0x601   :  { %1934 = vmatpush1.bf16.msra.mxu1 %v5258_v31  ;;  %v5319_v31 = vld [vmem:[#allocation2 + $0x284] ss:$8 sps:$4 sm:$0xff]  }
 0x602   :  { %v5129_v46 = vpack.c.bf16 %v1661_v47, %v1660_v34  ;;  %v5261_v34 = vld [vmem:[#allocation2 + $0x180] ss:$8 sps:$4 sm:$0xff]   ;;  %1935 = vmatprep.subr.bf16.mxu1 %v5263_v61 }
 0x603   :  { %v1622_v1 = vpop.f32.mrb[36].mxu1  ;;  %v5317_v61 = vld [vmem:[#allocation2 + $0x280] ss:$8 sps:$4 sm:$0xff]  }
 0x604   :  { %v1662_v5 = vmul.f32 %v1622_v1, %v6065_v51  ;;  %v4987_v53 = vpop.f32.mrb[37].mxu1  ;;  %5130 = vmatpush3.bf16.msra.mxu0 %v5129_v46 }
 0x605   :  { %5131 = vmatprep.subr.bf16.mxu0 %v5770_v2  ;;  %1936 = vmatpush1.bf16.msra.mxu1 %v5261_v34  ;;  %v5322_v34 = vld [vmem:[#allocation2 + $0x294] ss:$8 sps:$4 sm:$0xff]  }
 0x606   :  { %1937 = vmatprep.subr.bf16.mxu1 %v5266_v41  ;;  %v5320_v41 = vld [vmem:[#allocation2 + $0x290] ss:$8 sps:$4 sm:$0xff]  }
 0x607   :  { %v1627_v42 = vpop.f32.mrb[38].mxu1 }
 0x608   :  { %v1663_v59 = vmul.f32 %v1627_v42, %v6069_v54  ;;  %v4990_v45 = vpop.f32.mrb[39].mxu1  ;;  %v5267_v42 = vld [vmem:[%s6714_s4 + $0x100] sm:$0xff]  }
 0x609   :  { %1938 = vmatpush1.bf16.msra.mxu1 %v5264_v36  ;;  %v5268_v45 = vld [vmem:[%s6714_s4 + $0x108] sm:$0xff]  }
 0x60a   :  { %v5132_v50 = vpack.c.bf16 %v1663_v59, %v1662_v5  ;;  %5040 = vmatprep.subr.bf16.mxu1 %v5768_v24  ;;  %v5323_v36 = vld [vmem:[#allocation2 + $0x2a0] ss:$8 sps:$4 sm:$0xff]  }
 0x60b   :  { %v1632_v7 = vpop.f32.mrb[40].mxu1 }
 0x60c   :  { %v1664_v55 = vmul.f32 %v1632_v7, %v6073_v57  ;;  %v4993_v56 = vpop.f32.mrb[41].mxu1  ;;  %5133 = vmatpush3.bf16.msra.mxu0 %v5132_v50  ;;  %v5269_v50 = vld [vmem:[%s6714_s4 + $0x110] sm:$0xff]   ;;  %v5270_v7 = vld [vmem:[%s6714_s4 + $0x118] sm:$0xff]  }
 0x60d   :  { %5134 = vmatprep.subr.bf16.mxu0 %v5770_v2 }
 0x60f   :  { %v1637_v48 = vpop.f32.mrb[42].mxu1 }
 0x610   :  { %v1665_v62 = vmul.f32 %v1637_v48, %v6077_v60  ;;  %v4996_v51 = vpop.f32.mrb[43].mxu1  ;;  %v5227_v60 = vld [vmem:[%s6714_s4 + $0xc0] sm:$0xff]   ;;  %v5272_v48 = vld [vmem:[%s6714_s4 + $0x128] sm:$0xff]  }
 0x612   :  { %v5135_v17 = vpack.c.bf16 %v1665_v62, %v1664_v55  ;;  %v5271_v55 = vld [vmem:[%s6714_s4 + $0x120] sm:$0xff]   ;;  %v4388_v62 = vld [vmem:[#allocation6 + $0xd] ss:$0 sm:$0xff] }
 0x613   :  { %v1642_v14 = vpop.f32.mrb[44].mxu1 }
 0x614   :  { %v1666_v16 = vmul.f32 %v1642_v14, %v6081_v63  ;;  %v4999_v49 = vpop.f32.mrb[45].mxu1  ;;  %5136 = vmatpush3.bf16.msra.mxu0 %v5135_v17  ;;  %v2012_v63 = vld [vmem:[%s6712_s2 + $0x8] sm:$0xff] }
 0x615   :  { %5137 = vmatprep.subr.bf16.mxu0 %v5770_v2  ;;  %v5229_v2 = vld [vmem:[%s6714_s4 + $0xc8] sm:$0xff]  }
 0x617   :  { %v1647_v54 = vpop.f32.mrb[46].mxu1 }
 0x618   :  { %v1667_v38 = vmul.f32 %v1647_v54, %v6085_v3  ;;  %v5002_v57 = vpop.f32.mrb[47].mxu1  ;;  %v5228_v3 = vld [vmem:[%s6714_s4 + $0x80] sm:$0xff]   ;;  %v5273_v54 = vld [vmem:[%s6714_s4 + $0x130] sm:$0xff]  }
 0x619   :  { %v5274_v57 = vld [vmem:[%s6714_s4 + $0x138] sm:$0xff]  }
 0x61a   :  { %v5138_v33 = vpack.c.bf16 %v1667_v38, %v1666_v16 }
 0x61b   :  { %v1652_v4 = vpop.f32.mrb[48].mxu1 }
 0x61c   :  { %v1668_v20 = vmul.f32 %v1652_v4, %v6089_v6  ;;  %v5005_v37 = vpop.f32.mrb[49].mxu1  ;;  %5139 = vmatpush3.bf16.msra.mxu0 %v5138_v33  ;;  %v2046_v6 = vpack.c.bf16 %v2012_v63, %v2012_v63  ;;  %v5277_v33 = vld [vmem:[#allocation2 + $0x1a4] ss:$8 sps:$4 sm:$0xff]  }
 0x61d   :  { %5030 = vmatprep.subr.mxu0 %v5768_v24  ;;  %v5280_v37 = vld [vmem:[#allocation2 + $0x1b4] ss:$8 sps:$4 sm:$0xff]   ;;  %v5283_v63 = vld [vmem:[#allocation2 + $0x1c4] ss:$8 sps:$4 sm:$0xff]  }
 0x620   :  { %5031 = vmatpush3.msra.mxu0 %v1668_v20  ;;  %v5275_v20 = vld [vmem:[#allocation2 + $0x1a0] ss:$8 sps:$4 sm:$0xff]  }
 0x621   :  { %5033 = vmatmul.mubr.msk.f32.vlgmr.msra.gmra.mrb[70].mxu0 %vm1411_vm6, %v6389_v18  ;;  %5035 = vmatprep.subr.mxu0 %v5768_v24  ;;  %v5230_v18 = vld [vmem:[%s6714_s4 + $0x88] sm:$0xff]  }
 0x622   :  { %5036 = vmatpush3.msra.mxu0 %v6391_v19  ;;  %5037 = vmatprep.mubr.msk.f32.mxu0 %vm5769_vm1, %v5768_v24  ;;  %v5231_v19 = vld [vmem:[%s6714_s4 + $0xd0] sm:$0xff]  }
 0x623   :  { %4740 = vmatprep.subr.bf16.mxu0 %v5227_v60  ;;  %v5278_v60 = vld [vmem:[#allocation2 + $0x1b0] ss:$8 sps:$4 sm:$0xff]  }
 0x625   :  { %5038 = vmatmul.mubr.msk.f32.vlgmr.msra.gmra.mrb[72].mxu0 %vm827_vm2, %v1486_v27  ;;  %v5289_v27 = vld [vmem:[#allocation2 + $0x1e4] ss:$8 sps:$4 sm:$0xff]  }
 0x626   :  { %4741 = vmatpush3.bf16.msra.mxu0 %v5228_v3  ;;  %2182 = vmatprep.mubr.bf16.mxu0 %v2046_v6  ;;  %v5281_v3 = vld [vmem:[#allocation2 + $0x1c0] ss:$8 sps:$4 sm:$0xff]   ;;  %v5286_v6 = vld [vmem:[#allocation2 + $0x1d4] ss:$8 sps:$4 sm:$0xff]  }
 0x627   :  { %4742 = vmatprep.subr.bf16.mxu0 %v5229_v2  ;;  %v5284_v2 = vld [vmem:[#allocation2 + $0x1d0] ss:$8 sps:$4 sm:$0xff]  }
 0x62a   :  { %4743 = vmatpush3.bf16.msra.mxu0 %v5230_v18  ;;  %v5287_v18 = vld [vmem:[#allocation2 + $0x1e0] ss:$8 sps:$4 sm:$0xff]  }
 0x62b   :  { %4744 = vmatprep.subr.bf16.mxu0 %v5231_v19  ;;  %v5292_v19 = vld [vmem:[#allocation2 + $0x1f4] ss:$8 sps:$4 sm:$0xff]  }
 0x62e   :  { %4745 = vmatpush3.bf16.msra.mxu0 %v5232_v40  ;;  %v5290_v40 = vld [vmem:[#allocation2 + $0x1f0] ss:$8 sps:$4 sm:$0xff]  }
 0x62f   :  { %4746 = vmatprep.subr.bf16.mxu0 %v5233_v21  ;;  %v5295_v21 = vld [vmem:[#allocation2 + $0x204] ss:$8 sps:$4 sm:$0xff]  }
 0x632   :  { %4747 = vmatpush3.bf16.msra.mxu0 %v5234_v15  ;;  %v5298_v15 = vld [vmem:[#allocation2 + $0x214] ss:$8 sps:$4 sm:$0xff]  }
 0x633   :  { %4748 = vmatprep.subr.bf16.mxu0 %v5235_v12  ;;  %v5296_v12 = vld [vmem:[#allocation2 + $0x210] ss:$8 sps:$4 sm:$0xff]  }
 0x636   :  { %4749 = vmatpush3.bf16.msra.mxu0 %v5236_v58  ;;  %v5301_v58 = vld [vmem:[#allocation2 + $0x224] ss:$8 sps:$4 sm:$0xff]  }
 0x637   :  { %4750 = vmatprep.subr.bf16.mxu0 %v5237_v35  ;;  %v5299_v35 = vld [vmem:[#allocation2 + $0x220] ss:$8 sps:$4 sm:$0xff]  }
 0x63a   :  { %4751 = vmatpush3.bf16.msra.mxu0 %v5238_v25  ;;  %v5304_v25 = vld [vmem:[#allocation2 + $0x234] ss:$8 sps:$4 sm:$0xff]  }
 0x63b   :  { %4752 = vmatprep.subr.bf16.mxu0 %v5239_v26  ;;  %v5302_v26 = vld [vmem:[#allocation2 + $0x230] ss:$8 sps:$4 sm:$0xff]  }
 0x63e   :  { %4753 = vmatpush3.bf16.msra.mxu0 %v5240_v52  ;;  %v5307_v52 = vld [vmem:[#allocation2 + $0x244] ss:$8 sps:$4 sm:$0xff]  }
 0x63f   :  { %4754 = vmatprep.subr.bf16.mxu0 %v5241_v32  ;;  %v5305_v32 = vld [vmem:[#allocation2 + $0x240] ss:$8 sps:$4 sm:$0xff]  }
 0x642   :  { %4755 = vmatpush3.bf16.msra.mxu0 %v5242_v8  ;;  %v5310_v8 = vld [vmem:[#allocation2 + $0x254] ss:$8 sps:$4 sm:$0xff]  }
 0x645   :  { %2183 = vmatmul.mubr.bf16.vlgmr.msra.gmra.mrb[76].mxu0 %v2045_v44  ;;  %v5313_v44 = vld [vmem:[#allocation2 + $0x264] ss:$8 sps:$4 sm:$0xff]  }
 0x6f4   :  { %v1735_v47 = vpop.f32.mrb[70].mxu0 }
 0x6f5   :  { %v5034_v39 = vpop.f32.mrb[71].mxu0 }
 0x6f6   :  { %v5328_v39 = vld [vmem:[#allocation2 + $0x2b4] ss:$8 sps:$4 sm:$0xff]  }
 0x6f8   :  { %v1808_v46 = vpop.f32.mrb[72].mxu0 }
 0x6f9   :  { %5605 = vrcp.f32 %v1808_v46  ;;  %v5039_v1 = vpop.f32.mrb[73].mxu0  ;;  %v5326_v46 = vld [vmem:[#allocation2 + $0x2b0] ss:$8 sps:$4 sm:$0xff]  }
 0x6fa   :  { %v5331_v1 = vld [vmem:[#allocation2 + $0x2c4] ss:$8 sps:$4 sm:$0xff]  }
 0x703   :  { %v5606_v5 = vpop.eup %5605 }
 0x704   :  { %v1813_v53 = vmul.f32 %v5606_v5, %v1735_v47  ;;  %v5325_v47 = vld [vmem:[#allocation2 + $0x2a4] ss:$8 sps:$4 sm:$0xff]   ;;  %v5329_v5 = vld [vmem:[#allocation2 + $0x2c0] ss:$8 sps:$4 sm:$0xff]  }
 0x705   :  { %2529 = vmatprep.subr.bf16.mxu0 %v5325_v47 }
 0x706   :  { %v1830_v59 = vpack.c.bf16 %v1813_v53, %v1813_v53  ;;  %2530 = vmatpush1.bf16.msra.mxu0 %v5323_v36  ;;  %v5334_v53 = vld [vmem:[#allocation2 + $0x2d4] ss:$8 sps:$4 sm:$0xff]  }
 0x707   :  { %2531 = vmatprep.subr.bf16.mxu0 %v5328_v39 }
 0x708   :  { %1956 = vmatmul.mubr.bf16.vlgmr.msra.gmra.mrb[52].mxu1 %v1830_v59  ;;  %v5337_v59 = vld [vmem:[#allocation2 + $0x2e4] ss:$8 sps:$4 sm:$0xff]  }
 0x709   :  { %5041 = vmatpush3.bf16.msra.mxu1 %v5267_v42  ;;  %5056 = vmatprep.mubr.msk.bf16.mxu1 %vm5769_vm1, %v5768_v24  ;;  %v5332_v42 = vld [vmem:[#allocation2 + $0x2d0] ss:$8 sps:$4 sm:$0xff]  }
 0x70a   :  { %5042 = vmatprep.subr.bf16.mxu1 %v5768_v24  ;;  %2532 = vmatpush1.bf16.msra.mxu0 %v5326_v46  ;;  %v1983_v46 = vld [vmem:[#allocation6 + $0x9] sm:$0x3] }
 0x70b   :  { %2533 = vmatprep.subr.bf16.mxu0 %v5331_v1  ;;  %v1997_v1 = vld [vmem:[#allocation6 + $0xb] sm:$0x3] }
 0x70d   :  { %5043 = vmatpush3.bf16.msra.mxu1 %v5268_v45  ;;  %v5335_v45 = vld [vmem:[#allocation2 + $0x2e0] ss:$8 sps:$4 sm:$0xff]  }
 0x70e   :  { %5044 = vmatprep.subr.bf16.mxu1 %v5768_v24  ;;  %2534 = vmatpush1.bf16.msra.mxu0 %v5329_v5 }
 0x70f   :  { %2535 = vmatprep.subr.bf16.mxu0 %v5334_v53 }
 0x711   :  { %5045 = vmatpush3.bf16.msra.mxu1 %v5269_v50  ;;  %v5338_v50 = vld [vmem:[#allocation2 + $0x2f0] ss:$8 sps:$4 sm:$0xff]  }
 0x712   :  { %5046 = vmatprep.subr.bf16.mxu1 %v5768_v24  ;;  %2536 = vmatpush1.bf16.msra.mxu0 %v5332_v42  ;;  %v1988_v42 = vrot.slane %v1983_v46, %v6019_v11 }
 0x713   :  { %2537 = vmatprep.subr.bf16.mxu0 %v5337_v59  ;;  %v1992_v59 = vrot.slane %v1983_v46, %v6022_v13 }
 0x715   :  { %5047 = vmatpush3.bf16.msra.mxu1 %v5270_v7  ;;  %v5343_v7 = vld [vmem:[#allocation2 + $0x304] ss:$8 sps:$4 sm:$0xff]  }
 0x716   :  { %5048 = vmatprep.subr.bf16.mxu1 %v5768_v24  ;;  %2538 = vmatpush1.bf16.msra.mxu0 %v5335_v45 }
 0x718   :  { %v4756_v56 = vpop.f32.mrb[76].mxu0 }
 0x719   :  { %5049 = vmatpush3.bf16.msra.mxu1 %v5271_v55  ;;  %v4757_v51 = vpop.f32.mrb[77].mxu0  ;;  %v1831_v55 = vld [vmem:[#allocation6 + $0x7] sm:$0x3] }
 0x71a   :  { %5050 = vmatprep.subr.bf16.mxu1 %v5768_v24  ;;  %v4758_v17 = vadd.f32 %v4757_v51, %v4756_v56  ;;  %v4759_v14 = vpop.f32.mrb[78].mxu0  ;;  %v5341_v56 = vld [vmem:[#allocation2 + $0x300] ss:$8 sps:$4 sm:$0xff]   ;;  %v1840_v51 = vrot.slane %v1831_v55, %v6022_v13 }
 0x71b   :  { %v4760_v16 = vpop.f32.mrb[79].mxu0  ;;  %v5349_v14 = vld [vmem:[#allocation2 + $0x324] ss:$8 sps:$4 sm:$0xff]  }
 0x71c   :  { %v2185_v49 = vadd.f32 %v4758_v17, %v4388_v62  ;;  %v1836_v62 = vrot.slane %v1831_v55, %v6019_v11  ;;  %v5344_v17 = vld [vmem:[#allocation2 + $0x310] ss:$8 sps:$4 sm:$0xff]  }
 0x71d   :  { %5051 = vmatpush3.bf16.msra.mxu1 %v5272_v48  ;;  %v5346_v48 = vld [vmem:[#allocation2 + $0x314] ss:$8 sps:$4 sm:$0xff]  }
 0x71e   :  { %5052 = vmatprep.subr.bf16.mxu1 %v5768_v24  ;;  %v2190_v38 = vmax.f32 %v2185_v49, 0.0 }
 0x720   :  { %v2207_v4 = vpack.c.bf16 %v2190_v38, %v2190_v38 }
 0x721   :  { %5053 = vmatpush3.bf16.msra.mxu1 %v5273_v54 }
 0x722   :  { %5054 = vmatprep.subr.bf16.mxu1 %v5768_v24 }
 0x725   :  { %5055 = vmatpush3.bf16.msra.mxu1 %v5274_v57 }
 0x726   :  { %2730 = vmatprep.subr.bf16.mxu1 %v5277_v33  ;;  %v5347_v33 = vld [vmem:[#allocation2 + $0x320] ss:$8 sps:$4 sm:$0xff]  }
 0x728   :  { %5057 = vmatmul.mubr.bf16.vlgmr.msra.gmra.mrb[56].mxu1 %v2207_v4 }
 0x729   :  { %2731 = vmatpush1.bf16.msra.mxu1 %v5275_v20  ;;  %2762 = vmatprep.mubr.bf16.mxu1 %v6093_v22  ;;  %v5293_v22 = vld [vmem:[#allocation2 + $0x200] ss:$8 sps:$4 sm:$0xff]  }
 0x72a   :  { %2732 = vmatprep.subr.bf16.mxu1 %v5280_v37 }
 0x72d   :  { %2733 = vmatpush1.bf16.msra.mxu1 %v5278_v60 }
 0x72e   :  { %2734 = vmatprep.subr.bf16.mxu1 %v5283_v63 }
 0x731   :  { %2735 = vmatpush1.bf16.msra.mxu1 %v5281_v3  ;;  %v5350_v3 = vld [vmem:[#allocation2 + $0x330] ss:$8 sps:$4 sm:$0xff]  }
 0x732   :  { %2736 = vmatprep.subr.bf16.mxu1 %v5286_v6  ;;  %v5352_v6 = vld [vmem:[#allocation2 + $0x334] ss:$8 sps:$4 sm:$0xff]  }
 0x735   :  { %2737 = vmatpush1.bf16.msra.mxu1 %v5284_v2  ;;  %v5355_v2 = vld [vmem:[#allocation2 + $0x344] ss:$8 sps:$4 sm:$0xff]  }
 0x736   :  { %2738 = vmatprep.subr.bf16.mxu1 %v5289_v27  ;;  %v5353_v27 = vld [vmem:[#allocation2 + $0x340] ss:$8 sps:$4 sm:$0xff]  }
 0x739   :  { %2739 = vmatpush1.bf16.msra.mxu1 %v5287_v18  ;;  %v5358_v18 = vld [vmem:[#allocation2 + $0x354] ss:$8 sps:$4 sm:$0xff]  }
 0x73a   :  { %2740 = vmatprep.subr.bf16.mxu1 %v5292_v19  ;;  %v5356_v19 = vld [vmem:[#allocation2 + $0x350] ss:$8 sps:$4 sm:$0xff]  }
 0x73d   :  { %2741 = vmatpush1.bf16.msra.mxu1 %v5290_v40 }
 0x73e   :  { %2742 = vmatprep.subr.bf16.mxu1 %v5295_v21  ;;  %v5361_v21 = vld [vmem:[#allocation2 + $0x364] ss:$8 sps:$4 sm:$0xff]  }
 0x741   :  { %2743 = vmatpush1.bf16.msra.mxu1 %v5293_v22 }
 0x742   :  { %2744 = vmatprep.subr.bf16.mxu1 %v5298_v15 }
 0x745   :  { %2745 = vmatpush1.bf16.msra.mxu1 %v5296_v12 }
 0x746   :  { %2746 = vmatprep.subr.bf16.mxu1 %v5301_v58  ;;  %v5359_v58 = vld [vmem:[#allocation2 + $0x360] ss:$8 sps:$4 sm:$0xff]  }
 0x749   :  { %2747 = vmatpush1.bf16.msra.mxu1 %v5299_v35  ;;  %v5364_v35 = vld [vmem:[#allocation2 + $0x374] ss:$8 sps:$4 sm:$0xff]  }
 0x74a   :  { %2748 = vmatprep.subr.bf16.mxu1 %v5304_v25  ;;  %v5362_v25 = vld [vmem:[#allocation2 + $0x370] ss:$8 sps:$4 sm:$0xff]  }
 0x74d   :  { %2749 = vmatpush1.bf16.msra.mxu1 %v5302_v26  ;;  %v5367_v26 = vld [vmem:[#allocation2 + $0x384] ss:$8 sps:$4 sm:$0xff]  }
 0x74e   :  { %2750 = vmatprep.subr.bf16.mxu1 %v5307_v52  ;;  %v5365_v52 = vld [vmem:[#allocation2 + $0x380] ss:$8 sps:$4 sm:$0xff]  }
 0x751   :  { %2751 = vmatpush1.bf16.msra.mxu1 %v5305_v32  ;;  %v5370_v32 = vld [vmem:[#allocation2 + $0x394] ss:$8 sps:$4 sm:$0xff]  }
 0x752   :  { %2752 = vmatprep.subr.bf16.mxu1 %v5310_v8  ;;  %v5368_v8 = vld [vmem:[#allocation2 + $0x390] ss:$8 sps:$4 sm:$0xff]  }
 0x755   :  { %2753 = vmatpush1.bf16.msra.mxu1 %v5308_v29  ;;  %v5373_v29 = vld [vmem:[#allocation2 + $0x3a4] ss:$8 sps:$4 sm:$0xff]  }
 0x756   :  { %2754 = vmatprep.subr.bf16.mxu1 %v5313_v44 }
 0x759   :  { %2755 = vmatpush1.bf16.msra.mxu1 %v5311_v30 }
 0x75a   :  { %2756 = vmatprep.subr.bf16.mxu1 %v5316_v28 }
 0x75d   :  { %2757 = vmatpush1.bf16.msra.mxu1 %v5314_v43 }
 0x75e   :  { %2758 = vmatprep.subr.bf16.mxu1 %v5319_v31 }
 0x761   :  { %2759 = vmatpush1.bf16.msra.mxu1 %v5317_v61 }
 0x762   :  { %2760 = vmatprep.subr.bf16.mxu1 %v5322_v34 }
 0x765   :  { %2761 = vmatpush1.bf16.msra.mxu1 %v5320_v41 }
 0x768   :  { %2763 = vmatmul.mubr.bf16.vlgmr.msra.gmra.mrb[60].mxu1 %v6095_v23  ;;  %v5340_v23 = vld [vmem:[#allocation2 + $0x2f4] ss:$8 sps:$4 sm:$0xff]  }
 0x769   :  { %2539 = vmatprep.subr.bf16.mxu0 %v5340_v23 }
 0x76a   :  { %2540 = vmatpush1.bf16.msra.mxu0 %v5338_v50  ;;  %v2002_v50 = vrot.slane %v1997_v1, %v6019_v11 }
 0x76b   :  { %2541 = vmatprep.subr.bf16.mxu0 %v5343_v7  ;;  %v2006_v7 = vrot.slane %v1997_v1, %v6022_v13 }
 0x76e   :  { %2542 = vmatpush1.bf16.msra.mxu0 %v5341_v56 }
 0x76f   :  { %2543 = vmatprep.subr.bf16.mxu0 %v5346_v48 }
 0x772   :  { %2544 = vmatpush1.bf16.msra.mxu0 %v5344_v17 }
 0x773   :  { %2545 = vmatprep.subr.bf16.mxu0 %v5349_v14  ;;  %v5371_v14 = vld [vmem:[#allocation2 + $0x3a0] ss:$8 sps:$4 sm:$0xff]  }
 0x776   :  { %2546 = vmatpush1.bf16.msra.mxu0 %v5347_v33  ;;  %v5382_v33 = vld [vmem:[#allocation2 + $0x3d4] ss:$8 sps:$4 sm:$0xff]  }
 0x777   :  { %2547 = vmatprep.subr.bf16.mxu0 %v5352_v6  ;;  %v4405_v6 = vld [vmem:[#allocation6 + $0xe] ss:$0 sm:$0xff] }
 0x77a   :  { %2548 = vmatpush1.bf16.msra.mxu0 %v5350_v3  ;;  %v5391_v3 = vld [vmem:[#allocation2 + $0x404] ss:$8 sps:$4 sm:$0xff]  }
 0x77b   :  { %2549 = vmatprep.subr.bf16.mxu0 %v5355_v2  ;;  %v5394_v2 = vld [vmem:[#allocation2 + $0x414] ss:$8 sps:$4 sm:$0xff]  }
 0x77e   :  { %2550 = vmatpush1.bf16.msra.mxu0 %v5353_v27 }
 0x77f   :  { %2551 = vmatprep.subr.bf16.mxu0 %v5358_v18  ;;  %v5392_v18 = vld [vmem:[#allocation2 + $0x410] ss:$8 sps:$4 sm:$0xff]  }
 0x782   :  { %2552 = vmatpush1.bf16.msra.mxu0 %v5356_v19 }
 0x783   :  { %2553 = vmatprep.subr.bf16.mxu0 %v5361_v21  ;;  %v5395_v21 = vld [vmem:[#allocation2 + $0x420] ss:$8 sps:$4 sm:$0xff]  }
 0x786   :  { %2554 = vmatpush1.bf16.msra.mxu0 %v5359_v58  ;;  %v5403_v58 = vld [vmem:[#allocation2 + $0x444] ss:$8 sps:$4 sm:$0xff]  }
 0x787   :  { %2555 = vmatprep.subr.bf16.mxu0 %v5364_v35  ;;  %v5401_v35 = vld [vmem:[#allocation2 + $0x440] ss:$8 sps:$4 sm:$0xff]  }
 0x78a   :  { %2556 = vmatpush1.bf16.msra.mxu0 %v5362_v25  ;;  %v5406_v25 = vld [vmem:[#allocation2 + $0x454] ss:$8 sps:$4 sm:$0xff]  }
 0x78b   :  { %2557 = vmatprep.subr.bf16.mxu0 %v5367_v26  ;;  %v5409_v26 = vld [vmem:[#allocation2 + $0x464] ss:$8 sps:$4 sm:$0xff]  }
 0x78e   :  { %2558 = vmatpush1.bf16.msra.mxu0 %v5365_v52  ;;  %v5407_v52 = vld [vmem:[#allocation2 + $0x460] ss:$8 sps:$4 sm:$0xff]  }
 0x78f   :  { %2559 = vmatprep.subr.bf16.mxu0 %v5370_v32  ;;  %v5412_v32 = vld [vmem:[#allocation2 + $0x474] ss:$8 sps:$4 sm:$0xff]  }
 0x792   :  { %2560 = vmatpush1.bf16.msra.mxu0 %v5368_v8  ;;  %v5410_v8 = vld [vmem:[#allocation2 + $0x470] ss:$8 sps:$4 sm:$0xff]  }
 0x793   :  { %2868 = vmatprep.subr.bf16.mxu0 %v5373_v29  ;;  %v5415_v29 = vld [vmem:[#allocation2 + $0x484] ss:$8 sps:$4 sm:$0xff]  }
 0x7db   :  { %v1957_v16 = vpop.f32.mrb[52].mxu1 }
 0x7dc   :  { %v6565_v49 = vadd.f32 %v1957_v16, %v1836_v62  ;;  %v1959_v54 = vpop.f32.mrb[53].mxu1 }
 0x7dd   :  { %v6567_v38 = vadd.f32 %v1959_v54, %v1840_v51  ;;  %v1961_v57 = vpop.f32.mrb[54].mxu1  ;;  %v5374_v54 = vld [vmem:[#allocation2 + $0x3b0] ss:$8 sps:$4 sm:$0xff]  }
 0x7de   :  { %v1962_v4 = vpop.f32.mrb[55].mxu1  ;;  %v1969_v37 = vmul.f32 %v6565_v49, %v6565_v49  ;;  %v5377_v57 = vld [vmem:[#allocation2 + $0x3c0] ss:$8 sps:$4 sm:$0xff]  }
 0x7df   :  { %v1964_v20 = vadd.f32 %v6567_v38, %v6565_v49  ;;  %v1970_v60 = vmul.f32 %v6567_v38, %v6567_v38  ;;  %v5380_v4 = vld [vmem:[#allocation2 + $0x3d0] ss:$8 sps:$4 sm:$0xff]  }
 0x7e1   :  { %1965 = vadd.xlane.f32.xlu0 %v1964_v20  ;;  %v1971_v63 = vadd.f32 %v1970_v60, %v1969_v37  ;;  %v5385_v20 = vld [vmem:[#allocation2 + $0x3e4] ss:$8 sps:$4 sm:$0xff]   ;;  %v5383_v37 = vld [vmem:[#allocation2 + $0x3e0] ss:$8 sps:$4 sm:$0xff]   ;;  %v5388_v60 = vld [vmem:[#allocation2 + $0x3f4] ss:$8 sps:$4 sm:$0xff]  }
 0x7e5   :  { %1972 = vadd.xlane.f32.xlu0 %v1971_v63  ;;  %v5386_v63 = vld [vmem:[#allocation2 + $0x3f0] ss:$8 sps:$4 sm:$0xff]  }
 0x7fb   :  { %v6575_v40 = vpop.f32.mrb[56].mxu1 }
 0x7fc   :  { %v5058_v22 = vpop.f32.mrb[57].mxu1  ;;  %v2298_v27 = vadd.f32 %v4405_v6, %v6575_v40  ;;  %v5404_v40 = vld [vmem:[#allocation2 + $0x450] ss:$8 sps:$4 sm:$0xff]   ;;  %v5442_v6 = vld [vmem:[#allocation2 + $0x514] ss:$8 sps:$4 sm:$0xff]  }
 0x7fd   :  { %v2300_v15 = vpop.f32.mrb[58].mxu1  ;;  %v5397_v22 = vld [vmem:[#allocation2 + $0x424] ss:$8 sps:$4 sm:$0xff]  }
 0x7fe   :  { %v5059_v12 = vpop.f32.mrb[59].mxu1  ;;  %v2787_v19 = vpack.c.bf16 %v2298_v27, %v2298_v27  ;;  %v5400_v15 = vld [vmem:[#allocation2 + $0x434] ss:$8 sps:$4 sm:$0xff]   ;;  %3179 = vmatprep.subr.bf16.mxu1 %v5397_v22 }
 0x7ff   :  { %3180 = vmatpush1.bf16.msra.mxu1 %v5395_v21  ;;  %v5398_v12 = vld [vmem:[#allocation2 + $0x430] ss:$8 sps:$4 sm:$0xff]  }
 0x800   :  { %3181 = vmatprep.subr.bf16.mxu1 %v5400_v15 }
 0x803   :  { %3182 = vmatpush1.bf16.msra.mxu1 %v5398_v12  ;;  %v2945_v12 = vld [vmem:[#allocation6 + $0x11] sm:$0x3] }
 0x804   :  { %3183 = vmatprep.subr.bf16.mxu1 %v5403_v58  ;;  %v2959_v58 = vld [vmem:[#allocation6 + $0x13] sm:$0x3] }
 0x807   :  { %3184 = vmatpush1.bf16.msra.mxu1 %v5401_v35 }
 0x808   :  { %3185 = vmatprep.subr.bf16.mxu1 %v5406_v25 }
 0x80b   :  { %3186 = vmatpush1.bf16.msra.mxu1 %v5404_v40  ;;  %v2950_v40 = vrot.slane %v2945_v12, %v6019_v11 }
 0x80c   :  { %3187 = vmatprep.subr.bf16.mxu1 %v5409_v26  ;;  %v2954_v26 = vrot.slane %v2945_v12, %v6022_v13  ;;  %v5482_v12 = vld [vmem:[#allocation2 + $0x5f0] ss:$8 sps:$4 sm:$0xff]  }
 0x80f   :  { %3188 = vmatpush1.bf16.msra.mxu1 %v5407_v52 }
 0x810   :  { %3189 = vmatprep.subr.bf16.mxu1 %v5412_v32 }
 0x813   :  { %3190 = vmatpush1.bf16.msra.mxu1 %v5410_v8  ;;  %v2964_v8 = vrot.slane %v2959_v58, %v6019_v11 }
 0x814   :  { %3191 = vmatprep.subr.bf16.mxu1 %v5415_v29  ;;  %v2968_v29 = vrot.slane %v2959_v58, %v6022_v13  ;;  %v5487_v58 = vld [vmem:[#allocation2 + $0x604] ss:$8 sps:$4 sm:$0xff]  }
 0x83b   :  { %v6577_v44 = vpop.f32.mrb[60].mxu1 }
 0x83c   :  { %v6579_v30 = vpop.f32.mrb[61].mxu1 }
 0x83d   :  { %v2768_v28 = vpop.f32.mrb[62].mxu1 }
 0x83e   :  { %v2769_v43 = vpop.f32.mrb[63].mxu1  ;;  %v5413_v28 = vld [vmem:[#allocation2 + $0x480] ss:$8 sps:$4 sm:$0xff]  }
 0x83f   :  { %v5418_v43 = vld [vmem:[#allocation2 + $0x494] ss:$8 sps:$4 sm:$0xff]   ;;  %3192 = vmatpush1.bf16.msra.mxu1 %v5413_v28 }
 0x840   :  { %3193 = vmatprep.subr.bf16.mxu1 %v5418_v43 }
 0x86e   :  { %v1966_v31 = vpop.xlane.xlu0 %1965 }
 0x86f   :  { %v1968_v61 = vmul.f32 0.00390625, %v1966_v31  ;;  %v5416_v31 = vld [vmem:[#allocation2 + $0x490] ss:$8 sps:$4 sm:$0xff]  }
 0x870   :  { %3194 = vmatpush1.bf16.msra.mxu1 %v5416_v31 }
 0x871   :  { %v1975_v41 = vmul.f32 %v1968_v61, %v1968_v61  ;;  %v1977_v5 = vsub.f32 %v6565_v49, %v1968_v61  ;;  %v1978_v53 = vsub.f32 %v6567_v38, %v1968_v61  ;;  %v5376_v49 = vld [vmem:[#allocation2 + $0x3b4] ss:$8 sps:$4 sm:$0xff]   ;;  %v5379_v38 = vld [vmem:[#allocation2 + $0x3c4] ss:$8 sps:$4 sm:$0xff]  }
 0x872   :  { %v1973_v34 = vpop.xlane.xlu0 %1972  ;;  %v5421_v61 = vld [vmem:[#allocation2 + $0x4a4] ss:$8 sps:$4 sm:$0xff]  }
 0x873   :  { %v1974_v36 = vmul.f32 0.00390625, %v1973_v34  ;;  %v5419_v34 = vld [vmem:[#allocation2 + $0x4a0] ss:$8 sps:$4 sm:$0xff]   ;;  %3195 = vmatprep.subr.bf16.mxu1 %v5421_v61 }
 0x874   :  { %3196 = vmatpush1.bf16.msra.mxu1 %v5419_v34 }
 0x875   :  { %v1976_v47 = vsub.f32 %v1974_v36, %v1975_v41 }
 0x877   :  { %v1979_v39 = vadd.f32 1e-05, %v1976_v47 }
 0x879   :  { %5607 = vrsqrt.f32 %v1979_v39 }
 0x883   :  { %v5608_v45 = vpop.eup %5607 }
 0x884   :  { %v1982_v23 = vmul.f32 %v5608_v45, %v1978_v53  ;;  %v1981_v55 = vmul.f32 %v5608_v45, %v1977_v5  ;;  %v2911_v5 = vld [vmem:[#allocation6 + $0xf] sm:$0x3] }
 0x885   :  { %v2916_v53 = vrot.slane %v2911_v5, %v6019_v11 }
 0x886   :  { %v1996_v56 = vmul.f32 %v1992_v59, %v1982_v23  ;;  %v1995_v48 = vmul.f32 %v1988_v42, %v1981_v55  ;;  %v2920_v59 = vrot.slane %v2911_v5, %v6022_v13  ;;  %v5451_v5 = vld [vmem:[#allocation2 + $0x544] ss:$8 sps:$4 sm:$0xff]  }
 0x888   :  { %v2010_v62 = vadd.f32 %v2006_v7, %v1996_v56  ;;  %v2009_v51 = vadd.f32 %v2002_v50, %v1995_v48 }
 0x88a   :  { %v2368_v17 = vpack.c.bf16 %v2010_v62, %v2010_v62  ;;  %v2367_v16 = vpack.c.bf16 %v2009_v51, %v2009_v51 }
 0x88c   :  { %2561 = vmatprep.mubr.bf16.mxu0 %v2368_v17 }
 0x88d   :  { %2562 = vmatmul.mubr.bf16.vlgmr.msra.gmra.mrb[80].mxu0 %v2367_v16  ;;  %v5422_v16 = vld [vmem:[#allocation2 + $0x4b0] ss:$8 sps:$4 sm:$0xff]  }
 0x88e   :  { %2869 = vmatpush1.bf16.msra.mxu0 %v5371_v14  ;;  %2900 = vmatprep.mubr.bf16.mxu0 %v5767_v0  ;;  %v5389_v0 = vld [vmem:[#allocation2 + $0x400] ss:$8 sps:$4 sm:$0xff]  }
 0x88f   :  { %2870 = vmatprep.subr.bf16.mxu0 %v5376_v49  ;;  %v5424_v49 = vld [vmem:[#allocation2 + $0x4b4] ss:$8 sps:$4 sm:$0xff]  }
 0x890   :  { %3197 = vmatprep.subr.bf16.mxu1 %v5424_v49 }
 0x891   :  { %3198 = vmatpush1.bf16.msra.mxu1 %v5422_v16 }
 0x892   :  { %2871 = vmatpush1.bf16.msra.mxu0 %v5374_v54  ;;  %v5427_v54 = vld [vmem:[#allocation2 + $0x4c4] ss:$8 sps:$4 sm:$0xff]  }
 0x893   :  { %2872 = vmatprep.subr.bf16.mxu0 %v5379_v38  ;;  %v5425_v38 = vld [vmem:[#allocation2 + $0x4c0] ss:$8 sps:$4 sm:$0xff]   ;;  %3199 = vmatprep.subr.bf16.mxu1 %v5427_v54 }
 0x895   :  { %3200 = vmatpush1.bf16.msra.mxu1 %v5425_v38 }
 0x896   :  { %2873 = vmatpush1.bf16.msra.mxu0 %v5377_v57  ;;  %v5430_v57 = vld [vmem:[#allocation2 + $0x4d4] ss:$8 sps:$4 sm:$0xff]  }
 0x897   :  { %2874 = vmatprep.subr.bf16.mxu0 %v5382_v33  ;;  %v5428_v33 = vld [vmem:[#allocation2 + $0x4d0] ss:$8 sps:$4 sm:$0xff]   ;;  %3201 = vmatprep.subr.bf16.mxu1 %v5430_v57 }
 0x899   :  { %3202 = vmatpush1.bf16.msra.mxu1 %v5428_v33 }
 0x89a   :  { %2875 = vmatpush1.bf16.msra.mxu0 %v5380_v4  ;;  %v5433_v4 = vld [vmem:[#allocation2 + $0x4e4] ss:$8 sps:$4 sm:$0xff]  }
 0x89b   :  { %2876 = vmatprep.subr.bf16.mxu0 %v5385_v20  ;;  %v5431_v20 = vld [vmem:[#allocation2 + $0x4e0] ss:$8 sps:$4 sm:$0xff]   ;;  %3203 = vmatprep.subr.bf16.mxu1 %v5433_v4 }
 0x89d   :  { %3204 = vmatpush1.bf16.msra.mxu1 %v5431_v20 }
 0x89e   :  { %2877 = vmatpush1.bf16.msra.mxu0 %v5383_v37  ;;  %v5436_v37 = vld [vmem:[#allocation2 + $0x4f4] ss:$8 sps:$4 sm:$0xff]  }
 0x89f   :  { %2878 = vmatprep.subr.bf16.mxu0 %v5388_v60  ;;  %v5434_v60 = vld [vmem:[#allocation2 + $0x4f0] ss:$8 sps:$4 sm:$0xff]   ;;  %3205 = vmatprep.subr.bf16.mxu1 %v5436_v37 }
 0x8a1   :  { %3206 = vmatpush1.bf16.msra.mxu1 %v5434_v60 }
 0x8a2   :  { %2879 = vmatpush1.bf16.msra.mxu0 %v5386_v63  ;;  %v5439_v63 = vld [vmem:[#allocation2 + $0x504] ss:$8 sps:$4 sm:$0xff]  }
 0x8a3   :  { %2880 = vmatprep.subr.bf16.mxu0 %v5391_v3  ;;  %v5437_v3 = vld [vmem:[#allocation2 + $0x500] ss:$8 sps:$4 sm:$0xff]   ;;  %3207 = vmatprep.subr.bf16.mxu1 %v5439_v63 }
 0x8a5   :  { %3208 = vmatpush1.bf16.msra.mxu1 %v5437_v3 }
 0x8a6   :  { %2881 = vmatpush1.bf16.msra.mxu0 %v5389_v0  ;;  %v5440_v0 = vld [vmem:[#allocation2 + $0x510] ss:$8 sps:$4 sm:$0xff]   ;;  %3209 = vmatprep.subr.bf16.mxu1 %v5442_v6 }
 0x8a7   :  { %2882 = vmatprep.subr.bf16.mxu0 %v5394_v2  ;;  %v5470_v6 = vld [vmem:[#allocation2 + $0x5b0] ss:$8 sps:$4 sm:$0xff]  }
 0x8a9   :  { %3210 = vmatpush1.bf16.msra.mxu1 %v5440_v0  ;;  %v5472_v0 = vld [vmem:[#allocation2 + $0x5b4] ss:$8 sps:$4 sm:$0xff]  }
 0x8aa   :  { %2883 = vmatpush1.bf16.msra.mxu0 %v5392_v18 }
 0x8ad   :  { %2901 = vmatmul.mubr.bf16.vlgmr.msra.gmra.mrb[84].mxu0 %v2787_v19 }
 0x960   :  { %v2563_v41 = vpop.f32.mrb[80].mxu0 }
 0x961   :  { %v2765_v36 = vadd.f32 %v6577_v44, %v2563_v41  ;;  %v2565_v47 = vpop.f32.mrb[81].mxu0 }
 0x962   :  { %v2767_v39 = vadd.f32 %v6579_v30, %v2565_v47  ;;  %v2567_v46 = vpop.f32.mrb[82].mxu0  ;;  %v5443_v47 = vld [vmem:[#allocation2 + $0x520] ss:$8 sps:$4 sm:$0xff]  }
 0x963   :  { %v2568_v1 = vpop.f32.mrb[83].mxu0  ;;  %v5448_v46 = vld [vmem:[#allocation2 + $0x534] ss:$8 sps:$4 sm:$0xff]  }
 0x964   :  { %v5446_v1 = vld [vmem:[#allocation2 + $0x530] ss:$8 sps:$4 sm:$0xff]  }
 0x980   :  { %v2902_v42 = vpop.f32.mrb[84].mxu0 }
 0x981   :  { %v2909_v45 = vadd.f32 %v2902_v42, %v2765_v36  ;;  %v2904_v23 = vpop.f32.mrb[85].mxu0  ;;  %v5454_v42 = vld [vmem:[#allocation2 + $0x554] ss:$8 sps:$4 sm:$0xff]  }
 0x982   :  { %v2910_v50 = vadd.f32 %v2904_v23, %v2767_v39  ;;  %v2906_v7 = vpop.f32.mrb[86].mxu0  ;;  %v5445_v39 = vld [vmem:[#allocation2 + $0x524] ss:$8 sps:$4 sm:$0xff]   ;;  %v5455_v23 = vld [vmem:[#allocation2 + $0x560] ss:$8 sps:$4 sm:$0xff]  }
 0x983   :  { %v2923_v55 = vadd.f32 %v2916_v53, %v2909_v45  ;;  %v2907_v56 = vpop.f32.mrb[87].mxu0  ;;  %3474 = vmatprep.subr.bf16.mxu0 %v5445_v39  ;;  %v5449_v53 = vld [vmem:[#allocation2 + $0x540] ss:$8 sps:$4 sm:$0xff]   ;;  %v5457_v45 = vld [vmem:[#allocation2 + $0x564] ss:$8 sps:$4 sm:$0xff]  }
 0x984   :  { %v2924_v48 = vadd.f32 %v2920_v59, %v2910_v50  ;;  %3475 = vmatpush1.bf16.msra.mxu0 %v5443_v47  ;;  %v5452_v59 = vld [vmem:[#allocation2 + $0x550] ss:$8 sps:$4 sm:$0xff]   ;;  %v5460_v50 = vld [vmem:[#allocation2 + $0x574] ss:$8 sps:$4 sm:$0xff]   ;;  %v5461_v56 = vld [vmem:[#allocation2 + $0x580] ss:$8 sps:$4 sm:$0xff]  }
 0x985   :  { %v2925_v62 = vmax.f32 %v2923_v55, 0.0  ;;  %3476 = vmatprep.subr.bf16.mxu0 %v5448_v46  ;;  %v5458_v7 = vld [vmem:[#allocation2 + $0x570] ss:$8 sps:$4 sm:$0xff]   ;;  %v5463_v55 = vld [vmem:[#allocation2 + $0x584] ss:$8 sps:$4 sm:$0xff]  }
 0x986   :  { %v2926_v44 = vmax.f32 %v2924_v48, 0.0  ;;  %v5466_v48 = vld [vmem:[#allocation2 + $0x594] ss:$8 sps:$4 sm:$0xff]  }
 0x987   :  { %v2931_v17 = vmul.f32 %v2925_v62, %v2925_v62 }
 0x988   :  { %v2927_v51 = vadd.f32 %v2926_v44, %v2925_v62  ;;  %v2932_v30 = vmul.f32 %v2926_v44, %v2926_v44  ;;  %3477 = vmatpush1.bf16.msra.mxu0 %v5446_v1 }
 0x989   :  { %3478 = vmatprep.subr.bf16.mxu0 %v5451_v5 }
 0x98a   :  { %2928 = vadd.xlane.f32.xlu1 %v2927_v51  ;;  %v2933_v14 = vadd.f32 %v2932_v30, %v2931_v17  ;;  %v5467_v51 = vld [vmem:[#allocation2 + $0x5a0] ss:$8 sps:$4 sm:$0xff]   ;;  %v3007_v17 = vld [vmem:[#allocation6 + $0x15] sm:$0x3] }
 0x98b   :  { %v3012_v30 = vrot.slane %v3007_v17, %v6019_v11 }
 0x98c   :  { %3479 = vmatpush1.bf16.msra.mxu0 %v5449_v53 }
 0x98d   :  { %3480 = vmatprep.subr.bf16.mxu0 %v5454_v42 }
 0x98e   :  { %2934 = vadd.xlane.f32.xlu1 %v2933_v14  ;;  %v3016_v14 = vrot.slane %v3007_v17, %v6022_v13  ;;  %v5519_v17 = vld [vmem:[#allocation4 + $0x8] ss:$12 sps:$4 sm:$0xff]  }
 0x990   :  { %3481 = vmatpush1.bf16.msra.mxu0 %v5452_v59 }
 0x991   :  { %3482 = vmatprep.subr.bf16.mxu0 %v5457_v45 }
 0x994   :  { %3483 = vmatpush1.bf16.msra.mxu0 %v5455_v23 }
 0x995   :  { %3484 = vmatprep.subr.bf16.mxu0 %v5460_v50 }
 0x998   :  { %3485 = vmatpush1.bf16.msra.mxu0 %v5458_v7 }
 0x999   :  { %3486 = vmatprep.subr.bf16.mxu0 %v5463_v55  ;;  %v5491_v55 = vld [vmem:[#allocation4] ss:$12 sps:$4 sm:$0xff]  }
 0x99c   :  { %3487 = vmatpush1.bf16.msra.mxu0 %v5461_v56  ;;  %v5493_v56 = vld [vmem:[#allocation4 + $0x4] ss:$12 sps:$4 sm:$0xff]  }
 0x99d   :  { %3488 = vmatprep.subr.bf16.mxu0 %v5466_v48  ;;  %v5496_v48 = vld [vmem:[#allocation4 + $0x1c] ss:$12 sps:$4 sm:$0xff]   ;;  %3902 = vmatprep.subr.bf16.mxu1 %v5493_v56 }
 0x99e   :  { %v5553_v56 = vld [vmem:[#allocation4 + $0x170] ss:$12 sps:$4 sm:$0xff]  }
 0xa17   :  { %v2929_v2 = vpop.xlane.xlu1 %2928 }
 0xa18   :  { %v2930_v27 = vmul.f32 0.00390625, %v2929_v2  ;;  %v5475_v2 = vld [vmem:[#allocation2 + $0x5c4] ss:$8 sps:$4 sm:$0xff]  }
 0xa1a   :  { %v2937_v19 = vmul.f32 %v2930_v27, %v2930_v27  ;;  %v2939_v35 = vsub.f32 %v2925_v62, %v2930_v27  ;;  %v2940_v25 = vsub.f32 %v2926_v44, %v2930_v27  ;;  %v5464_v62 = vld [vmem:[#allocation2 + $0x590] ss:$8 sps:$4 sm:$0xff]   ;;  %v5469_v44 = vld [vmem:[#allocation2 + $0x5a4] ss:$8 sps:$4 sm:$0xff]   ;;  %v5473_v27 = vld [vmem:[#allocation2 + $0x5c0] ss:$8 sps:$4 sm:$0xff]  }
 0xa1b   :  { %v2935_v18 = vpop.xlane.xlu1 %2934  ;;  %3489 = vmatpush1.bf16.msra.mxu0 %v5464_v62  ;;  %v5494_v62 = vld [vmem:[#allocation4 + $0x18] ss:$12 sps:$4 sm:$0xff]  }
 0xa1c   :  { %v2936_v21 = vmul.f32 0.00390625, %v2935_v18  ;;  %3490 = vmatprep.subr.bf16.mxu0 %v5469_v44  ;;  %v5478_v18 = vld [vmem:[#allocation2 + $0x5d4] ss:$8 sps:$4 sm:$0xff]  }
 0xa1d   :  { %v5499_v44 = vld [vmem:[#allocation4 + $0x34] ss:$12 sps:$4 sm:$0xff]  }
 0xa1e   :  { %v2938_v22 = vsub.f32 %v2936_v21, %v2937_v19  ;;  %v5476_v19 = vld [vmem:[#allocation2 + $0x5d0] ss:$8 sps:$4 sm:$0xff]   ;;  %v5481_v21 = vld [vmem:[#allocation2 + $0x5e4] ss:$8 sps:$4 sm:$0xff]  }
 0xa1f   :  { %3491 = vmatpush1.bf16.msra.mxu0 %v5467_v51  ;;  %v5518_v51 = vld [vmem:[#allocation4 + $0xc8] ss:$12 sps:$4 sm:$0xff]  }
 0xa20   :  { %v2941_v15 = vadd.f32 1e-05, %v2938_v22  ;;  %3492 = vmatprep.subr.bf16.mxu0 %v5472_v0  ;;  %v5479_v22 = vld [vmem:[#allocation2 + $0x5e0] ss:$8 sps:$4 sm:$0xff]  }
 0xa22   :  { %5609 = vrsqrt.f32 %v2941_v15  ;;  %v5484_v15 = vld [vmem:[#allocation2 + $0x5f4] ss:$8 sps:$4 sm:$0xff]  }
 0xa23   :  { %3493 = vmatpush1.bf16.msra.mxu0 %v5470_v6 }
 0xa24   :  { %3494 = vmatprep.subr.bf16.mxu0 %v5475_v2 }
 0xa27   :  { %3495 = vmatpush1.bf16.msra.mxu0 %v5473_v27 }
 0xa28   :  { %3496 = vmatprep.subr.bf16.mxu0 %v5478_v18 }
 0xa2b   :  { %3497 = vmatpush1.bf16.msra.mxu0 %v5476_v19 }
 0xa2c   :  { %v5610_v52 = vpop.eup %5609  ;;  %3498 = vmatprep.subr.bf16.mxu0 %v5481_v21 }
 0xa2d   :  { %v2944_v32 = vmul.f32 %v5610_v52, %v2940_v25  ;;  %v2943_v28 = vmul.f32 %v5610_v52, %v2939_v35  ;;  %v5485_v35 = vld [vmem:[#allocation2 + $0x600] ss:$8 sps:$4 sm:$0xff]   ;;  %v5490_v25 = vld [vmem:[#allocation2 + $0x614] ss:$8 sps:$4 sm:$0xff]  }
 0xa2f   :  { %v2958_v43 = vmul.f32 %v2954_v26, %v2944_v32  ;;  %v2957_v31 = vmul.f32 %v2950_v40, %v2943_v28  ;;  %3499 = vmatpush1.bf16.msra.mxu0 %v5479_v22  ;;  %v5488_v40 = vld [vmem:[#allocation2 + $0x610] ss:$8 sps:$4 sm:$0xff]  }
 0xa30   :  { %3500 = vmatprep.subr.bf16.mxu0 %v5484_v15 }
 0xa31   :  { %v2972_v61 = vadd.f32 %v2968_v29, %v2958_v43  ;;  %v2971_v34 = vadd.f32 %v2964_v8, %v2957_v31  ;;  %v3240_v31 = vld [vmem:[#allocation6 + $0x17] sm:$0x3] }
 0xa32   :  { %v3249_v47 = vrot.slane %v3240_v31, %v6022_v13 }
 0xa33   :  { %v3006_v41 = vpack.c.bf16 %v2972_v61, %v2972_v61  ;;  %v3005_v36 = vpack.c.bf16 %v2971_v34, %v2971_v34  ;;  %3501 = vmatpush1.bf16.msra.mxu0 %v5482_v12  ;;  %v3254_v61 = vld [vmem:[#allocation6 + $0x19] sm:$0x3] }
 0xa34   :  { %3502 = vmatprep.subr.bf16.mxu0 %v5487_v58  ;;  %v3259_v1 = vrot.slane %v3254_v61, %v6019_v11  ;;  %v3263_v5 = vrot.slane %v3254_v61, %v6022_v13  ;;  %v5532_v61 = vld [vmem:[#allocation4 + $0x10c] ss:$12 sps:$4 sm:$0xff]  }
 0xa35   :  { %3211 = vmatprep.mubr.bf16.mxu1 %v3006_v41 }
 0xa36   :  { %3212 = vmatmul.mubr.bf16.vlgmr.msra.gmra.mrb[64].mxu1 %v3005_v36  ;;  %v3245_v36 = vrot.slane %v3240_v31, %v6019_v11  ;;  %v5529_v31 = vld [vmem:[#allocation4 + $0x38] ss:$12 sps:$4 sm:$0xff]  }
 0xa37   :  { %3503 = vmatpush1.bf16.msra.mxu0 %v5485_v35  ;;  %3903 = vmatpush1.bf16.msra.mxu1 %v5491_v55  ;;  %v5552_v55 = vld [vmem:[#allocation4 + $0x16c] ss:$12 sps:$4 sm:$0xff]  }
 0xa38   :  { %3504 = vmatprep.subr.bf16.mxu0 %v5490_v25  ;;  %3904 = vmatprep.subr.bf16.mxu1 %v5496_v48  ;;  %v5550_v48 = vld [vmem:[#allocation4 + $0x168] ss:$12 sps:$4 sm:$0xff]  }
 0xa3b   :  { %3505 = vmatpush1.bf16.msra.mxu0 %v5488_v40  ;;  %3905 = vmatpush1.bf16.msra.mxu1 %v5494_v62  ;;  %v5554_v62 = vld [vmem:[#allocation4 + $0xb0] ss:$12 sps:$4 sm:$0xff]  }
 0xa3c   :  { %3906 = vmatprep.subr.bf16.mxu1 %v5499_v44  ;;  %4771 = vmatprep.subr.bf16.mxu0 %v5518_v51  ;;  %v5555_v44 = vld [vmem:[%s6714_s4 + $0x180] sm:$0xff]  }
 0xb09   :  { %v3213_v16 = vpop.f32.mrb[64].mxu1 }
 0xb0a   :  { %v3214_v49 = vadd.f32 %v3213_v16, %v3012_v30  ;;  %v3215_v54 = vpop.f32.mrb[65].mxu1  ;;  %v5497_v30 = vld [vmem:[#allocation4 + $0x30] ss:$12 sps:$4 sm:$0xff]   ;;  %v5500_v16 = vld [vmem:[#allocation4 + $0x48] ss:$12 sps:$4 sm:$0xff]  }
 0xb0b   :  { %v3216_v38 = vadd.f32 %v3215_v54, %v3016_v14  ;;  %v3217_v57 = vpop.f32.mrb[66].mxu1  ;;  %v5502_v14 = vld [vmem:[#allocation4 + $0x4c] ss:$12 sps:$4 sm:$0xff]   ;;  %3907 = vmatpush1.bf16.msra.mxu1 %v5497_v30 }
 0xb0c   :  { %v3220_v33 = vmax.f32 %v3214_v49, 0.0  ;;  %v3218_v4 = vpop.f32.mrb[67].mxu1  ;;  %3908 = vmatprep.subr.bf16.mxu1 %v5502_v14  ;;  %v5505_v49 = vld [vmem:[#allocation4 + $0x64] ss:$12 sps:$4 sm:$0xff]   ;;  %v5503_v54 = vld [vmem:[#allocation4 + $0x60] ss:$12 sps:$4 sm:$0xff]  }
 0xb0d   :  { %v3221_v20 = vmax.f32 %v3216_v38, 0.0  ;;  %v5508_v38 = vld [vmem:[#allocation4 + $0x7c] ss:$12 sps:$4 sm:$0xff]   ;;  %v5506_v57 = vld [vmem:[#allocation4 + $0x78] ss:$12 sps:$4 sm:$0xff]  }
 0xb0e   :  { %v3226_v37 = vmul.f32 %v3220_v33, %v3220_v33  ;;  %v5509_v4 = vld [vmem:[#allocation4 + $0x90] ss:$12 sps:$4 sm:$0xff]  }
 0xb0f   :  { %v3222_v60 = vadd.f32 %v3221_v20, %v3220_v33  ;;  %v3227_v63 = vmul.f32 %v3221_v20, %v3221_v20  ;;  %3909 = vmatpush1.bf16.msra.mxu1 %v5500_v16 }
 0xb10   :  { %3910 = vmatprep.subr.bf16.mxu1 %v5505_v49 }
 0xb11   :  { %3223 = vadd.xlane.f32.xlu0 %v3222_v60  ;;  %v3228_v3 = vadd.f32 %v3227_v63, %v3226_v37  ;;  %v5512_v37 = vld [vmem:[#allocation4 + $0xa8] ss:$12 sps:$4 sm:$0xff]   ;;  %v5517_v60 = vld [vmem:[#allocation4 + $0xc4] ss:$12 sps:$4 sm:$0xff]   ;;  %v5515_v63 = vld [vmem:[#allocation4 + $0xc0] ss:$12 sps:$4 sm:$0xff]  }
 0xb13   :  { %3229 = vadd.xlane.f32.xlu1 %v3228_v3  ;;  %3911 = vmatpush1.bf16.msra.mxu1 %v5503_v54  ;;  %v3302_v3 = vld [vmem:[#allocation6 + $0x1b] sm:$0x3] }
 0xb14   :  { %3912 = vmatprep.subr.bf16.mxu1 %v5508_v38  ;;  %v3307_v6 = vrot.slane %v3302_v3, %v6019_v11  ;;  %v3311_v0 = vrot.slane %v3302_v3, %v6022_v13  ;;  %v3535_v38 = vld [vmem:[#allocation6 + $0x1d] sm:$0x3] }
 0xb17   :  { %3913 = vmatpush1.bf16.msra.mxu1 %v5506_v57  ;;  %v3549_v57 = vld [vmem:[#allocation6 + $0x1f] sm:$0x3] }
 0xb18   :  { %v3554_v3 = vrot.slane %v3549_v57, %v6019_v11 }
 0xb9e   :  { %v3224_v26 = vpop.xlane.xlu0 %3223 }
 0xb9f   :  { %v3225_v52 = vmul.f32 0.00390625, %v3224_v26  ;;  %v5520_v26 = vld [vmem:[#allocation4 + $0xd8] ss:$12 sps:$4 sm:$0xff]  }
 0xba0   :  { %v3230_v32 = vpop.xlane.xlu1 %3229 }
 0xba1   :  { %v3231_v8 = vmul.f32 0.00390625, %v3230_v32  ;;  %v3232_v29 = vmul.f32 %v3225_v52, %v3225_v52  ;;  %v3234_v34 = vsub.f32 %v3220_v33, %v3225_v52  ;;  %v3235_v41 = vsub.f32 %v3221_v20, %v3225_v52  ;;  %v5511_v33 = vld [vmem:[#allocation4 + $0x94] ss:$12 sps:$4 sm:$0xff]   ;;  %v5514_v20 = vld [vmem:[#allocation4 + $0xac] ss:$12 sps:$4 sm:$0xff]  }
 0xba2   :  { %3914 = vmatprep.subr.bf16.mxu1 %v5511_v33  ;;  %v5522_v52 = vld [vmem:[#allocation4 + $0xdc] ss:$12 sps:$4 sm:$0xff]   ;;  %v5523_v32 = vld [vmem:[#allocation4 + $0xe0] ss:$12 sps:$4 sm:$0xff]  }
 0xba3   :  { %v3233_v28 = vsub.f32 %v3231_v8, %v3232_v29  ;;  %3915 = vmatpush1.bf16.msra.mxu1 %v5509_v4  ;;  %v5524_v8 = vld [vmem:[#allocation4 + $0x20] ss:$12 sps:$4 sm:$0xff]  }
 0xba4   :  { %3916 = vmatprep.subr.bf16.mxu1 %v5514_v20  ;;  %v5527_v29 = vld [vmem:[#allocation4 + $0xf4] ss:$12 sps:$4 sm:$0xff]   ;;  %v3540_v20 = vrot.slane %v3535_v38, %v6019_v11 }
 0xba5   :  { %v3236_v43 = vadd.f32 1e-05, %v3233_v28  ;;  %v5528_v28 = vld [vmem:[#allocation4 + $0xf8] ss:$12 sps:$4 sm:$0xff]  }
 0xba7   :  { %5611 = vrsqrt.f32 %v3236_v43  ;;  %3917 = vmatpush1.bf16.msra.mxu1 %v5512_v37  ;;  %v5525_v43 = vld [vmem:[#allocation4 + $0xf0] ss:$12 sps:$4 sm:$0xff]   ;;  %v3544_v37 = vrot.slane %v3535_v38, %v6022_v13 }
 0xba8   :  { %3918 = vmatprep.subr.bf16.mxu1 %v5517_v60 }
 0xbab   :  { %3919 = vmatpush1.bf16.msra.mxu1 %v5515_v63 }
 0xbac   :  { %3920 = vmatprep.subr.bf16.mxu1 %v5522_v52  ;;  %v5563_v52 = vld [vmem:[%s6714_s4 + $0x1d0] sm:$0xff]  }
 0xbaf   :  { %3921 = vmatpush1.bf16.msra.mxu1 %v5520_v26  ;;  %v5562_v26 = vld [vmem:[%s6714_s4 + $0x150] sm:$0xff]  }
 0xbb0   :  { %3922 = vmatprep.subr.bf16.mxu1 %v5527_v29  ;;  %v5566_v29 = vld [vmem:[%s6714_s4 + $0x1d8] sm:$0xff]  }
 0xbb1   :  { %v5612_v39 = vpop.eup %5611 }
 0xbb2   :  { %v3239_v46 = vmul.f32 %v5612_v39, %v3235_v41  ;;  %v3238_v53 = vmul.f32 %v5612_v39, %v3234_v34  ;;  %v5533_v34 = vld [vmem:[#allocation4 + $0x110] ss:$12 sps:$4 sm:$0xff]   ;;  %v5530_v41 = vld [vmem:[#allocation4 + $0x108] ss:$12 sps:$4 sm:$0xff]  }
 0xbb3   :  { %3923 = vmatpush1.bf16.msra.mxu1 %v5525_v43  ;;  %v5538_v39 = vld [vmem:[#allocation4 + $0x128] ss:$12 sps:$4 sm:$0xff]   ;;  %v5568_v43 = vld [vmem:[%s6714_s4 + $0x160] sm:$0xff]  }
 0xbb4   :  { %v3253_v42 = vmul.f32 %v3249_v47, %v3239_v46  ;;  %v3252_v59 = vmul.f32 %v3245_v36, %v3238_v53  ;;  %v5534_v36 = vld [vmem:[#allocation4 + $0x50] ss:$12 sps:$4 sm:$0xff]   ;;  %3924 = vmatprep.subr.bf16.mxu1 %v5532_v61  ;;  %v5535_v46 = vld [vmem:[#allocation4 + $0x120] ss:$12 sps:$4 sm:$0xff]  }
 0xbb5   :  { %v5537_v47 = vld [vmem:[#allocation4 + $0x124] ss:$12 sps:$4 sm:$0xff]   ;;  %v5543_v53 = vld [vmem:[#allocation4 + $0x140] ss:$12 sps:$4 sm:$0xff]  }
 0xbb6   :  { %v3267_v45 = vadd.f32 %v3263_v5, %v3253_v42  ;;  %v3266_v23 = vadd.f32 %v3259_v1, %v3252_v59  ;;  %v5539_v1 = vld [vmem:[#allocation4 + $0x68] ss:$12 sps:$4 sm:$0xff]   ;;  %v5540_v42 = vld [vmem:[#allocation4 + $0x138] ss:$12 sps:$4 sm:$0xff]   ;;  %v5544_v59 = vld [vmem:[#allocation4 + $0x80] ss:$12 sps:$4 sm:$0xff]  }
 0xbb7   :  { %3925 = vmatpush1.bf16.msra.mxu1 %v5530_v41  ;;  %v5542_v5 = vld [vmem:[#allocation4 + $0x13c] ss:$12 sps:$4 sm:$0xff]  }
 0xbb8   :  { %v3301_v50 = vpack.c.bf16 %v3267_v45, %v3267_v45  ;;  %v3300_v7 = vpack.c.bf16 %v3266_v23, %v3266_v23  ;;  %3926 = vmatprep.subr.bf16.mxu1 %v5537_v47  ;;  %v5547_v45 = vld [vmem:[#allocation4 + $0x154] ss:$12 sps:$4 sm:$0xff]   ;;  %v5548_v23 = vld [vmem:[#allocation4 + $0x158] ss:$12 sps:$4 sm:$0xff]   ;;  %v5570_v61 = vld [vmem:[%s6714_s4 + $0x1a8] sm:$0xff]  }
 0xbb9   :  { %v5572_v41 = vld [vmem:[%s6714_s4 + $0x1e8] sm:$0xff]   ;;  %v5574_v47 = vld [vmem:[%s6714_s4 + $0x170] sm:$0xff]  }
 0xbba   :  { %3506 = vmatprep.mubr.bf16.mxu0 %v3301_v50  ;;  %v5545_v50 = vld [vmem:[#allocation4 + $0x150] ss:$12 sps:$4 sm:$0xff]  }
 0xbbb   :  { %3507 = vmatmul.mubr.bf16.vlgmr.msra.gmra.mrb[88].mxu0 %v3300_v7  ;;  %3927 = vmatpush1.bf16.msra.mxu1 %v5535_v46  ;;  %v5549_v7 = vld [vmem:[#allocation4 + $0x98] ss:$12 sps:$4 sm:$0xff]  }
 0xbbc   :  { %4772 = vmatpush3.bf16.msra.mxu0 %v5519_v17  ;;  %3928 = vmatprep.subr.bf16.mxu1 %v5542_v5  ;;  %v5576_v46 = vld [vmem:[%s6714_s4 + $0x1b8] sm:$0xff]  }
 0xbbd   :  { %4773 = vmatprep.subr.bf16.mxu0 %v5523_v32  ;;  %v5564_v32 = vld [vmem:[%s6714_s4 + $0x198] sm:$0xff]  }
 0xbbe   :  { %v5578_v5 = vld [vmem:[%s6714_s4 + $0x1f8] sm:$0xff]  }
 0xbbf   :  { %3929 = vmatpush1.bf16.msra.mxu1 %v5540_v42  ;;  %v3641_v42 = vsub.s32 2, %v6016_v10 }
 0xbc0   :  { %4774 = vmatpush3.bf16.msra.mxu0 %v5524_v8  ;;  %3930 = vmatprep.subr.bf16.mxu1 %v5547_v45  ;;  %v5565_v8 = vld [vmem:[%s6714_s4 + $0x158] sm:$0xff]  }
 0xbc1   :  { %4775 = vmatprep.subr.bf16.mxu0 %v5528_v28  ;;  %v5567_v28 = vld [vmem:[%s6714_s4 + $0x1a0] sm:$0xff]  }
 0xbc3   :  { %3931 = vmatpush1.bf16.msra.mxu1 %v5545_v50 }
 0xbc4   :  { %4776 = vmatpush3.bf16.msra.mxu0 %v5529_v31  ;;  %3932 = vmatprep.subr.bf16.mxu1 %v5552_v55  ;;  %v5569_v31 = vld [vmem:[%s6714_s4 + $0x1e0] sm:$0xff]  }
 0xbc5   :  { %4777 = vmatprep.subr.bf16.mxu0 %v5533_v34  ;;  %v5571_v34 = vld [vmem:[%s6714_s4 + $0x168] sm:$0xff]  }
 0xbc7   :  { %3933 = vmatpush1.bf16.msra.mxu1 %v5550_v48 }
 0xbc8   :  { %4778 = vmatpush3.bf16.msra.mxu0 %v5534_v36  ;;  %5060 = vmatprep.subr.bf16.mxu1 %v5768_v24  ;;  %v5573_v36 = vld [vmem:[%s6714_s4 + $0x1b0] sm:$0xff]  }
 0xbc9   :  { %4779 = vmatprep.subr.bf16.mxu0 %v5538_v39  ;;  %v5575_v39 = vld [vmem:[%s6714_s4 + $0x1f0] sm:$0xff]  }
 0xbcc   :  { %4780 = vmatpush3.bf16.msra.mxu0 %v5539_v1  ;;  %v5577_v1 = vld [vmem:[%s6714_s4 + $0x178] sm:$0xff]  }
 0xbcd   :  { %4781 = vmatprep.subr.bf16.mxu0 %v5543_v53  ;;  %v3629_v53 = vld [vmem:[#allocation6 + $0x21] sm:$0x7] }
 0xbce   :  { %v3638_v45 = vrot.slane %v3629_v53, %v6022_v13 }
 0xbd0   :  { %4782 = vmatpush3.bf16.msra.mxu0 %v5544_v59  ;;  %v3634_v59 = vrot.slane %v3629_v53, %v6019_v11 }
 0xbd1   :  { %4783 = vmatprep.subr.bf16.mxu0 %v5548_v23 }
 0xbd4   :  { %4784 = vmatpush3.bf16.msra.mxu0 %v5549_v7  ;;  %v3642_v7 = vrot.slane %v3629_v53, %v3641_v42 }
 0xbd5   :  { %4785 = vmatprep.subr.bf16.mxu0 %v5553_v56 }
 0xbd8   :  { %4786 = vmatpush3.bf16.msra.mxu0 %v5554_v62 }
 0xbd9   :  { %4793 = vmatprep.subr.bf16.mxu0 %v5555_v44 }
 0xc8e   :  { %v3508_v2 = vpop.f32.mrb[88].mxu0 }
 0xc8f   :  { %v3509_v27 = vadd.f32 %v3508_v2, %v3307_v6  ;;  %v3510_v18 = vpop.f32.mrb[89].mxu0  ;;  %v3558_v6 = vrot.slane %v3549_v57, %v6022_v13 }
 0xc90   :  { %v3511_v19 = vadd.f32 %v3510_v18, %v3311_v0  ;;  %v3512_v21 = vpop.f32.mrb[90].mxu0 }
 0xc91   :  { %v6605_v22 = vmax.f32 %v3509_v27, 0.0  ;;  %v3513_v15 = vpop.f32.mrb[91].mxu0 }
 0xc92   :  { %v6607_v12 = vmax.f32 %v3511_v19, 0.0 }
 0xc93   :  { %v3521_v58 = vmul.f32 %v6605_v22, %v6605_v22 }
 0xc94   :  { %v3517_v35 = vadd.f32 %v6607_v12, %v6605_v22  ;;  %v3522_v25 = vmul.f32 %v6607_v12, %v6607_v12 }
 0xc96   :  { %3518 = vadd.xlane.f32.xlu0 %v3517_v35  ;;  %v3523_v40 = vadd.f32 %v3522_v25, %v3521_v58  ;;  %v5558_v58 = vld [vmem:[%s6714_s4 + $0x188] sm:$0xff]  }
 0xc97   :  { %v5559_v35 = vld [vmem:[%s6714_s4 + $0x148] sm:$0xff]  }
 0xc98   :  { %3524 = vadd.xlane.f32.xlu1 %v3523_v40  ;;  %v5560_v25 = vld [vmem:[%s6714_s4 + $0x1c8] sm:$0xff]   ;;  %v5561_v40 = vld [vmem:[%s6714_s4 + $0x190] sm:$0xff]  }
 0xd23   :  { %v3519_v51 = vpop.xlane.xlu0 %3518 }
 0xd24   :  { %v3520_v17 = vmul.f32 0.00390625, %v3519_v51 }
 0xd25   :  { %v3525_v30 = vpop.xlane.xlu1 %3524 }
 0xd26   :  { %v3526_v14 = vmul.f32 0.00390625, %v3525_v30  ;;  %v3527_v16 = vmul.f32 %v3520_v17, %v3520_v17  ;;  %v3529_v33 = vsub.f32 %v6605_v22, %v3520_v17  ;;  %v3530_v4 = vsub.f32 %v6607_v12, %v3520_v17  ;;  %v5556_v22 = vld [vmem:[%s6714_s4 + $0x140] sm:$0xff]  }
 0xd27   :  { %v5557_v12 = vld [vmem:[%s6714_s4 + $0x1c0] sm:$0xff]  }
 0xd28   :  { %v3528_v49 = vsub.f32 %v3526_v14, %v3527_v16 }
 0xd2a   :  { %v3531_v54 = vadd.f32 1e-05, %v3528_v49 }
 0xd2c   :  { %5613 = vrsqrt.f32 %v3531_v54 }
 0xd36   :  { %v5614_v60 = vpop.eup %5613 }
 0xd37   :  { %v3534_v63 = vmul.f32 %v5614_v60, %v3530_v4  ;;  %v3533_v0 = vmul.f32 %v5614_v60, %v3529_v33  ;;  %v4606_v33 = vld [vmem:[#allocation6 + $0x24] ss:$0 sm:$0xff] }
 0xd39   :  { %v3548_v2 = vmul.f32 %v3544_v37, %v3534_v63  ;;  %v3547_v27 = vmul.f32 %v3540_v20, %v3533_v0 }
 0xd3b   :  { %v3562_v18 = vadd.f32 %v3558_v6, %v3548_v2  ;;  %v3561_v19 = vadd.f32 %v3554_v3, %v3547_v27  ;;  %v4269_v27 = vand.u32 127, %v126_v9 }
 0xd3d   :  { %v3628_v21 = vpack.c.bf16 %v3562_v18, %v3562_v18  ;;  %v3627_v15 = vpack.c.bf16 %v3561_v19, %v3561_v19  ;;  %vm4270_vm8 = vcmp.lt.s32.totalorder %v4269_v27, 2 }
 0xd3f   :  { %3934 = vmatprep.mubr.bf16.mxu1 %v3628_v21  ;;  %3975 = vmatprep.mubr.bf16.mxu0 %v3628_v21 }
 0xd40   :  { %3935 = vmatmul.mubr.bf16.vlgmr.msra.gmra.mrb[68].mxu1 %v3627_v15  ;;  %3976 = vmatmul.mubr.bf16.vlgmr.msra.gmra.mrb[92].mxu0 %v3627_v15 }
 0xd41   :  { %4794 = vmatpush3.bf16.msra.mxu0 %v5556_v22  ;;  %5061 = vmatpush3.bf16.msra.mxu1 %v5557_v12 }
 0xd42   :  { %4795 = vmatprep.subr.bf16.mxu0 %v5558_v58  ;;  %5062 = vmatprep.subr.bf16.mxu1 %v5768_v24 }
 0xd43   :  { %5076 = vmatprep.mubr.msk.bf16.mxu1 %vm5769_vm1, %v5768_v24 }
 0xd45   :  { %4796 = vmatpush3.bf16.msra.mxu0 %v5559_v35  ;;  %5063 = vmatpush3.bf16.msra.mxu1 %v5560_v25 }
 0xd46   :  { %4797 = vmatprep.subr.bf16.mxu0 %v5561_v40  ;;  %5064 = vmatprep.subr.bf16.mxu1 %v5768_v24 }
 0xd49   :  { %4798 = vmatpush3.bf16.msra.mxu0 %v5562_v26  ;;  %5065 = vmatpush3.bf16.msra.mxu1 %v5563_v52 }
 0xd4a   :  { %4799 = vmatprep.subr.bf16.mxu0 %v5564_v32  ;;  %5066 = vmatprep.subr.bf16.mxu1 %v5768_v24 }
 0xd4d   :  { %4800 = vmatpush3.bf16.msra.mxu0 %v5565_v8  ;;  %5067 = vmatpush3.bf16.msra.mxu1 %v5566_v29 }
 0xd4e   :  { %4801 = vmatprep.subr.bf16.mxu0 %v5567_v28  ;;  %5068 = vmatprep.subr.bf16.mxu1 %v5768_v24 }
 0xd51   :  { %4802 = vmatpush3.bf16.msra.mxu0 %v5568_v43  ;;  %5069 = vmatpush3.bf16.msra.mxu1 %v5569_v31 }
 0xd52   :  { %4803 = vmatprep.subr.bf16.mxu0 %v5570_v61  ;;  %5070 = vmatprep.subr.bf16.mxu1 %v5768_v24 }
 0xd55   :  { %4804 = vmatpush3.bf16.msra.mxu0 %v5571_v34  ;;  %5071 = vmatpush3.bf16.msra.mxu1 %v5572_v41 }
 0xd56   :  { %5072 = vmatprep.subr.bf16.mxu1 %v5768_v24  ;;  %4805 = vmatprep.subr.bf16.mxu0 %v5573_v36 }
 0xd59   :  { %4806 = vmatpush3.bf16.msra.mxu0 %v5574_v47  ;;  %5073 = vmatpush3.bf16.msra.mxu1 %v5575_v39 }
 0xd5a   :  { %5074 = vmatprep.subr.bf16.mxu1 %v5768_v24  ;;  %4807 = vmatprep.subr.bf16.mxu0 %v5576_v46 }
 0xd5d   :  { %4808 = vmatpush3.bf16.msra.mxu0 %v5577_v1  ;;  %5075 = vmatpush3.bf16.msra.mxu1 %v5578_v5 }
 0xe13   :  { %v3936_v23 = vpop.f32.mrb[68].mxu1  ;;  %v4787_v50 = vpop.f32.mrb[92].mxu0 }
 0xe14   :  { %v3937_v55 = vadd.f32 %v3936_v23, %v3634_v59  ;;  %v3938_v56 = vpop.f32.mrb[69].mxu1  ;;  %v4788_v24 = vpop.f32.mrb[93].mxu0 }
 0xe15   :  { %v3939_v48 = vadd.f32 %v3938_v56, %v3638_v45  ;;  %v4789_v62 = vadd.f32 %v4788_v24, %v4787_v50  ;;  %v3940_v44 = vpop.f32.mrb[70].mxu1  ;;  %v4790_v51 = vpop.f32.mrb[94].mxu0 }
 0xe16   :  { %v3983_v17 = vmax.f32 %v3937_v55, 0.0  ;;  %v3941_v30 = vpop.f32.mrb[71].mxu1  ;;  %v4791_v14 = vpop.f32.mrb[95].mxu0 }
 0xe17   :  { %v3984_v16 = vmax.f32 %v3939_v48, 0.0  ;;  %v3978_v49 = vadd.f32 %v4789_v62, %v3642_v7 }
 0xe18   :  { %v4034_v11 = vpack.c.bf16 %v3983_v17, %v3983_v17 }
 0xe19   :  { %v4035_v10 = vpack.c.bf16 %v3984_v16, %v3984_v16  ;;  %v3985_v54 = vmax.f32 %v3978_v49, 0.0 }
 0xe1b   :  { %v4036_v38 = vpack.c.bf16 %v3985_v54, %v3985_v54  ;;  %4220 = vmatprep.mubr.bf16.mxu0 %v4035_v10 }
 0xe1c   :  { %4221 = vmatmul.mubr.bf16.vlgmr.msra.gmra.mrb[96].mxu0 %v4034_v11 }
 0xe1d   :  { %5077 = vmatmul.mubr.bf16.vlgmr.msra.gmra.mrb[72].mxu1 %v4036_v38 }
 0xeef   :  { %v4809_v13 = vpop.f32.mrb[96].mxu0 }
 0xef0   :  { %v4810_v57 = vpop.f32.mrb[97].mxu0  ;;  %v4262_v4 = vpop.f32.mrb[72].mxu1 }
 0xef1   :  { %v4811_v20 = vadd.f32 %v4810_v57, %v4809_v13  ;;  %v4812_v37 = vpop.f32.mrb[98].mxu0  ;;  %v5078_v60 = vpop.f32.mrb[73].mxu1 }
 0xef2   :  { %v4813_v63 = vpop.f32.mrb[99].mxu0  ;;  %v4265_v3 = vpop.f32.mrb[74].mxu1 }
 0xef3   :  { %v4223_v6 = vadd.f32 %v4811_v20, %v4606_v33  ;;  %v5079_v0 = vpop.f32.mrb[75].mxu1 }
 0xef5   :  { %v4263_v2 = vadd.f32 %v4262_v4, %v4223_v6 }
 0xef7   :  { %5615 = vtanh.f32 %v4263_v2 }
 0xf01   :  { %v5616_v18 = vpop.eup %5615 }
 0xf02   :  { %v4272_v19 = vsel %vm4270_vm8, %v5616_v18, %v4263_v2 }
 0xf03   :  { %4273 = vst [vmem:[%s6722_s12] sm:$0xff] %v4272_v19 }
 0xf04   :  { %4278 = vsyncpa [#allocation3], 1 }
 0xf05   :  { %4279 = vsyncpa [#allocation5], 1 }
 0xf06   :  { %4280 = vsyncpa [#allocation8], 1 }
 0xf07   :  { %4281 = vsyncpa [#allocation11], 1 }

</bundles_post_ra>
